<compile_context>
chip_gen: v5e
topology: v5e:2x2
jax: 0.10.0
libtpu: 0.0.40
codegen_flags: <defaults>
</compile_context>

<pallas_src>
import functools

import jax
import jax.numpy as jnp
from jax.experimental import pallas as pl
from jax.experimental.pallas import tpu as pltpu


# ----------------------------------------------------------------------------
# Fused kernel: maxpool(2) -> conv3x3+BN+ReLU -> conv3x3+BN+ReLU
# ----------------------------------------------------------------------------
def _encoder_bottleneck1_kernel(x_ref, w1_ref, b1_ref, w2_ref, b2_ref, o_ref, xpad_ref,
                                *, hp, wp, cin, cmid, cout, tr):
    t = pl.program_id(1)          # row-tile index within the current batch image

    # ---- MaxPool2d(2): whole image -> persistent VMEM scratch, once per batch ----
    # Gated on t == 0 (NOT on a global "first step"), so it is correct under megacore
    # batch-parallel sharding: every batch's first row step initializes its scratch.
    @pl.when(t == 0)
    def _pool():
        zrows = jnp.zeros((2, wp, cin), xpad_ref.dtype)
        xpad_ref[pl.ds(0, 2), :, :] = zrows            # top 2-row zero halo
        xpad_ref[pl.ds(hp + 2, 2), :, :] = zrows       # bottom 2-row zero halo
        v = x_ref[0]                                   # (hp, 2, wp, 2*cin) bf16
        mw = jnp.maximum(v[..., :cin], v[..., cin:])   # pool along W phase
        pooled = jnp.maximum(mw[:, 0], mw[:, 1])       # pool along H phase -> (hp, wp, cin)
        xpad_ref[pl.ds(2, hp), :, :] = pooled          # aligned full-row interior store

    def col_pad(v):
        # zero column halo, built in registers (no offset-1 scratch stores)
        z = jnp.zeros((v.shape[0], 1, v.shape[2]), v.dtype)
        return jnp.concatenate([z, v, z], axis=1)      # (rows, wp+2, c)

    def conv3x3(get_rows, w_ref, b_ref, rows_out, c_src, n_out):
        """3x3 conv as a single big-K MXU matmul (K = 9*c_src), bf16 operands, f32 acc."""
        pieces = []
        for dy in range(3):                            # static unroll: 3 aligned row loads
            rows_p = col_pad(get_rows(dy))             # (rows_out, wp+2, c_src)
            for dx in range(3):
                pieces.append(jax.lax.slice_in_dim(rows_p, dx, dx + wp, axis=1))
        slab = jnp.concatenate(pieces, axis=-1)        # (rows_out, wp, 9*c_src)
        slab = slab.reshape(rows_out * wp, 9 * c_src)  # leading-dim merge (tile-preserving)
        y = jnp.dot(slab, w_ref[...], preferred_element_type=jnp.float32)
        return jnp.maximum(y + b_ref[...], 0.0)        # f32 epilogue: (rows_out*wp, n_out)

    r0 = pl.multiple_of(t * tr, tr)                    # xpad row of this tile's top halo tap

    # ---- conv1 (3x3, pad=1) + folded BN + ReLU: tr+2 mid rows (1-row halo each side) --
    h1 = conv3x3(lambda dy: xpad_ref[pl.ds(r0 + dy, tr + 2), :, :],
                 w1_ref, b1_ref, tr + 2, cin, cmid)
    h1 = h1.reshape(tr + 2, wp, cmid)
    # Out-of-image halo rows must act as conv2's zero padding (mask in f32, cast once).
    row = t * tr - 1 + jax.lax.broadcasted_iota(jnp.int32, (tr + 2, wp, 1), 0)
    h1 = jnp.where((row >= 0) & (row < hp), h1, 0.0)
    mid = h1.astype(jnp.bfloat16)                      # bf16 mid, lives as a value only

    # ---- conv2 (3x3, pad=1) + folded BN + ReLU: tr output rows -----------------------
    y = conv3x3(lambda dy: jax.lax.slice_in_dim(mid, dy, dy + tr, axis=0),
                w2_ref, b2_ref, tr, cmid, cout)
    o_ref[0] = y.astype(o_ref.dtype)                   # flat (tr*wp, cout): no in-kernel reshape


def encoder_bottleneck1(params, x_nchw, *, row_tile=8):
    """EncoderBottleneck1.forward: DoubleConv(MaxPool2d(2)(x)); x is NCHW."""
    n, cin, h, w = x_nchw.shape
    assert h % 2 == 0 and w % 2 == 0, "MaxPool2d(2) needs even spatial dims"
    hp, wp = h // 2, w // 2
    assert wp % 8 == 0, "pooled width must be a multiple of 8 for clean TPU sublane layout"
    tr = min(row_tile, hp)
    assert hp % tr == 0, "pooled height must be divisible by the row tile"
    r = hp // tr
    k1, cmid = params["w1"].shape
    k2, cout = params["w2"].shape
    assert k1 == 9 * cin and k2 == 9 * cmid

    # NCHW -> NHWC bf16 (single fused XLA pass); the 5-D view is a free row-major reshape,
    # so the raw input hits HBM exactly once per batch image.
    x_nhwc = jnp.transpose(x_nchw, (0, 2, 3, 1)).astype(jnp.bfloat16)
    x_view = x_nhwc.reshape(n, hp, 2, wp, 2 * cin)

    kernel = functools.partial(_encoder_bottleneck1_kernel,
                               hp=hp, wp=wp, cin=cin, cmid=cmid, cout=cout, tr=tr)

    out_flat = pl.pallas_call(
        kernel,
        out_shape=jax.ShapeDtypeStruct((n, hp * wp, cout), jnp.float32),
        grid=(n, r),
        in_specs=[
            # whole image per batch; block index ignores t -> DMA'd once per batch
            pl.BlockSpec((1, hp, 2, wp, 2 * cin), lambda b, t: (b, 0, 0, 0, 0)),
            pl.BlockSpec((9 * cin, cmid), lambda b, t: (0, 0)),
            pl.BlockSpec((1, cmid), lambda b, t: (0, 0)),
            pl.BlockSpec((9 * cmid, cout), lambda b, t: (0, 0)),
            pl.BlockSpec((1, cout), lambda b, t: (0, 0)),
        ],
        out_specs=pl.BlockSpec((1, tr * wp, cout), lambda b, t: (b, t, 0)),
        scratch_shapes=[
            # pooled image + 2-row zero halos, persistent across row tiles of a batch
            pltpu.VMEM((hp + 4, wp, cin), jnp.bfloat16),
        ],
        compiler_params=pltpu.CompilerParams(
            dimension_semantics=("parallel", "arbitrary"),
            vmem_limit_bytes=64 * 1024 * 1024),
    )(x_view, params["w1"], params["b1"], params["w2"], params["b2"])

    out_nhwc = out_flat.reshape(n, hp, wp, cout)       # free row-major reshape
    return jnp.transpose(out_nhwc, (0, 3, 1, 2))       # NHWC -> NCHW


# ----------------------------------------------------------------------------
# Parameters (deterministic).  Conv3x3(bias=False) + eval-mode BN folded with
# real running statistics (scale = gamma/sqrt(var+eps), bias = beta - mean*scale).
# ----------------------------------------------------------------------------
def init_params(key, cin, cout, cmid=None):
    cmid = cout if cmid is None else cmid
    eps = 1e-5
    ks = jax.random.split(key, 10)

    def conv_bn(kw, kg, kb, km, kv, ci, co):
        wgt = 0.05 * jax.random.normal(kw, (co, ci, 3, 3), jnp.float32)      # torch OIHW
        gamma = 1.0 + 0.05 * jax.random.normal(kg, (co,), jnp.float32)
        beta = 0.05 * jax.random.normal(kb, (co,), jnp.float32)
        running_mean = 0.02 * jax.random.normal(km, (co,), jnp.float32)
        running_var = 1.0 + 0.1 * jax.random.uniform(kv, (co,), jnp.float32)
        scale = gamma / jnp.sqrt(running_var + eps)
        w_folded = wgt * scale[:, None, None, None]
        bias = beta - running_mean * scale
        # (O,I,3,3) -> (ky,kx,I,O) -> (9*I, O): K ordered (ky, kx, cin), matches the
        # in-kernel im2col lane-concat order.  bf16 MXU operand.
        wk = jnp.transpose(w_folded, (2, 3, 1, 0)).reshape(9 * ci, co).astype(jnp.bfloat16)
        return wk, bias.reshape(1, co).astype(jnp.float32)

    w1, b1 = conv_bn(ks[0], ks[1], ks[2], ks[3], ks[4], cin, cmid)
    w2, b2 = conv_bn(ks[5], ks[6], ks[7], ks[8], ks[9], cmid, cout)
    return dict(w1=w1, b1=b1, w2=w2, b2=b2)


# ----------------------------------------------------------------------------
# Plain-JAX reference (same bf16-operand / f32-accumulation numerics).
# ----------------------------------------------------------------------------
def reference(params, x_nchw):
    x = jnp.transpose(x_nchw, (0, 2, 3, 1)).astype(jnp.bfloat16)
    n, h, w, c = x.shape
    pooled = jnp.max(x.reshape(n, h // 2, 2, w // 2, 2, c), axis=(2, 4))

    def conv(t, w9, b):
        ci = t.shape[-1]
        co = w9.shape[-1]
        kw = w9.reshape(3, 3, ci, co)                                        # HWIO
        y = jax.lax.conv_general_dilated(
            t.astype(jnp.bfloat16), kw, (1, 1), "SAME",
            dimension_numbers=("NHWC", "HWIO", "NHWC"),
            preferred_element_type=jnp.float32)
        return jnp.maximum(y + b.reshape(1, 1, 1, -1), 0.0)

    h1 = conv(pooled, params["w1"], params["b1"]).astype(jnp.bfloat16)
    y = conv(h1, params["w2"], params["b2"])
    return jnp.transpose(y, (0, 3, 1, 2))


# ----------------------------------------------------------------------------
if __name__ == "__main__":
    # EncoderBottleneck1(64, 128) at small spatial size -> pooled 16x16, 2 row tiles.
    B, CIN, COUT, H, W = 2, 64, 128, 32, 32

    key = jax.random.PRNGKey(0)
    kx, kp = jax.random.split(key)
    params = init_params(kp, CIN, COUT)
    x = jax.random.normal(kx, (B, CIN, H, W), dtype=jnp.float32)

    fwd = jax.jit(encoder_bottleneck1)
    out = fwd(params, x)
    jax.block_until_ready(out)

    assert out.shape == (B, COUT, H // 2, W // 2), out.shape
    assert bool(jnp.all(jnp.isfinite(out)))

    ref = jax.jit(reference)(params, x)
    err = float(jnp.max(jnp.abs(out - ref)))
    assert err < 5e-2, f"max |kernel - reference| = {err}"

    print("KERNEL_OK")
</pallas_src>

<mosaic_0001>
module attributes {stable_mosaic.version = 11 : i64} {
  func.func @_encoder_bottleneck1_kernel(%arg0: i32, %arg1: i32, %arg2: memref<1x16x2x16x128xbf16, #tpu.memory_space<vmem>>, %arg3: memref<576x128xbf16, #tpu.memory_space<vmem>>, %arg4: memref<1x128xf32, #tpu.memory_space<vmem>>, %arg5: memref<1152x128xbf16, #tpu.memory_space<vmem>>, %arg6: memref<1x128xf32, #tpu.memory_space<vmem>>, %arg7: memref<1x128x128xf32, #tpu.memory_space<vmem>>, %arg8: memref<20x16x64xbf16, #tpu.memory_space<vmem>>) attributes {dimension_semantics = [#tpu.dimension_semantics<parallel>, #tpu.dimension_semantics<arbitrary>], iteration_bounds = array<i64: 2, 2>, scalar_prefetch = 0 : i64, scratch_operands = 1 : i64, tpu.core_type = #tpu.core_type<tc>, window_params = [{transform_indices = @transform_0, window_bounds = array<i64: 1, 16, 2, 16, 128>}, {pipeline_mode = #tpu.pipeline_mode<synchronous>, transform_indices = @transform_1, window_bounds = array<i64: 576, 128>}, {pipeline_mode = #tpu.pipeline_mode<synchronous>, transform_indices = @transform_2, window_bounds = array<i64: 1, 128>}, {pipeline_mode = #tpu.pipeline_mode<synchronous>, transform_indices = @transform_3, window_bounds = array<i64: 1152, 128>}, {pipeline_mode = #tpu.pipeline_mode<synchronous>, transform_indices = @transform_4, window_bounds = array<i64: 1, 128>}, {transform_indices = @transform_5, window_bounds = array<i64: 1, 128, 128>}]} {
    %c0_i32 = arith.constant 0 : i32
    %0 = arith.cmpi eq, %arg1, %c0_i32 : i32
    %1 = arith.extui %0 : i1 to i32
    %c0_i32_0 = arith.constant 0 : i32
    %2 = arith.cmpi ne, %1, %c0_i32_0 : i32
    scf.if %2 {
      %cst_31 = arith.constant 0.000000e+00 : bf16
      %84 = vector.broadcast %cst_31 : bf16 to vector<2x16x64xbf16>
      %c0_32 = arith.constant 0 : index
      %c0_33 = arith.constant 0 : index
      %c0_34 = arith.constant 0 : index
      %85 = vector.load %arg8[%c0_32, %c0_33, %c0_34] : memref<20x16x64xbf16, #tpu.memory_space<vmem>>, vector<2x16x64xbf16>
      tpu.vector_store %arg8[%c0_32, %c0_33, %c0_34], %84 {strides = array<i32>} : memref<20x16x64xbf16, #tpu.memory_space<vmem>>, vector<2x16x64xbf16>,
      %c18 = arith.constant 18 : index
      %c0_35 = arith.constant 0 : index
      %c0_36 = arith.constant 0 : index
      %86 = vector.load %arg8[%c18, %c0_35, %c0_36] : memref<20x16x64xbf16, #tpu.memory_space<vmem>>, vector<2x16x64xbf16>
      tpu.vector_store %arg8[%c18, %c0_35, %c0_36], %84 {strides = array<i32>} : memref<20x16x64xbf16, #tpu.memory_space<vmem>>, vector<2x16x64xbf16>,
      %c0_37 = arith.constant 0 : index
      %c0_38 = arith.constant 0 : index
      %c0_39 = arith.constant 0 : index
      %c0_40 = arith.constant 0 : index
      %c0_41 = arith.constant 0 : index
      %87 = vector.load %arg2[%c0_37, %c0_38, %c0_39, %c0_40, %c0_41] : memref<1x16x2x16x128xbf16, #tpu.memory_space<vmem>>, vector<1x16x2x16x128xbf16>
      %88 = vector.shape_cast %87 : vector<1x16x2x16x128xbf16> to vector<16x2x16x128xbf16>
      %89 = vector.extract_strided_slice %88 {offsets = [0, 0, 0, 0], sizes = [16, 2, 16, 64], strides = [1, 1, 1, 1]} : vector<16x2x16x128xbf16> to vector<16x2x16x64xbf16>
      %90 = vector.extract_strided_slice %88 {offsets = [0, 0, 0, 64], sizes = [16, 2, 16, 64], strides = [1, 1, 1, 1]} : vector<16x2x16x128xbf16> to vector<16x2x16x64xbf16>
      %91 = arith.maximumf %89, %90 : vector<16x2x16x64xbf16>
      %92 = vector.extract_strided_slice %91 {offsets = [0, 0, 0, 0], sizes = [16, 1, 16, 64], strides = [1, 1, 1, 1]} : vector<16x2x16x64xbf16> to vector<16x1x16x64xbf16>
      %93 = vector.shape_cast %92 : vector<16x1x16x64xbf16> to vector<16x16x64xbf16>
      %94 = vector.extract_strided_slice %91 {offsets = [0, 1, 0, 0], sizes = [16, 1, 16, 64], strides = [1, 1, 1, 1]} : vector<16x2x16x64xbf16> to vector<16x1x16x64xbf16>
      %95 = vector.shape_cast %94 : vector<16x1x16x64xbf16> to vector<16x16x64xbf16>
      %96 = arith.maximumf %93, %95 : vector<16x16x64xbf16>
      %c2 = arith.constant 2 : index
      %c0_42 = arith.constant 0 : index
      %c0_43 = arith.constant 0 : index
      %97 = vector.load %arg8[%c2, %c0_42, %c0_43] : memref<20x16x64xbf16, #tpu.memory_space<vmem>>, vector<16x16x64xbf16>
      tpu.vector_store %arg8[%c2, %c0_42, %c0_43], %96 {strides = array<i32>} : memref<20x16x64xbf16, #tpu.memory_space<vmem>>, vector<16x16x64xbf16>,
    } else {
    }
    %c8_i32 = arith.constant 8 : i32
    %3 = arith.muli %arg1, %c8_i32 : i32
    %4 = tpu.assume_multiple %3, 8 : i32
    %c0_i32_1 = arith.constant 0 : i32
    %5 = arith.addi %4, %c0_i32_1 : i32
    %6 = arith.index_cast %5 : i32 to index
    %c0 = arith.constant 0 : index
    %c0_2 = arith.constant 0 : index
    %7 = vector.load %arg8[%6, %c0, %c0_2] : memref<20x16x64xbf16, #tpu.memory_space<vmem>>, vector<10x16x64xbf16>
    %cst = arith.constant 0.000000e+00 : bf16
    %8 = vector.broadcast %cst : bf16 to vector<10x1x64xbf16>
    %9 = tpu.concatenate %8, %7, %8 in 1 : vector<10x1x64xbf16>, vector<10x16x64xbf16>, vector<10x1x64xbf16> -> vector<10x18x64xbf16>
    %10 = vector.extract_strided_slice %9 {offsets = [0, 0, 0], sizes = [10, 16, 64], strides = [1, 1, 1]} : vector<10x18x64xbf16> to vector<10x16x64xbf16>
    %11 = vector.extract_strided_slice %9 {offsets = [0, 1, 0], sizes = [10, 16, 64], strides = [1, 1, 1]} : vector<10x18x64xbf16> to vector<10x16x64xbf16>
    %12 = vector.extract_strided_slice %9 {offsets = [0, 2, 0], sizes = [10, 16, 64], strides = [1, 1, 1]} : vector<10x18x64xbf16> to vector<10x16x64xbf16>
    %c1_i32 = arith.constant 1 : i32
    %13 = arith.addi %4, %c1_i32 : i32
    %14 = arith.index_cast %13 : i32 to index
    %c0_3 = arith.constant 0 : index
    %c0_4 = arith.constant 0 : index
    %15 = vector.load %arg8[%14, %c0_3, %c0_4] : memref<20x16x64xbf16, #tpu.memory_space<vmem>>, vector<10x16x64xbf16>
    %cst_5 = arith.constant 0.000000e+00 : bf16
    %16 = vector.broadcast %cst_5 : bf16 to vector<10x1x64xbf16>
    %17 = tpu.concatenate %16, %15, %16 in 1 : vector<10x1x64xbf16>, vector<10x16x64xbf16>, vector<10x1x64xbf16> -> vector<10x18x64xbf16>
    %18 = vector.extract_strided_slice %17 {offsets = [0, 0, 0], sizes = [10, 16, 64], strides = [1, 1, 1]} : vector<10x18x64xbf16> to vector<10x16x64xbf16>
    %19 = vector.extract_strided_slice %17 {offsets = [0, 1, 0], sizes = [10, 16, 64], strides = [1, 1, 1]} : vector<10x18x64xbf16> to vector<10x16x64xbf16>
    %20 = vector.extract_strided_slice %17 {offsets = [0, 2, 0], sizes = [10, 16, 64], strides = [1, 1, 1]} : vector<10x18x64xbf16> to vector<10x16x64xbf16>
    %c2_i32 = arith.constant 2 : i32
    %21 = arith.addi %4, %c2_i32 : i32
    %22 = arith.index_cast %21 : i32 to index
    %c0_6 = arith.constant 0 : index
    %c0_7 = arith.constant 0 : index
    %23 = vector.load %arg8[%22, %c0_6, %c0_7] : memref<20x16x64xbf16, #tpu.memory_space<vmem>>, vector<10x16x64xbf16>
    %cst_8 = arith.constant 0.000000e+00 : bf16
    %24 = vector.broadcast %cst_8 : bf16 to vector<10x1x64xbf16>
    %25 = tpu.concatenate %24, %23, %24 in 1 : vector<10x1x64xbf16>, vector<10x16x64xbf16>, vector<10x1x64xbf16> -> vector<10x18x64xbf16>
    %26 = vector.extract_strided_slice %25 {offsets = [0, 0, 0], sizes = [10, 16, 64], strides = [1, 1, 1]} : vector<10x18x64xbf16> to vector<10x16x64xbf16>
    %27 = vector.extract_strided_slice %25 {offsets = [0, 1, 0], sizes = [10, 16, 64], strides = [1, 1, 1]} : vector<10x18x64xbf16> to vector<10x16x64xbf16>
    %28 = vector.extract_strided_slice %25 {offsets = [0, 2, 0], sizes = [10, 16, 64], strides = [1, 1, 1]} : vector<10x18x64xbf16> to vector<10x16x64xbf16>
    %29 = tpu.concatenate %10, %11, %12, %18, %19, %20, %26, %27, %28 in 2 : vector<10x16x64xbf16>, vector<10x16x64xbf16>, vector<10x16x64xbf16>, vector<10x16x64xbf16>, vector<10x16x64xbf16>, vector<10x16x64xbf16>, vector<10x16x64xbf16>, vector<10x16x64xbf16>, vector<10x16x64xbf16> -> vector<10x16x576xbf16>
    %30 = vector.shape_cast %29 : vector<10x16x576xbf16> to vector<160x576xbf16>
    %c0_9 = arith.constant 0 : index
    %c0_10 = arith.constant 0 : index
    %31 = vector.load %arg3[%c0_9, %c0_10] : memref<576x128xbf16, #tpu.memory_space<vmem>>, vector<576x128xbf16>
    %cst_11 = arith.constant dense<0.000000e+00> : vector<160x128xf32>
    %32 = tpu.matmul %30, %31, %cst_11 {dimension_numbers = #tpu.dot_dimension_numbers<[1], [0], [0], [1], [0, 0, 1, 1], [], []>} : vector<160x576xbf16>, vector<576x128xbf16>, vector<160x128xf32> -> vector<160x128xf32>
    %c0_12 = arith.constant 0 : index
    %c0_13 = arith.constant 0 : index
    %33 = vector.load %arg4[%c0_12, %c0_13] : memref<1x128xf32, #tpu.memory_space<vmem>>, vector<1x128xf32>
    %34 = vector.broadcast %33 : vector<1x128xf32> to vector<160x128xf32>
    %35 = arith.addf %32, %34 : vector<160x128xf32>
    %cst_14 = arith.constant 0.000000e+00 : f32
    %36 = vector.broadcast %cst_14 : f32 to vector<160x128xf32>
    %37 = arith.maximumf %35, %36 : vector<160x128xf32>
    %38 = vector.shape_cast %37 : vector<160x128xf32> to vector<10x16x128xf32>
    %c8_i32_15 = arith.constant 8 : i32
    %39 = arith.muli %arg1, %c8_i32_15 : i32
    %c1_i32_16 = arith.constant 1 : i32
    %40 = arith.subi %39, %c1_i32_16 : i32
    %41 = tpu.iota {dimensions = array<i32: 0>} : vector<10x16x1xi32>
    %42 = vector.broadcast %40 : i32 to vector<10x16x1xi32>
    %43 = arith.addi %42, %41 : vector<10x16x1xi32>
    %c0_i32_17 = arith.constant 0 : i32
    %44 = vector.broadcast %c0_i32_17 : i32 to vector<10x16x1xi32>
    %45 = arith.cmpi sge, %43, %44 : vector<10x16x1xi32>
    %c16_i32 = arith.constant 16 : i32
    %46 = vector.broadcast %c16_i32 : i32 to vector<10x16x1xi32>
    %47 = arith.cmpi slt, %43, %46 : vector<10x16x1xi32>
    %48 = arith.andi %45, %47 : vector<10x16x1xi1>
    %cst_18 = arith.constant 0.000000e+00 : f32
    %49 = vector.shape_cast %48 : vector<10x16x1xi1> to vector<10x16x1xi1>
    %50 = vector.broadcast %49 : vector<10x16x1xi1> to vector<10x16x128xi1>
    %51 = vector.broadcast %cst_18 : f32 to vector<10x16x128xf32>
    %52 = arith.select %50, %38, %51 : vector<10x16x128xi1>, vector<10x16x128xf32>
    %53 = arith.truncf %52 : vector<10x16x128xf32> to vector<10x16x128xbf16>
    %54 = vector.extract_strided_slice %53 {offsets = [0, 0, 0], sizes = [8, 16, 128], strides = [1, 1, 1]} : vector<10x16x128xbf16> to vector<8x16x128xbf16>
    %cst_19 = arith.constant 0.000000e+00 : bf16
    %55 = vector.broadcast %cst_19 : bf16 to vector<8x1x128xbf16>
    %56 = tpu.concatenate %55, %54, %55 in 1 : vector<8x1x128xbf16>, vector<8x16x128xbf16>, vector<8x1x128xbf16> -> vector<8x18x128xbf16>
    %57 = vector.extract_strided_slice %56 {offsets = [0, 0, 0], sizes = [8, 16, 128], strides = [1, 1, 1]} : vector<8x18x128xbf16> to vector<8x16x128xbf16>
    %58 = vector.extract_strided_slice %56 {offsets = [0, 1, 0], sizes = [8, 16, 128], strides = [1, 1, 1]} : vector<8x18x128xbf16> to vector<8x16x128xbf16>
    %59 = vector.extract_strided_slice %56 {offsets = [0, 2, 0], sizes = [8, 16, 128], strides = [1, 1, 1]} : vector<8x18x128xbf16> to vector<8x16x128xbf16>
    %60 = vector.extract_strided_slice %53 {offsets = [1, 0, 0], sizes = [8, 16, 128], strides = [1, 1, 1]} : vector<10x16x128xbf16> to vector<8x16x128xbf16>
    %cst_20 = arith.constant 0.000000e+00 : bf16
    %61 = vector.broadcast %cst_20 : bf16 to vector<8x1x128xbf16>
    %62 = tpu.concatenate %61, %60, %61 in 1 : vector<8x1x128xbf16>, vector<8x16x128xbf16>, vector<8x1x128xbf16> -> vector<8x18x128xbf16>
    %63 = vector.extract_strided_slice %62 {offsets = [0, 0, 0], sizes = [8, 16, 128], strides = [1, 1, 1]} : vector<8x18x128xbf16> to vector<8x16x128xbf16>
    %64 = vector.extract_strided_slice %62 {offsets = [0, 1, 0], sizes = [8, 16, 128], strides = [1, 1, 1]} : vector<8x18x128xbf16> to vector<8x16x128xbf16>
    %65 = vector.extract_strided_slice %62 {offsets = [0, 2, 0], sizes = [8, 16, 128], strides = [1, 1, 1]} : vector<8x18x128xbf16> to vector<8x16x128xbf16>
    %66 = vector.extract_strided_slice %53 {offsets = [2, 0, 0], sizes = [8, 16, 128], strides = [1, 1, 1]} : vector<10x16x128xbf16> to vector<8x16x128xbf16>
    %cst_21 = arith.constant 0.000000e+00 : bf16
    %67 = vector.broadcast %cst_21 : bf16 to vector<8x1x128xbf16>
    %68 = tpu.concatenate %67, %66, %67 in 1 : vector<8x1x128xbf16>, vector<8x16x128xbf16>, vector<8x1x128xbf16> -> vector<8x18x128xbf16>
    %69 = vector.extract_strided_slice %68 {offsets = [0, 0, 0], sizes = [8, 16, 128], strides = [1, 1, 1]} : vector<8x18x128xbf16> to vector<8x16x128xbf16>
    %70 = vector.extract_strided_slice %68 {offsets = [0, 1, 0], sizes = [8, 16, 128], strides = [1, 1, 1]} : vector<8x18x128xbf16> to vector<8x16x128xbf16>
    %71 = vector.extract_strided_slice %68 {offsets = [0, 2, 0], sizes = [8, 16, 128], strides = [1, 1, 1]} : vector<8x18x128xbf16> to vector<8x16x128xbf16>
    %72 = tpu.concatenate %57, %58, %59, %63, %64, %65, %69, %70, %71 in 2 : vector<8x16x128xbf16>, vector<8x16x128xbf16>, vector<8x16x128xbf16>, vector<8x16x128xbf16>, vector<8x16x128xbf16>, vector<8x16x128xbf16>, vector<8x16x128xbf16>, vector<8x16x128xbf16>, vector<8x16x128xbf16> -> vector<8x16x1152xbf16>
    %73 = vector.shape_cast %72 : vector<8x16x1152xbf16> to vector<128x1152xbf16>
    %c0_22 = arith.constant 0 : index
    %c0_23 = arith.constant 0 : index
    %74 = vector.load %arg5[%c0_22, %c0_23] : memref<1152x128xbf16, #tpu.memory_space<vmem>>, vector<1152x128xbf16>
    %cst_24 = arith.constant dense<0.000000e+00> : vector<128x128xf32>
    %75 = tpu.matmul %73, %74, %cst_24 {dimension_numbers = #tpu.dot_dimension_numbers<[1], [0], [0], [1], [0, 0, 1, 1], [], []>} : vector<128x1152xbf16>, vector<1152x128xbf16>, vector<128x128xf32> -> vector<128x128xf32>
    %c0_25 = arith.constant 0 : index
    %c0_26 = arith.constant 0 : index
    %76 = vector.load %arg6[%c0_25, %c0_26] : memref<1x128xf32, #tpu.memory_space<vmem>>, vector<1x128xf32>
    %77 = vector.broadcast %76 : vector<1x128xf32> to vector<128x128xf32>
    %78 = arith.addf %75, %77 : vector<128x128xf32>
    %cst_27 = arith.constant 0.000000e+00 : f32
    %79 = vector.broadcast %cst_27 : f32 to vector<128x128xf32>
    %80 = arith.maximumf %78, %79 : vector<128x128xf32>
    %c0_28 = arith.constant 0 : index
    %c0_29 = arith.constant 0 : index
    %c0_30 = arith.constant 0 : index
    %81 = vector.load %arg7[%c0_28, %c0_29, %c0_30] : memref<1x128x128xf32, #tpu.memory_space<vmem>>, vector<1x128x128xf32>
    %82 = vector.shape_cast %81 : vector<1x128x128xf32> to vector<128x128xf32>
    %83 = vector.shape_cast %80 : vector<128x128xf32> to vector<1x128x128xf32>
    tpu.vector_store %arg7[%c0_28, %c0_29, %c0_30], %83 {strides = array<i32>} : memref<1x128x128xf32, #tpu.memory_space<vmem>>, vector<1x128x128xf32>,
    return
  }
  func.func @transform_0(%arg0: i32, %arg1: i32) -> (i32, i32, i32, i32, i32) {
    %c0_i32 = arith.constant 0 : i32
    %c0_i32_0 = arith.constant 0 : i32
    %c0_i32_1 = arith.constant 0 : i32
    %c0_i32_2 = arith.constant 0 : i32
    %c0_i32_3 = arith.constant 0 : i32
    return %arg0, %c0_i32, %c0_i32_0, %c0_i32_1, %c0_i32_2 : i32, i32, i32, i32, i32
  }
  func.func @transform_1(%arg0: i32, %arg1: i32) -> (i32, i32) {
    %c0_i32 = arith.constant 0 : i32
    %c0_i32_0 = arith.constant 0 : i32
    %c0_i32_1 = arith.constant 0 : i32
    return %c0_i32, %c0_i32_0 : i32, i32
  }
  func.func @transform_2(%arg0: i32, %arg1: i32) -> (i32, i32) {
    %c0_i32 = arith.constant 0 : i32
    %c0_i32_0 = arith.constant 0 : i32
    %c0_i32_1 = arith.constant 0 : i32
    return %c0_i32, %c0_i32_0 : i32, i32
  }
  func.func @transform_3(%arg0: i32, %arg1: i32) -> (i32, i32) {
    %c0_i32 = arith.constant 0 : i32
    %c0_i32_0 = arith.constant 0 : i32
    %c0_i32_1 = arith.constant 0 : i32
    return %c0_i32, %c0_i32_0 : i32, i32
  }
  func.func @transform_4(%arg0: i32, %arg1: i32) -> (i32, i32) {
    %c0_i32 = arith.constant 0 : i32
    %c0_i32_0 = arith.constant 0 : i32
    %c0_i32_1 = arith.constant 0 : i32
    return %c0_i32, %c0_i32_0 : i32, i32
  }
  func.func @transform_5(%arg0: i32, %arg1: i32) -> (i32, i32, i32) {
    %c0_i32 = arith.constant 0 : i32
    %c0_i32_0 = arith.constant 0 : i32
    return %arg0, %arg1, %c0_i32 : i32, i32, i32
  }
}

</mosaic_0001>

<bundles_post_ra>
// kernel: encoder_bottleneck1.1
= control target key start
LH: loop header
LB: loop body
LE: loop exit
PB: predicated region body
PF: predicated region fallthrough
CT: control target
= control target key end

     0   :  { %10 = vsyncpa [#allocation4], 0  ;;  %s7980_s0 = inlined_call_operand.vmem [shape: bf16[2,16,2,16,128], index: 0, kind: input, shape index: {}]   ;;  %s7981_s1 = inlined_call_operand.vmem [shape: bf16[576,128], index: 1, kind: input, shape index: {}]   ;;  %s7982_s2 = inlined_call_operand.vmem [shape: f32[1,128], index: 2, kind: input, shape index: {}]   ;;  %s7983_s3 = inlined_call_operand.vmem [shape: bf16[1152,128], index: 3, kind: input, shape index: {}]   ;;  %s7984_s4 = inlined_call_operand.vmem [shape: f32[1,128], index: 4, kind: input, shape index: {}]   ;;  %s7985_s5 = inlined_call_operand.hbm [shape: f32[2,256,128], index: 5, kind: output, shape index: {}]  }
   0x1   :  { %12 = vsyncpa [#allocation4 + $0x1], 0  ;;  %s5771_s18 = smov 0   ;;  %s5773_s19 = smov 0  }
   0x2   :  { %s5775_s20 = smov 0   ;;  %s5777_s21 = smov 0  }
   0x3   :  { %s5779_s22 = smov 0   ;;  %s5781_s23 = smov 0  }
   0x4   :  { %s5783_s24 = smov 0   ;;  %s5785_s25 = smov 0  }
   0x5 LB: > { %s4459_s26 = sadd.s32 4294967295, %s5734_s25   ;;  %s4460_s27 = sadd.s32 4294967294, %s5734_s25   ;;  %s5734_s25 = sphi %s5785_s25, %s18_s25   ;;  %s5730_s24 = sphi %s5783_s24, %s8152_s24   ;;  %s5726_s23 = sphi %s5781_s23, %s8151_s23   ;;  %s5722_s22 = sphi %s5779_s22, %s8150_s22   ;;  %s5718_s21 = sphi %s5777_s21, %s8149_s21   ;;  %s5714_s20 = sphi %s5775_s20, %s8148_s20   ;;  %s5710_s19 = sphi %s5773_s19, %s8147_s19   ;;  %s5706_s18 = sphi %s5771_s18, %s8146_s18  }
   0x6   : > { %s27_s28 = sadd.s32 1, %s5726_s23  ;;  %s30_s29 = sadd.s32 1, %s5730_s24 }
   0x7   : > { %p28_p0 = scmp.ge.s32.totalorder %s27_s28, 2  ;;  %p159_p1 = scmp.ne.s32.totalorder %s5714_s20, %s5710_s19 }
   0x8   : > { %p160_p2 = scmp.eq.s32.totalorder %s4459_s26, 3  ;;  %p165_p5 = scmp.ne.s32.totalorder %s5710_s19, %s5706_s18 }
   0x9   : > { %s8154_s28 = smov (%p28_p0, %s27_s28), 0  ;;  %s8156_s29 = smov (!%p28_p0, %s30_s29), %s5730_s24 }
   0xa   : > { %s145_s30 = ssub.s32 %s5726_s23, %s8154_s28  ;;  %p5822_p3 = por %p160_p2, %p159_p1 }
   0xb   : > { %p32_p4 = scmp.ge.s32.totalorder %s8156_s29, 2  ;;  %p166_p6 = scmp.eq.s32.totalorder %s4460_s27, 3 }
   0xc   : > { %p4463_p7 = scmp.ge.s32.totalorder %s5734_s25, 1  ;;  %p204_p9 = scmp.lt.s32.totalorder %s5734_s25, 5 }
   0xd   : > { %s8158_s29 = smov (%p32_p4, %s8156_s29), 0  ;;  %p5831_p8 = por %p166_p6, %p165_p5 }
   0xe   : > { %s144_s8 = ssub.s32 %s5730_s24, %s8158_s29  ;;  %s149_s9 = sadd.s32 1, %s5714_s20 }
   0xf   : > { %s146_s10 = sor.u32 %s145_s30, %s144_s8  ;;  %p205_p10 = pnand %p4463_p7, %p204_p9 }
  0x10   : > { %p147_p11 = scmp.eq.s32.totalorder %s146_s10, 0 }
  0x11   : > { %208 = sbr.rel (%p205_p10) target bundleno = 1262 (0x4ee), region = 40 }
  0x12   : > { %s5840_s11 = scalar_select %p147_p11, %s5714_s20, %s149_s9  }
  0x16   : > { %s229_s12 = sand.u32 1, %s5710_s19   ;;  %p232_p12 = scmp.lt.s32.totalorder %s5722_s22, 1 }
  0x17   : > { %s4464_s13 = sshll.u32 %s229_s12, 7  ;;  %p4467_p13 = scmp.ne.s32.totalorder %s5718_s21, 0 }
  0x18   : > { %s233_s14 = scalar_select %p232_p12, %s5722_s22, 1 }
  0x19   : > { %s5852_s27 = scalar_lea.vmem [#allocation3], %s4464_s13  ;;  %242 = sbr.rel (%p4467_p13) target bundleno = 240 (0xf0), region = 44 }
  0x1a   : > { %s5084_s15 = sshll.u32 %s233_s14, 8  ;;  %s5736_s30 = smov (!%p4467_p13), 64  }
  0x1b   : > { %s5850_s26 = scalar_lea.vmem %s7980_s0, %s5084_s15 }
  0x1e   : > { %v5856_v0 = vld [vmem:[%s5850_s26 + $0x10] sm:$0xff]   ;;  %v5859_v1 = vld [vmem:[%s5850_s26] sm:$0xff]   ;;  %v5866_v6 = vld [vmem:[%s5850_s26 + $0x18] sm:$0xff]   ;;  %vm243_vm0 = vcmask 519168  }
  0x1f   : > { %v5237_v2 = vunpack.c.l.bf16 %v5856_v0  ;;  %v5238_v3 = vunpack.c.h.bf16 %v5856_v0  ;;  %v5229_v4 = vunpack.c.l.bf16 %v5859_v1  ;;  %v5230_v5 = vunpack.c.h.bf16 %v5859_v1  ;;  %v5869_v7 = vld [vmem:[%s5850_s26 + $0x8] sm:$0xff]   ;;  %v5872_v8 = vld [vmem:[%s5850_s26 + $0x20] sm:$0xff]   ;;  %v5906_v21 = vld [vmem:[%s5850_s26 + $0x38] sm:$0xff]  }
  0x20   : > { %v5241_v11 = vunpack.c.l.bf16 %v5866_v6  ;;  %v5242_v12 = vunpack.c.h.bf16 %v5866_v6  ;;  %v5233_v13 = vunpack.c.l.bf16 %v5869_v7  ;;  %v5234_v14 = vunpack.c.h.bf16 %v5869_v7  ;;  %v5891_v17 = vld [vmem:[%s5850_s26 + $0x28] sm:$0xff]   ;;  %v5912_v24 = vld [vmem:[%s5850_s26 + $0x30] sm:$0xff]   ;;  %v5925_v30 = vld [vmem:[%s5850_s26 + $0x40] sm:$0xff]  }
  0x21   : > { %v5488_v9 = vpack.i.bf16 %v5238_v3, %v5237_v2  ;;  %v5478_v10 = vpack.i.bf16 %v5230_v5, %v5229_v4  ;;  %v5245_v15 = vunpack.c.l.bf16 %v5872_v8  ;;  %v5246_v16 = vunpack.c.h.bf16 %v5872_v8  ;;  %v5936_v33 = vld [vmem:[%s5850_s26 + $0x50] sm:$0xff]   ;;  %v5942_v36 = vld [vmem:[%s5850_s26 + $0x48] sm:$0xff]   ;;  %v5955_v42 = vld [vmem:[%s5850_s26 + $0x58] sm:$0xff]  }
  0x22   : > { %v5493_v19 = vpack.i.bf16 %v5242_v12, %v5241_v11  ;;  %v5483_v20 = vpack.i.bf16 %v5234_v14, %v5233_v13  ;;  %v5249_v22 = vunpack.c.l.bf16 %v5891_v17  ;;  %v5250_v23 = vunpack.c.h.bf16 %v5891_v17  ;;  %v5966_v45 = vld [vmem:[%s5850_s26 + $0x68] sm:$0xff]   ;;  %v5972_v48 = vld [vmem:[%s5850_s26 + $0x60] sm:$0xff]   ;;  %v5985_v54 = vld [vmem:[%s5850_s26 + $0x70] sm:$0xff]  }
  0x23   : > { %5489 = vrot.lane.b32.xlu1 %v5488_v9, %s5736_s30  ;;  %5479 = vrot.lane.b32.xlu0 %v5478_v10, %s5736_s30  ;;  %v5498_v18 = vpack.i.bf16 %v5246_v16, %v5245_v15  ;;  %v5257_v25 = vunpack.c.l.bf16 %v5906_v21  ;;  %v5258_v26 = vunpack.c.h.bf16 %v5906_v21  ;;  %v5253_v27 = vunpack.c.l.bf16 %v5912_v24  ;;  %v5996_v57 = vld [vmem:[%s5850_s26 + $0x80] sm:$0xff]   ;;  %v6002_v60 = vld [vmem:[%s5850_s26 + $0x78] sm:$0xff]  }
  0x24   : > { %v5254_v28 = vunpack.c.h.bf16 %v5912_v24  ;;  %v5503_v29 = vpack.i.bf16 %v5250_v23, %v5249_v22  ;;  %v5261_v34 = vunpack.c.l.bf16 %v5925_v30  ;;  %v5262_v35 = vunpack.c.h.bf16 %v5925_v30 }
  0x25   : > { %5499 = vrot.lane.b32.xlu2 %v5498_v18, %s5736_s30  ;;  %v5513_v31 = vpack.i.bf16 %v5258_v26, %v5257_v25  ;;  %v8022_v37 = vunpack.c.l.bf16 %v5936_v33  ;;  %v8023_v38 = vunpack.c.h.bf16 %v5936_v33  ;;  %v8014_v39 = vunpack.c.l.bf16 %v5942_v36  ;;  %v6015_v18 = vld [vmem:[%s5850_s26 + $0x88] sm:$0xff]  }
  0x26   : > { %v5508_v32 = vpack.i.bf16 %v5254_v28, %v5253_v27  ;;  %v8017_v40 = vunpack.c.h.bf16 %v5942_v36  ;;  %v5518_v41 = vpack.i.bf16 %v5262_v35, %v5261_v34  ;;  %v8028_v46 = vunpack.c.l.bf16 %v5955_v42 }
  0x27   : > { %v5528_v43 = vpack.i.bf16 %v8023_v38, %v8022_v37  ;;  %v8031_v47 = vunpack.c.h.bf16 %v5955_v42  ;;  %v8008_v49 = vunpack.c.l.bf16 %v5966_v45  ;;  %v8013_v50 = vunpack.c.h.bf16 %v5966_v45 }
  0x28   : > { %v5523_v44 = vpack.i.bf16 %v8017_v40, %v8014_v39  ;;  %v8004_v51 = vunpack.c.l.bf16 %v5972_v48  ;;  %v8007_v52 = vunpack.c.h.bf16 %v5972_v48  ;;  %v7998_v58 = vunpack.c.l.bf16 %v5985_v54 }
  0x29   : > { %v5533_v53 = vpack.i.bf16 %v8031_v47, %v8028_v46  ;;  %v5543_v55 = vpack.i.bf16 %v8013_v50, %v8008_v49  ;;  %v7999_v59 = vunpack.c.h.bf16 %v5985_v54  ;;  %v7988_v61 = vunpack.c.l.bf16 %v5996_v57  ;;  %v6146_v50 = vld [vmem:[%s5850_s26 + $0xf8] sm:$0xff]  }
  0x2a   : > { %v5538_v56 = vpack.i.bf16 %v8007_v52, %v8004_v51  ;;  %v7989_v62 = vunpack.c.h.bf16 %v5996_v57  ;;  %v7986_v63 = vunpack.c.l.bf16 %v6002_v60  ;;  %v7987_v9 = vunpack.c.h.bf16 %v6002_v60  ;;  %v6116_v51 = vld [vmem:[%s5850_s26 + $0xe0] sm:$0xff]   ;;  %v6122_v52 = vld [vmem:[%s5850_s26 + $0xd8] sm:$0xff]  }
  0x2b   : > { %5494 = vrot.lane.b32.xlu1 %v5493_v19, %s5736_s30  ;;  %5484 = vrot.lane.b32.xlu0 %v5483_v20, %s5736_s30  ;;  %v5548_v10 = vpack.i.bf16 %v7999_v59, %v7998_v58  ;;  %v6092_v58 = vld [vmem:[%s5850_s26 + $0xc0] sm:$0xff]   ;;  %v8018_v49 = vunpack.c.l.bf16 %v6116_v51  ;;  %v8026_v40 = vunpack.c.l.bf16 %v6146_v50  ;;  %v8052_v30 = vunpack.c.h.bf16 %v5936_v33 }
  0x2c   : > { %v5558_v19 = vpack.i.bf16 %v7989_v62, %v7988_v61  ;;  %v5553_v20 = vpack.i.bf16 %v7987_v9, %v7986_v63  ;;  %v6056_v63 = vld [vmem:[%s5850_s26 + $0xb0] sm:$0xff]   ;;  %v6062_v62 = vld [vmem:[%s5850_s26 + $0xa8] sm:$0xff]  }
  0x2d   : > { %5504 = vrot.lane.b32.xlu2 %v5503_v29, %s5736_s30  ;;  %v6026_v29 = vld [vmem:[%s5850_s26 + $0x98] sm:$0xff]  }
  0x33   : > { %5514 = vrot.lane.b32.xlu1 %v5513_v31, %s5736_s30  ;;  %5509 = vrot.lane.b32.xlu0 %v5508_v32, %s5736_s30  ;;  %v7990_v31 = vunpack.c.l.bf16 %v6015_v18  ;;  %v7995_v32 = vunpack.c.h.bf16 %v6015_v18 }
  0x35   : > { %5519 = vrot.lane.b32.xlu2 %v5518_v41, %s5736_s30  ;;  %v6032_v41 = vld [vmem:[%s5850_s26 + $0x90] sm:$0xff]  }
  0x3b   : > { %5529 = vrot.lane.b32.xlu1 %v5528_v43, %s5736_s30  ;;  %5524 = vrot.lane.b32.xlu0 %v5523_v44, %s5736_s30  ;;  %v7993_v43 = vunpack.c.l.bf16 %v6026_v29  ;;  %v7994_v44 = vunpack.c.h.bf16 %v6026_v29 }
  0x3d   : > { %5534 = vrot.lane.b32.xlu2 %v5533_v53, %s5736_s30  ;;  %v7991_v53 = vunpack.c.l.bf16 %v6032_v41 }
  0x43   : > { %5544 = vrot.lane.b32.xlu1 %v5543_v55, %s5736_s30  ;;  %5539 = vrot.lane.b32.xlu0 %v5538_v56, %s5736_s30  ;;  %v7992_v55 = vunpack.c.h.bf16 %v6032_v41  ;;  %v5563_v56 = vpack.i.bf16 %v7995_v32, %v7990_v31  ;;  %v8002_v31 = vunpack.c.l.bf16 %v6056_v63  ;;  %v6086_v32 = vld [vmem:[%s5850_s26 + $0xc8] sm:$0xff]  }
  0x44   : > { %v8011_v59 = vunpack.c.l.bf16 %v6086_v32 }
  0x45   : > { %5549 = vrot.lane.b32.xlu2 %v5548_v10, %s5736_s30  ;;  %v6045_v10 = vld [vmem:[%s5850_s26 + $0xa0] sm:$0xff]  }
  0x46   : > { %v7996_v9 = vunpack.c.l.bf16 %v6045_v10  ;;  %v7997_v61 = vunpack.c.h.bf16 %v6045_v10 }
  0x4b   : > { %5559 = vrot.lane.b32.xlu1 %v5558_v19, %s5736_s30  ;;  %5554 = vrot.lane.b32.xlu0 %v5553_v20, %s5736_s30  ;;  %v5573_v19 = vpack.i.bf16 %v7994_v44, %v7993_v43  ;;  %v5568_v20 = vpack.i.bf16 %v7992_v55, %v7991_v53  ;;  %v8003_v53 = vunpack.c.h.bf16 %v6056_v63  ;;  %v8000_v55 = vunpack.c.l.bf16 %v6062_v62  ;;  %v6075_v44 = vld [vmem:[%s5850_s26 + $0xb8] sm:$0xff]  }
  0x4c   : > { %v8001_v43 = vunpack.c.h.bf16 %v6062_v62 }
  0x4d   : > { %5564 = vrot.lane.b32.xlu2 %v5563_v56, %s5736_s30  ;;  %v5578_v56 = vpack.i.bf16 %v7997_v61, %v7996_v9  ;;  %v8005_v9 = vunpack.c.l.bf16 %v6075_v44  ;;  %v8006_v61 = vunpack.c.h.bf16 %v6075_v44 }
  0x53   : > { %5574 = vrot.lane.b32.xlu1 %v5573_v19, %s5736_s30  ;;  %5569 = vrot.lane.b32.xlu0 %v5568_v20, %s5736_s30  ;;  %v5588_v19 = vpack.i.bf16 %v8003_v53, %v8002_v31  ;;  %v5583_v20 = vpack.i.bf16 %v8001_v43, %v8000_v55  ;;  %v8012_v55 = vunpack.c.h.bf16 %v6086_v32  ;;  %v8009_v43 = vunpack.c.l.bf16 %v6092_v58  ;;  %v6105_v53 = vld [vmem:[%s5850_s26 + $0xd0] sm:$0xff]  }
  0x54   : > { %v8010_v31 = vunpack.c.h.bf16 %v6092_v58 }
  0x55   : > { %5579 = vrot.lane.b32.xlu2 %v5578_v56, %s5736_s30  ;;  %v5593_v56 = vpack.i.bf16 %v8006_v61, %v8005_v9  ;;  %v8015_v9 = vunpack.c.l.bf16 %v6105_v53  ;;  %v8016_v61 = vunpack.c.h.bf16 %v6105_v53 }
  0x5b   : > { %5589 = vrot.lane.b32.xlu1 %v5588_v19, %s5736_s30  ;;  %5584 = vrot.lane.b32.xlu0 %v5583_v20, %s5736_s30  ;;  %v5603_v19 = vpack.i.bf16 %v8012_v55, %v8011_v59  ;;  %v5598_v20 = vpack.i.bf16 %v8010_v31, %v8009_v43  ;;  %v8021_v43 = vunpack.c.h.bf16 %v6116_v51  ;;  %v8019_v31 = vunpack.c.l.bf16 %v6122_v52  ;;  %v6135_v55 = vld [vmem:[%s5850_s26 + $0xe8] sm:$0xff]  }
  0x5c   : > { %v8020_v59 = vunpack.c.h.bf16 %v6122_v52  ;;  %v8024_v39 = vunpack.c.l.bf16 %v6135_v55 }
  0x5d   : > { %5594 = vrot.lane.b32.xlu2 %v5593_v56, %s5736_s30  ;;  %v5608_v56 = vpack.i.bf16 %v8016_v61, %v8015_v9  ;;  %v8025_v9 = vunpack.c.h.bf16 %v6135_v55  ;;  %v6152_v61 = vld [vmem:[%s5850_s26 + $0xf0] sm:$0xff]  }
  0x63   : > { %5604 = vrot.lane.b32.xlu1 %v5603_v19, %s5736_s30  ;;  %5599 = vrot.lane.b32.xlu0 %v5598_v20, %s5736_s30  ;;  %v5618_v19 = vpack.i.bf16 %v8021_v43, %v8018_v49  ;;  %v5613_v20 = vpack.i.bf16 %v8020_v59, %v8019_v31  ;;  %v8027_v49 = vunpack.c.h.bf16 %v6146_v50  ;;  %v8029_v31 = vunpack.c.l.bf16 %v6152_v61 }
  0x64   : > { %v8030_v59 = vunpack.c.h.bf16 %v6152_v61 }
  0x65   : > { %5609 = vrot.lane.b32.xlu2 %v5608_v56, %s5736_s30  ;;  %v5623_v56 = vpack.i.bf16 %v8025_v9, %v8024_v39  ;;  %v5633_v43 = vpack.i.bf16 %v8027_v49, %v8026_v40 }
  0x6b   : > { %5619 = vrot.lane.b32.xlu1 %v5618_v19, %s5736_s30  ;;  %5614 = vrot.lane.b32.xlu0 %v5613_v20, %s5736_s30  ;;  %v5628_v19 = vpack.i.bf16 %v8030_v59, %v8029_v31 }
  0x6d   : > { %5624 = vrot.lane.b32.xlu2 %v5623_v56, %s5736_s30 }
  0x73   : > { %5634 = vrot.lane.b32.xlu1 %v5633_v43, %s5736_s30  ;;  %5629 = vrot.lane.b32.xlu0 %v5628_v19, %s5736_s30 }
  0x7f   : > { %v5500_v20 = vpop.permute.xlu2 %5499 }
  0x80   : > { %v5502_v37 = vunpack.i.h.bf16 %v5500_v20  ;;  %v5501_v38 = vunpack.i.l.bf16 %v5500_v20 }
  0x82   : > { %v646_v9 = vmax.f32 %v5246_v16, %v5502_v37  ;;  %v645_v40 = vmax.f32 %v5245_v15, %v5501_v38 }
  0x87   : > { %v5505_v39 = vpop.permute.xlu2 %5504 }
  0x88   : > { %v5507_v49 = vunpack.i.h.bf16 %v5505_v39  ;;  %v5506_v46 = vunpack.i.l.bf16 %v5505_v39 }
  0x8a   : > { %v648_v31 = vmax.f32 %v5250_v23, %v5507_v49  ;;  %v647_v43 = vmax.f32 %v5249_v22, %v5506_v46 }
  0x8c   : > { %v833_v56 = vmax.f32 %v645_v40, %v647_v43  ;;  %v834_v19 = vmax.f32 %v646_v9, %v648_v31 }
  0x8e   : > { %v865_v59 = vpack.c.bf16 %v833_v56, %v833_v56  ;;  %v866_v20 = vpack.c.bf16 %v834_v19, %v834_v19 }
  0x8f   : > { %v5520_v47 = vpop.permute.xlu2 %5519 }
  0x90   : > { %898 = vst.msk [vmem:[#allocation2 + $0x20] sm:$0xf] %vm243_vm0, %v865_v59 }
  0x91   : > { %899 = vst.msk [vmem:[#allocation2 + $0x24] sm:$0xf] %vm243_vm0, %v866_v20 }
  0x95   : > { %v5490_v8 = vpop.permute.xlu1 %5489  ;;  %v5480_v15 = vpop.permute.xlu0 %5479 }
  0x96   : > { %v5492_v37 = vunpack.i.h.bf16 %v5490_v8  ;;  %v5491_v38 = vunpack.i.l.bf16 %v5490_v8  ;;  %v5482_v39 = vunpack.i.h.bf16 %v5480_v15  ;;  %v5481_v23 = vunpack.i.l.bf16 %v5480_v15 }
  0x97   : > { %v5535_v16 = vpop.permute.xlu2 %5534 }
  0x98   : > { %v642_v31 = vmax.f32 %v5238_v3, %v5492_v37  ;;  %v641_v59 = vmax.f32 %v5237_v2, %v5491_v38  ;;  %v638_v43 = vmax.f32 %v5230_v5, %v5482_v39  ;;  %v637_v56 = vmax.f32 %v5229_v4, %v5481_v23 }
  0x9d   : > { %v5495_v49 = vpop.permute.xlu1 %5494  ;;  %v5485_v17 = vpop.permute.xlu0 %5484 }
  0x9e   : > { %v5497_v22 = vunpack.i.h.bf16 %v5495_v49  ;;  %v5496_v40 = vunpack.i.l.bf16 %v5495_v49  ;;  %v5487_v46 = vunpack.i.h.bf16 %v5485_v17  ;;  %v5486_v9 = vunpack.i.l.bf16 %v5485_v17 }
  0x9f   : > { %v6201_v4 = vpop.permute.xlu2 %5549 }
  0xa0   : > { %v644_v19 = vmax.f32 %v5242_v12, %v5497_v22  ;;  %v643_v20 = vmax.f32 %v5241_v11, %v5496_v40  ;;  %v640_v8 = vmax.f32 %v5234_v14, %v5487_v46  ;;  %v639_v3 = vmax.f32 %v5233_v13, %v5486_v9 }
  0xa1   : > { %v5522_v40 = vunpack.i.h.bf16 %v5520_v47  ;;  %v5521_v46 = vunpack.i.l.bf16 %v5520_v47  ;;  %v5537_v9 = vunpack.i.h.bf16 %v5535_v16 }
  0xa2   : > { %v831_v0 = vmax.f32 %v641_v59, %v643_v20  ;;  %v832_v2 = vmax.f32 %v642_v31, %v644_v19  ;;  %v829_v15 = vmax.f32 %v637_v56, %v639_v3  ;;  %v830_v37 = vmax.f32 %v638_v43, %v640_v8 }
  0xa3   : > { %v5536_v31 = vunpack.i.l.bf16 %v5535_v16  ;;  %v654_v21 = vmax.f32 %v5262_v35, %v5522_v40  ;;  %v8053_v35 = vunpack.c.l.bf16 %v5936_v33 }
  0xa4   : > { %v863_v5 = vpack.c.bf16 %v831_v0, %v831_v0  ;;  %v864_v38 = vpack.c.bf16 %v832_v2, %v832_v2  ;;  %v861_v1 = vpack.c.bf16 %v829_v15, %v829_v15  ;;  %v862_v39 = vpack.c.bf16 %v830_v37, %v830_v37 }
  0xa5   : > { %v5515_v12 = vpop.permute.xlu1 %5514  ;;  %v5510_v23 = vpop.permute.xlu0 %5509 }
  0xa6   : > { %896 = vst.msk [vmem:[#allocation2 + $0x18] sm:$0xf] %vm243_vm0, %v863_v5  ;;  %v5517_v6 = vunpack.i.h.bf16 %v5515_v12  ;;  %v5516_v11 = vunpack.i.l.bf16 %v5515_v12  ;;  %v5512_v14 = vunpack.i.h.bf16 %v5510_v23  ;;  %v5511_v49 = vunpack.i.l.bf16 %v5510_v23 }
  0xa7   : > { %897 = vst.msk [vmem:[#allocation2 + $0x1c] sm:$0xf] %vm243_vm0, %v864_v38  ;;  %v5565_v2 = vpop.permute.xlu2 %5564  ;;  %v8055_v5 = vunpack.c.l.bf16 %v5942_v36 }
  0xa8   : > { %894 = vst.msk [vmem:[#allocation2 + $0x10] sm:$0xf] %vm243_vm0, %v861_v1  ;;  %v652_v7 = vmax.f32 %v5258_v26, %v5517_v6  ;;  %v651_v13 = vmax.f32 %v5257_v25, %v5516_v11  ;;  %v650_v17 = vmax.f32 %v5254_v28, %v5512_v14  ;;  %v649_v22 = vmax.f32 %v5253_v27, %v5511_v49 }
  0xa9   : > { %895 = vst.msk [vmem:[#allocation2 + $0x14] sm:$0xf] %vm243_vm0, %v862_v39  ;;  %v653_v25 = vmax.f32 %v5261_v34, %v5521_v46  ;;  %v8050_v26 = vunpack.c.h.bf16 %v5955_v42  ;;  %v8051_v27 = vunpack.c.l.bf16 %v5955_v42  ;;  %v8054_v42 = vunpack.c.h.bf16 %v5942_v36 }
  0xaa   : > { %v836_v59 = vmax.f32 %v650_v17, %v652_v7  ;;  %v835_v43 = vmax.f32 %v649_v22, %v651_v13  ;;  %v8056_v36 = vunpack.c.h.bf16 %v5966_v45 }
  0xab   : > { %v660_v24 = vmax.f32 %v8050_v26, %v5537_v9  ;;  %v659_v28 = vmax.f32 %v8051_v27, %v5536_v31  ;;  %v8057_v9 = vunpack.c.l.bf16 %v5966_v45  ;;  %v5551_v26 = vunpack.i.l.bf16 %v6201_v4 }
  0xac   : > { %v868_v56 = vpack.c.bf16 %v836_v59, %v836_v59  ;;  %v867_v19 = vpack.c.bf16 %v835_v43, %v835_v43  ;;  %v8058_v59 = vunpack.c.h.bf16 %v5972_v48  ;;  %v5566_v27 = vunpack.i.l.bf16 %v5565_v2 }
  0xad   : > { %v5530_v20 = vpop.permute.xlu1 %5529  ;;  %v5525_v47 = vpop.permute.xlu0 %5524 }
  0xae   : > { %900 = vst.msk [vmem:[#allocation2 + $0x28] sm:$0xf] %vm243_vm0, %v867_v19  ;;  %v5532_v16 = vunpack.i.h.bf16 %v5530_v20  ;;  %v5531_v8 = vunpack.i.l.bf16 %v5530_v20  ;;  %v5527_v3 = vunpack.i.h.bf16 %v5525_v47  ;;  %v5526_v0 = vunpack.i.l.bf16 %v5525_v47 }
  0xaf   : > { %901 = vst.msk [vmem:[#allocation2 + $0x2c] sm:$0xf] %vm243_vm0, %v868_v56  ;;  %v8059_v56 = vunpack.c.l.bf16 %v5972_v48 }
  0xb0   : > { %v658_v34 = vmax.f32 %v8052_v30, %v5532_v16  ;;  %v657_v15 = vmax.f32 %v8053_v35, %v5531_v8  ;;  %v656_v37 = vmax.f32 %v8054_v42, %v5527_v3  ;;  %v655_v38 = vmax.f32 %v8055_v5, %v5526_v0 }
  0xb1   : > { %v8060_v16 = vunpack.c.h.bf16 %v5985_v54  ;;  %v8061_v3 = vunpack.c.l.bf16 %v5985_v54  ;;  %v8062_v0 = vunpack.c.h.bf16 %v6015_v18 }
  0xb2   : > { %v840_v1 = vmax.f32 %v658_v34, %v660_v24  ;;  %v839_v39 = vmax.f32 %v657_v15, %v659_v28  ;;  %v838_v12 = vmax.f32 %v654_v21, %v656_v37  ;;  %v837_v23 = vmax.f32 %v653_v25, %v655_v38  ;;  %v5580_v21 = vpop.permute.xlu2 %5579 }
  0xb3   : > { %v5552_v25 = vunpack.i.h.bf16 %v6201_v4  ;;  %v5567_v24 = vunpack.i.h.bf16 %v5565_v2  ;;  %v665_v48 = vmax.f32 %v8061_v3, %v5551_v26  ;;  %v8063_v34 = vunpack.c.l.bf16 %v6015_v18 }
  0xb4   : > { %v872_v6 = vpack.c.bf16 %v840_v1, %v840_v1  ;;  %v871_v11 = vpack.c.bf16 %v839_v39, %v839_v39  ;;  %v869_v14 = vpack.c.bf16 %v837_v23, %v837_v23  ;;  %v870_v49 = vpack.c.bf16 %v838_v12, %v838_v12 }
  0xb5   : > { %v5545_v7 = vpop.permute.xlu1 %5544  ;;  %v5540_v13 = vpop.permute.xlu0 %5539  ;;  %v666_v8 = vmax.f32 %v8060_v16, %v5552_v25  ;;  %v672_v30 = vmax.f32 %v8062_v0, %v5567_v24  ;;  %v671_v35 = vmax.f32 %v8063_v34, %v5566_v27  ;;  %v8064_v38 = vunpack.c.h.bf16 %v5996_v57 }
  0xb6   : > { %904 = vst.msk [vmem:[#allocation2 + $0x38] sm:$0xf] %vm243_vm0, %v871_v11  ;;  %v5547_v33 = vunpack.i.h.bf16 %v5545_v7  ;;  %v5546_v17 = vunpack.i.l.bf16 %v5545_v7  ;;  %v5542_v22 = vunpack.i.h.bf16 %v5540_v13  ;;  %v5541_v40 = vunpack.i.l.bf16 %v5540_v13 }
  0xb7   : > { %905 = vst.msk [vmem:[#allocation2 + $0x3c] sm:$0xf] %vm243_vm0, %v872_v6  ;;  %v8065_v1 = vunpack.c.l.bf16 %v5996_v57  ;;  %v8066_v12 = vunpack.c.h.bf16 %v6002_v60  ;;  %v8067_v23 = vunpack.c.l.bf16 %v6002_v60  ;;  %v8068_v60 = vunpack.c.h.bf16 %v6026_v29 }
  0xb8   : > { %902 = vst.msk [vmem:[#allocation2 + $0x30] sm:$0xf] %vm243_vm0, %v869_v14  ;;  %v664_v46 = vmax.f32 %v8056_v36, %v5547_v33  ;;  %v663_v31 = vmax.f32 %v8057_v9, %v5546_v17  ;;  %v662_v43 = vmax.f32 %v8058_v59, %v5542_v22  ;;  %v661_v19 = vmax.f32 %v8059_v56, %v5541_v40 }
  0xb9   : > { %903 = vst.msk [vmem:[#allocation2 + $0x34] sm:$0xf] %vm243_vm0, %v870_v49  ;;  %v8069_v56 = vunpack.c.l.bf16 %v6026_v29  ;;  %v8070_v25 = vunpack.c.h.bf16 %v6032_v41  ;;  %v8071_v24 = vunpack.c.l.bf16 %v6032_v41  ;;  %v8072_v29 = vunpack.c.h.bf16 %v6045_v10 }
  0xba   : > { %v842_v28 = vmax.f32 %v662_v43, %v664_v46  ;;  %v841_v20 = vmax.f32 %v661_v19, %v663_v31  ;;  %v5595_v13 = vpop.permute.xlu2 %5594  ;;  %v8073_v34 = vunpack.c.l.bf16 %v6045_v10  ;;  %v8074_v41 = vunpack.c.h.bf16 %v6075_v44 }
  0xbc   : > { %v874_v47 = vpack.c.bf16 %v842_v28, %v842_v28  ;;  %v873_v45 = vpack.c.bf16 %v841_v20, %v841_v20  ;;  %v5582_v28 = vunpack.i.h.bf16 %v5580_v21  ;;  %v5581_v20 = vunpack.i.l.bf16 %v5580_v21 }
  0xbd   : > { %v5560_v15 = vpop.permute.xlu1 %5559  ;;  %v5555_v4 = vpop.permute.xlu0 %5554 }
  0xbe   : > { %906 = vst.msk [vmem:[#allocation2 + $0x40] sm:$0xf] %vm243_vm0, %v873_v45  ;;  %v5562_v2 = vunpack.i.h.bf16 %v5560_v15  ;;  %v5561_v42 = vunpack.i.l.bf16 %v5560_v15  ;;  %v5557_v37 = vunpack.i.h.bf16 %v5555_v4  ;;  %v5556_v5 = vunpack.i.l.bf16 %v5555_v4 }
  0xbf   : > { %907 = vst.msk [vmem:[#allocation2 + $0x44] sm:$0xf] %vm243_vm0, %v874_v47  ;;  %v5597_v47 = vunpack.i.h.bf16 %v5595_v13  ;;  %v5596_v45 = vunpack.i.l.bf16 %v5595_v13  ;;  %v8075_v4 = vunpack.c.l.bf16 %v6075_v44 }
  0xc0   : > { %v670_v54 = vmax.f32 %v8064_v38, %v5562_v2  ;;  %v669_v39 = vmax.f32 %v8065_v1, %v5561_v42  ;;  %v668_v18 = vmax.f32 %v8066_v12, %v5557_v37  ;;  %v667_v6 = vmax.f32 %v8067_v23, %v5556_v5 }
  0xc1   : > { %v684_v15 = vmax.f32 %v8074_v41, %v5597_v47  ;;  %v683_v2 = vmax.f32 %v8075_v4, %v5596_v45  ;;  %v8076_v1 = vunpack.c.h.bf16 %v6056_v63  ;;  %v8079_v23 = vunpack.c.l.bf16 %v6062_v62 }
  0xc2   : > { %v846_v11 = vmax.f32 %v670_v54, %v672_v30  ;;  %v845_v14 = vmax.f32 %v669_v39, %v671_v35  ;;  %v844_v49 = vmax.f32 %v666_v8, %v668_v18  ;;  %v843_v7 = vmax.f32 %v665_v48, %v667_v6  ;;  %v5610_v0 = vpop.permute.xlu2 %5609 }
  0xc3   : > { %v678_v30 = vmax.f32 %v8072_v29, %v5582_v28  ;;  %v677_v35 = vmax.f32 %v8073_v34, %v5581_v20  ;;  %v8077_v39 = vunpack.c.l.bf16 %v6056_v63  ;;  %v8078_v18 = vunpack.c.h.bf16 %v6062_v62 }
  0xc4   : > { %v878_v33 = vpack.c.bf16 %v846_v11, %v846_v11  ;;  %v877_v17 = vpack.c.bf16 %v845_v14, %v845_v14  ;;  %v875_v22 = vpack.c.bf16 %v843_v7, %v843_v7  ;;  %v876_v40 = vpack.c.bf16 %v844_v49, %v844_v49 }
  0xc5   : > { %v5575_v36 = vpop.permute.xlu1 %5574  ;;  %v5570_v46 = vpop.permute.xlu0 %5569  ;;  %v5737_v11 = vmov 0   ;;  %v5611_v28 = vunpack.i.l.bf16 %v5610_v0 }
  0xc6   : > { %910 = vst.msk [vmem:[#allocation2 + $0x50] sm:$0xf] %vm243_vm0, %v877_v17  ;;  %v5577_v57 = vunpack.i.h.bf16 %v5575_v36  ;;  %v5576_v9 = vunpack.i.l.bf16 %v5575_v36  ;;  %v5572_v31 = vunpack.i.h.bf16 %v5570_v46  ;;  %v5571_v59 = vunpack.i.l.bf16 %v5570_v46 }
  0xc7   : > { %911 = vst.msk [vmem:[#allocation2 + $0x54] sm:$0xf] %vm243_vm0, %v878_v33 }
  0xc8   : > { %908 = vst.msk [vmem:[#allocation2 + $0x48] sm:$0xf] %vm243_vm0, %v875_v22  ;;  %v676_v43 = vmax.f32 %v8068_v60, %v5577_v57  ;;  %v675_v19 = vmax.f32 %v8069_v56, %v5576_v9  ;;  %v674_v26 = vmax.f32 %v8070_v25, %v5572_v31  ;;  %v673_v27 = vmax.f32 %v8071_v24, %v5571_v59 }
  0xc9   : > { %909 = vst.msk [vmem:[#allocation2 + $0x4c] sm:$0xf] %vm243_vm0, %v876_v40  ;;  %v8080_v59 = vunpack.c.h.bf16 %v6086_v32 }
  0xca   : > { %v848_v16 = vmax.f32 %v674_v26, %v676_v43  ;;  %v847_v8 = vmax.f32 %v673_v27, %v675_v19  ;;  %244 = vst.msk [vmem:[#allocation2] sm:$0xf] %vm243_vm0, %v5737_v11  ;;  %v5625_v31 = vpop.permute.xlu2 %5624  ;;  %v8081_v43 = vunpack.c.l.bf16 %v6086_v32  ;;  %v8082_v19 = vunpack.c.h.bf16 %v6092_v58 }
  0xcb   : > { %245 = vst.msk [vmem:[#allocation2 + $0x4] sm:$0xf] %vm243_vm0, %v5737_v11  ;;  %v8083_v26 = vunpack.c.l.bf16 %v6092_v58  ;;  %v5612_v27 = vunpack.i.h.bf16 %v5610_v0  ;;  %v5627_v20 = vunpack.i.h.bf16 %v5625_v31  ;;  %v5626_v47 = vunpack.i.l.bf16 %v5625_v31 }
  0xcc   : > { %v880_v3 = vpack.c.bf16 %v848_v16, %v848_v16  ;;  %v879_v48 = vpack.c.bf16 %v847_v8, %v847_v8  ;;  %246 = vst.msk [vmem:[#allocation2 + $0x8] sm:$0xf] %vm243_vm0, %v5737_v11  ;;  %v8085_v58 = vunpack.c.l.bf16 %v6105_v53  ;;  %v8087_v0 = vunpack.c.l.bf16 %v6135_v55 }
  0xcd   : > { %v5590_v21 = vpop.permute.xlu1 %5589  ;;  %v5585_v42 = vpop.permute.xlu0 %5584  ;;  %247 = vst.msk [vmem:[#allocation2 + $0xc] sm:$0xf] %vm243_vm0, %v5737_v11 }
  0xce   : > { %912 = vst.msk [vmem:[#allocation2 + $0x58] sm:$0xf] %vm243_vm0, %v879_v48  ;;  %v5592_v37 = vunpack.i.h.bf16 %v5590_v21  ;;  %v5591_v5 = vunpack.i.l.bf16 %v5590_v21  ;;  %v5587_v38 = vunpack.i.h.bf16 %v5585_v42  ;;  %v5586_v54 = vunpack.i.l.bf16 %v5585_v42 }
  0xcf   : > { %913 = vst.msk [vmem:[#allocation2 + $0x5c] sm:$0xf] %vm243_vm0, %v880_v3  ;;  %v8084_v3 = vunpack.c.h.bf16 %v6105_v53  ;;  %v689_v29 = vmax.f32 %v8085_v58, %v5611_v28 }
  0xd0   : > { %v682_v10 = vmax.f32 %v8076_v1, %v5592_v37  ;;  %v681_v12 = vmax.f32 %v8077_v39, %v5591_v5  ;;  %v680_v44 = vmax.f32 %v8078_v18, %v5587_v38  ;;  %v679_v6 = vmax.f32 %v8079_v23, %v5586_v54  ;;  %249 = vst.msk [vmem:[#allocation2 + $0x90] sm:$0xf] %vm243_vm0, %v5737_v11 }
  0xd1   : > { %250 = vst.msk [vmem:[#allocation2 + $0x94] sm:$0xf] %vm243_vm0, %v5737_v11  ;;  %v690_v48 = vmax.f32 %v8084_v3, %v5612_v27  ;;  %v8088_v37 = vunpack.c.h.bf16 %v6116_v51  ;;  %v8089_v5 = vunpack.c.l.bf16 %v6116_v51  ;;  %v8090_v54 = vunpack.c.h.bf16 %v6122_v52 }
  0xd2   : > { %v852_v14 = vmax.f32 %v682_v10, %v684_v15  ;;  %v851_v49 = vmax.f32 %v681_v12, %v683_v2  ;;  %v850_v7 = vmax.f32 %v678_v30, %v680_v44  ;;  %v849_v13 = vmax.f32 %v677_v35, %v679_v6  ;;  %251 = vst.msk [vmem:[#allocation2 + $0x98] sm:$0xf] %vm243_vm0, %v5737_v11 }
  0xd3   : > { %252 = vst.msk [vmem:[#allocation2 + $0x9c] sm:$0xf] %vm243_vm0, %v5737_v11  ;;  %v8086_v30 = vunpack.c.h.bf16 %v6135_v55  ;;  %v695_v35 = vmax.f32 %v8087_v0, %v5626_v47  ;;  %v8091_v1 = vunpack.c.l.bf16 %v6122_v52  ;;  %v8092_v52 = vunpack.c.h.bf16 %v6146_v50 }
  0xd4   : > { %v884_v63 = vpack.c.bf16 %v852_v14, %v852_v14  ;;  %v883_v33 = vpack.c.bf16 %v851_v49, %v851_v49  ;;  %v881_v17 = vpack.c.bf16 %v849_v13, %v849_v13  ;;  %v882_v62 = vpack.c.bf16 %v850_v7, %v850_v7 }
  0xd5   : > { %v5605_v22 = vpop.permute.xlu1 %5604  ;;  %v5600_v40 = vpop.permute.xlu0 %5599  ;;  %v696_v34 = vmax.f32 %v8086_v30, %v5627_v20 }
  0xd6   : > { %916 = vst.msk [vmem:[#allocation2 + $0x68] sm:$0xf] %vm243_vm0, %v883_v33  ;;  %v5607_v36 = vunpack.i.h.bf16 %v5605_v22  ;;  %v5606_v46 = vunpack.i.l.bf16 %v5605_v22  ;;  %v5602_v57 = vunpack.i.h.bf16 %v5600_v40  ;;  %v5601_v9 = vunpack.i.l.bf16 %v5600_v40 }
  0xd7   : > { %917 = vst.msk [vmem:[#allocation2 + $0x6c] sm:$0xf] %vm243_vm0, %v884_v63  ;;  %v8094_v40 = vunpack.c.h.bf16 %v6152_v61 }
  0xd8   : > { %914 = vst.msk [vmem:[#allocation2 + $0x60] sm:$0xf] %vm243_vm0, %v881_v17  ;;  %v688_v60 = vmax.f32 %v8080_v59, %v5607_v36  ;;  %v687_v56 = vmax.f32 %v8081_v43, %v5606_v46  ;;  %v686_v25 = vmax.f32 %v8082_v19, %v5602_v57  ;;  %v685_v24 = vmax.f32 %v8083_v26, %v5601_v9 }
  0xd9   : > { %915 = vst.msk [vmem:[#allocation2 + $0x64] sm:$0xf] %vm243_vm0, %v882_v62  ;;  %v8093_v62 = vunpack.c.l.bf16 %v6146_v50  ;;  %v8095_v46 = vunpack.c.l.bf16 %v6152_v61 }
  0xda   : > { %v854_v45 = vmax.f32 %v686_v25, %v688_v60  ;;  %v853_v16 = vmax.f32 %v685_v24, %v687_v56 }
  0xdc   : > { %v886_v32 = vpack.c.bf16 %v854_v45, %v854_v45  ;;  %v885_v8 = vpack.c.bf16 %v853_v16, %v853_v16 }
  0xdd   : > { %v5620_v41 = vpop.permute.xlu1 %5619  ;;  %v5615_v15 = vpop.permute.xlu0 %5614 }
  0xde   : > { %918 = vst.msk [vmem:[#allocation2 + $0x70] sm:$0xf] %vm243_vm0, %v885_v8  ;;  %v5622_v4 = vunpack.i.h.bf16 %v5620_v41  ;;  %v5621_v2 = vunpack.i.l.bf16 %v5620_v41  ;;  %v5617_v21 = vunpack.i.h.bf16 %v5615_v15  ;;  %v5616_v42 = vunpack.i.l.bf16 %v5615_v15 }
  0xdf   : > { %919 = vst.msk [vmem:[#allocation2 + $0x74] sm:$0xf] %vm243_vm0, %v886_v32 }
  0xe0   : > { %v694_v53 = vmax.f32 %v8088_v37, %v5622_v4  ;;  %v693_v38 = vmax.f32 %v8089_v5, %v5621_v2  ;;  %v692_v55 = vmax.f32 %v8090_v54, %v5617_v21  ;;  %v691_v10 = vmax.f32 %v8091_v1, %v5616_v42 }
  0xe2   : > { %v858_v39 = vmax.f32 %v694_v53, %v696_v34  ;;  %v857_v12 = vmax.f32 %v693_v38, %v695_v35  ;;  %v856_v18 = vmax.f32 %v690_v48, %v692_v55  ;;  %v855_v44 = vmax.f32 %v689_v29, %v691_v10 }
  0xe4   : > { %v890_v23 = vpack.c.bf16 %v858_v39, %v858_v39  ;;  %v889_v6 = vpack.c.bf16 %v857_v12, %v857_v12  ;;  %v887_v11 = vpack.c.bf16 %v855_v44, %v855_v44  ;;  %v888_v14 = vpack.c.bf16 %v856_v18, %v856_v18 }
  0xe5   : > { %v5635_v49 = vpop.permute.xlu1 %5634  ;;  %v5630_v7 = vpop.permute.xlu0 %5629 }
  0xe6   : > { %922 = vst.msk [vmem:[#allocation2 + $0x80] sm:$0xf] %vm243_vm0, %v889_v6  ;;  %v5637_v51 = vunpack.i.h.bf16 %v5635_v49  ;;  %v5636_v13 = vunpack.i.l.bf16 %v5635_v49  ;;  %v5632_v63 = vunpack.i.h.bf16 %v5630_v7  ;;  %v5631_v33 = vunpack.i.l.bf16 %v5630_v7 }
  0xe7   : > { %923 = vst.msk [vmem:[#allocation2 + $0x84] sm:$0xf] %vm243_vm0, %v890_v23 }
  0xe8   : > { %920 = vst.msk [vmem:[#allocation2 + $0x78] sm:$0xf] %vm243_vm0, %v887_v11  ;;  %v700_v17 = vmax.f32 %v8092_v52, %v5637_v51  ;;  %v699_v22 = vmax.f32 %v8093_v62, %v5636_v13  ;;  %v698_v36 = vmax.f32 %v8094_v40, %v5632_v63  ;;  %v697_v57 = vmax.f32 %v8095_v46, %v5631_v33 }
  0xe9   : > { %921 = vst.msk [vmem:[#allocation2 + $0x7c] sm:$0xf] %vm243_vm0, %v888_v14 }
  0xea   : > { %v860_v9 = vmax.f32 %v698_v36, %v700_v17  ;;  %v859_v31 = vmax.f32 %v697_v57, %v699_v22 }
  0xec   : > { %v892_v59 = vpack.c.bf16 %v860_v9, %v860_v9  ;;  %v891_v60 = vpack.c.bf16 %v859_v31, %v859_v31 }
  0xee   : > { %924 = vst.msk [vmem:[#allocation2 + $0x88] sm:$0xf] %vm243_vm0, %v891_v60 }
  0xef   : > { %925 = vst.msk [vmem:[#allocation2 + $0x8c] sm:$0xf] %vm243_vm0, %v892_v59 }
  0xf0 PF: > { %s5086_s8 = sshll.u32 %s5718_s21, 6  ;;  %vm1090_vm1 = vcmask 1040384   ;;  %vm1091_vm2 = vsmask.f32 256  ;;  %vm1481_vm3 = vsmask.f32 7424 }
  0xf1   : > { %s6348_s9 = scalar_lea.vmem [#allocation2], %s5086_s8  ;;  %vm6360_vm4 = vmand %vm1090_vm1, %vm1091_vm2  ;;  %s5738_s10 = smov 64   ;;  %vm1642_vm5 = vcmask 1046528   ;;  %vm2073_vm6 = vcmask 523264  }
  0xf2   : > { %s4468_s17 = sshll.u32 %s5718_s21, 3  ;;  %s5079_s30 = sshll.u32 %s5718_s21, 4 }
  0xf3   : > { %s5080_s8 = sshll.u32 %s5722_s22, 5  ;;  %s4370_s14 = sshll.u32 %s5852_s27, 4  ;;  %s4371_s14 = int_to_ptr.vmem [resolvable:$true] %s4370_s14 }
  0xf4   : > { %s4356_s16 = scalar_lea.sflag [#allocation4], %s229_s12 }
  0xf6   : > { %v5091_v50 = vld [vmem:[%s6348_s9 + $0x20] sm:$0xff]  ;;  %v5089_v61 = vld [vmem:[%s6348_s9 + $0x10] sm:$0xff]  ;;  %v5092_v56 = vld [vmem:[%s6348_s9 + $0x28] sm:$0xff] }
  0xf7   : > { %v5087_v43 = vld [vmem:[%s6348_s9] sm:$0xff]  ;;  %v5090_v19 = vld [vmem:[%s6348_s9 + $0x18] sm:$0xff]  ;;  %v1029_v26 = vshrl.u32 %v5091_v50, 16  ;;  %v1032_v24 = vshll.u32 %v5091_v50, 16  ;;  %v1015_v27 = vshrl.u32 %v5089_v61, 16  ;;  %v1018_v28 = vshll.u32 %v5089_v61, 16 }
  0xf8   : > { %v6356_v25 = vld [vmem:[%s6348_s9 + $0x40] sm:$0xff]  ;;  %v1001_v20 = vshrl.u32 %v5087_v43, 16  ;;  %v1004_v47 = vshll.u32 %v5087_v43, 16  ;;  %v1036_v45 = vshrl.u32 %v5092_v56, 16  ;;  %v1039_v16 = vshll.u32 %v5092_v56, 16  ;;  %v5094_v6 = vld [vmem:[%s6348_s9 + $0x38] sm:$0xff] }
  0xf9   : > { %v1031_v32 = vrot.slane %v1029_v26, 7  ;;  %v1017_v8 = vrot.slane %v1015_v27, 7  ;;  %v1022_v3 = vshrl.u32 %v5090_v19, 16  ;;  %v1025_v48 = vshll.u32 %v5090_v19, 16  ;;  %v5088_v19 = vld [vmem:[%s6348_s9 + $0x8] sm:$0xff] }
  0xfa   : > { %v1003_v29 = vrot.slane %v1001_v20, 7  ;;  %v1038_v30 = vrot.slane %v1036_v45, 7  ;;  %v1057_v34 = vshrl.u32 %v6356_v25, 16  ;;  %v1060_v0 = vshll.u32 %v6356_v25, 16 }
  0xfb   : > { %v1034_v35 = vor.u32 %v1032_v24, %v1031_v32  ;;  %v6368_v41 = vsel %vm6360_vm4, %v1031_v32, 0  ;;  %v1020_v15 = vor.u32 %v1018_v28, %v1017_v8  ;;  %v6372_v4 = vsel %vm6360_vm4, %v1017_v8, 0  ;;  %v5098_v28 = vld [vmem:[%s6348_s9 + $0x8] sm:$0xff] }
  0xfc   : > { %v1538_v2 = vshll.u32 %v6368_v41, 16  ;;  %v1514_v21 = vshll.u32 %v6372_v4, 16  ;;  %v1006_v42 = vor.u32 %v1004_v47, %v1003_v29  ;;  %v6378_v37 = vsel %vm6360_vm4, %v1003_v29, 0 }
  0xfd   : > { %v6382_v53 = vsel %vm6360_vm4, 0, %v1034_v35  ;;  %v6386_v5 = vsel %vm6360_vm4, 0, %v1020_v15  ;;  %v1490_v38 = vshll.u32 %v6378_v37, 16  ;;  %v1041_v54 = vor.u32 %v1039_v16, %v1038_v30 }
  0xfe   : > { %v1531_v55 = vshrl.u32 %v6382_v53, 16  ;;  %v1533_v1 = vshll.u32 %v6382_v53, 16  ;;  %v1540_v10 = vrot.slane %v1538_v2, 1  ;;  %v1507_v39 = vshrl.u32 %v6386_v5, 16 }
  0xff   : > { %v1509_v12 = vshll.u32 %v6386_v5, 16  ;;  %v1516_v18 = vrot.slane %v1514_v21, 1  ;;  %v6395_v44 = vsel %vm6360_vm4, 0, %v1006_v42  ;;  %v1492_v23 = vrot.slane %v1490_v38, 1 }
 0x100   : > { %v1535_v11 = vrot.slane %v1533_v1, 1  ;;  %v1483_v14 = vshrl.u32 %v6395_v44, 16  ;;  %v1485_v49 = vshll.u32 %v6395_v44, 16  ;;  %v6402_v7 = vsel %vm6360_vm4, 0, %v1041_v54 }
 0x101   : > { %v1511_v51 = vrot.slane %v1509_v12, 1  ;;  %v6406_v13 = vsel %vm6360_vm4, %v1038_v30, 0  ;;  %v1543_v63 = vshrl.u32 %v6402_v7, 16  ;;  %v1545_v33 = vshll.u32 %v6402_v7, 16 }
 0x102   : > { %v1536_v52 = vor.u32 %v1535_v11, %v1531_v55  ;;  %v1487_v17 = vrot.slane %v1485_v49, 1  ;;  %v1550_v62 = vshll.u32 %v6406_v13, 16  ;;  %v1024_v22 = vrot.slane %v1022_v3, 7 }
 0x103   : > { %v1512_v40 = vor.u32 %v1511_v51, %v1507_v39  ;;  %v1547_v36 = vrot.slane %v1545_v33, 1  ;;  %v1059_v46 = vrot.slane %v1057_v34, 7  ;;  %v1050_v57 = vshrl.u32 %v5094_v6, 16  ;;  %v5105_v51 = vld [vmem:[%s6348_s9 + $0x40] sm:$0xff] }
 0x104   : > { %v1541_v9 = vsel %vm1481_vm3, %v1536_v52, %v1540_v10  ;;  %v1488_v31 = vor.u32 %v1487_v17, %v1483_v14  ;;  %v1552_v59 = vrot.slane %v1550_v62, 1  ;;  %v1027_v60 = vor.u32 %v1025_v48, %v1024_v22  ;;  %v5093_v17 = vld [vmem:[%s6348_s9 + $0x30] sm:$0xff] }
 0x105   : > { %1610 = vrot.lane.b32.xlu2 %v1541_v9, %s5738_s10  ;;  %v1517_v50 = vsel %vm1481_vm3, %v1512_v40, %v1516_v18  ;;  %v1548_v61 = vor.u32 %v1547_v36, %v1543_v63  ;;  %v6416_v43 = vsel %vm6360_vm4, %v1024_v22, 0  ;;  %v1062_v56 = vor.u32 %v1060_v0, %v1059_v46  ;;  %v5107_v62 = vld [vmem:[%s6348_s9 + $0x50] sm:$0xff] }
 0x106   : > { %1606 = vrot.lane.b32.xlu1 %v1517_v50, %s5738_s10  ;;  %v1493_v25 = vsel %vm1481_vm3, %v1488_v31, %v1492_v23  ;;  %v6423_v26 = vsel %vm6360_vm4, 0, %v1027_v60  ;;  %v1526_v24 = vshll.u32 %v6416_v43, 16  ;;  %v6428_v27 = vsel %vm6360_vm4, %v1059_v46, 0 }
 0x107   : > { %1602 = vrot.lane.b32.xlu0 %v1493_v25, %s5738_s10  ;;  %v1553_v20 = vsel %vm1481_vm3, %v1548_v61, %v1552_v59  ;;  %v1519_v47 = vshrl.u32 %v6423_v26, 16  ;;  %v1521_v45 = vshll.u32 %v6423_v26, 16  ;;  %v6437_v16 = vsel %vm6360_vm4, 0, %v1062_v56  ;;  %v5099_v59 = vld [vmem:[%s6348_s9 + $0x10] sm:$0xff] }
 0x108   : > { %v1528_v32 = vrot.slane %v1526_v24, 1  ;;  %v1579_v8 = vshrl.u32 %v6437_v16, 16  ;;  %v1581_v3 = vshll.u32 %v6437_v16, 16  ;;  %v1586_v48 = vshll.u32 %v6428_v27, 16 }
 0x109   : > { %v1523_v29 = vrot.slane %v1521_v45, 1  ;;  %v1052_v30 = vrot.slane %v1050_v57, 7  ;;  %v1053_v34 = vshll.u32 %v5094_v6, 16  ;;  %v1008_v0 = vshrl.u32 %v5088_v19, 16 }
 0x10a   : > { %v1583_v35 = vrot.slane %v1581_v3, 1  ;;  %v1588_v15 = vrot.slane %v1586_v48, 1  ;;  %v1011_v2 = vshll.u32 %v5088_v19, 16  ;;  %v1188_v21 = vshrl.u32 %v5098_v28, 16  ;;  %v5096_v19 = vld [vmem:[%s6348_s9 + $0x48] sm:$0xff] }
 0x10b   : > { %v1524_v42 = vor.u32 %v1523_v29, %v1519_v47  ;;  %v1055_v38 = vor.u32 %v1053_v34, %v1052_v30  ;;  %v6444_v54 = vsel %vm6360_vm4, %v1052_v30, 0  ;;  %v1010_v55 = vrot.slane %v1008_v0, 7 }
 0x10c   : > { %v1584_v1 = vor.u32 %v1583_v35, %v1579_v8  ;;  %v1574_v10 = vshll.u32 %v6444_v54, 16  ;;  %v1190_v39 = vrot.slane %v1188_v21, 7  ;;  %v1191_v12 = vshll.u32 %v5098_v28, 16 }
 0x10d   : > { %1612 = vrot.lane.b32.xlu2 %v1553_v20, %s5738_s10  ;;  %v1529_v18 = vsel %vm1481_vm3, %v1524_v42, %v1528_v32  ;;  %v6451_v23 = vsel %vm6360_vm4, 0, %v1055_v38  ;;  %v1013_v6 = vor.u32 %v1011_v2, %v1010_v55  ;;  %v6455_v11 = vsel %vm6360_vm4, %v1010_v55, 0 }
 0x10e   : > { %1608 = vrot.lane.b32.xlu1 %v1529_v18, %s5738_s10  ;;  %v1567_v14 = vshrl.u32 %v6451_v23, 16  ;;  %v1569_v49 = vshll.u32 %v6451_v23, 16  ;;  %v1502_v33 = vshll.u32 %v6455_v11, 16  ;;  %v1193_v52 = vor.u32 %v1191_v12, %v1190_v39  ;;  %v5109_v12 = vld [vmem:[%s6348_s9 + $0x10] sm:$0xff] }
 0x10f   : > { %v6463_v63 = vsel %vm6360_vm4, 0, %v1013_v6  ;;  %v1576_v40 = vrot.slane %v1574_v10, 1  ;;  %v1589_v57 = vsel %vm1481_vm3, %v1584_v1, %v1588_v15  ;;  %v6473_v31 = vsel %vm6360_vm4, %v1190_v39, 0 }
 0x110   : > { %v1571_v22 = vrot.slane %v1569_v49, 1  ;;  %v1495_v36 = vshrl.u32 %v6463_v63, 16  ;;  %v1497_v46 = vshll.u32 %v6463_v63, 16  ;;  %v1504_v9 = vrot.slane %v1502_v33, 1 }
 0x111   : > { %v6478_v61 = vsel %vm6360_vm4, 0, %v1193_v52  ;;  %v1237_v56 = vshrl.u32 %v5105_v51, 16  ;;  %v1240_v25 = vshll.u32 %v5105_v51, 16  ;;  %v1043_v24 = vshrl.u32 %v5093_v17, 16 }
 0x112   : > { %v1572_v60 = vor.u32 %v1571_v22, %v1567_v14  ;;  %v1499_v50 = vrot.slane %v1497_v46, 1  ;;  %v1046_v28 = vshll.u32 %v5093_v17, 16  ;;  %v1251_v20 = vshrl.u32 %v5107_v62, 16 }
 0x113   : > { %v1834_v32 = vrot.slane %v6473_v31, 1  ;;  %v6483_v8 = vrot.slane %v1237_v56, 7  ;;  %v1833_v3 = vrot.slane %v6478_v61, 1  ;;  %v1045_v48 = vrot.slane %v1043_v24, 7 }
 0x114   : > { %v1577_v47 = vsel %vm1481_vm3, %v1572_v60, %v1576_v40  ;;  %v1500_v45 = vor.u32 %v1499_v50, %v1495_v36  ;;  %v6487_v29 = vrot.slane %v1251_v20, 7  ;;  %v1195_v30 = vshrl.u32 %v5099_v59, 16  ;;  %v5100_v20 = vld [vmem:[%s6348_s9 + $0x18] sm:$0xff] }
 0x115   : > { %1618 = vrot.lane.b32.xlu2 %v1589_v57, %s5738_s10  ;;  %v1242_v0 = vor.u32 %v1240_v25, %v6483_v8  ;;  %v1254_v35 = vshll.u32 %v5107_v62, 16  ;;  %v1064_v15 = vshrl.u32 %v5096_v19, 16  ;;  %v1048_v2 = vor.u32 %v1046_v28, %v1045_v48 }
 0x116   : > { %1616 = vrot.lane.b32.xlu1 %v1577_v47, %s5738_s10  ;;  %v1505_v34 = vsel %vm1481_vm3, %v1500_v45, %v1504_v9  ;;  %v6495_v21 = vsel %vm6360_vm4, %v1045_v48, 0  ;;  %v1197_v42 = vrot.slane %v1195_v30, 7  ;;  %v1198_v38 = vshll.u32 %v5099_v59, 16 }
 0x117   : > { %1604 = vrot.lane.b32.xlu0 %v1505_v34, %s5738_s10  ;;  %v1562_v55 = vshll.u32 %v6495_v21, 16  ;;  %v1066_v1 = vrot.slane %v1064_v15, 7  ;;  %v1067_v10 = vshll.u32 %v5096_v19, 16  ;;  %v6500_v39 = vsel %vm6360_vm4, 0, %v1048_v2  ;;  %v5106_v19 = vld [vmem:[%s6348_s9 + $0x48] sm:$0xff] }
 0x118   : > { %v1835_v18 = vsel %vm1642_vm5, %v1833_v3, %v1834_v32  ;;  %v1555_v6 = vshrl.u32 %v6500_v39, 16  ;;  %v1557_v14 = vshll.u32 %v6500_v39, 16  ;;  %v6508_v49 = vsel %vm6360_vm4, 0, %v1242_v0 }
 0x119   : > { %v1256_v51 = vor.u32 %v1254_v35, %v6487_v29  ;;  %v1200_v33 = vor.u32 %v1198_v38, %v1197_v42  ;;  %v6513_v52 = vsel %vm6360_vm4, %v1197_v42, 0  ;;  %v1564_v62 = vrot.slane %v1562_v55, 1 }
 0x11a   : > { %8098 = vst [vmem:[#allocation6_spill] sm:$0xff] %v6513_v52  ;;  %v1559_v17 = vrot.slane %v1557_v14, 1  ;;  %v1069_v22 = vor.u32 %v1067_v10, %v1066_v1  ;;  %v6517_v40 = vsel %vm6360_vm4, %v1066_v1, 0  ;;  %v1837_v46 = vrot.slane %v6513_v52, 1  ;;  %v5101_v1 = vld [vmem:[%s6348_s9 + $0x20] sm:$0xff]  ;;  %v5110_v10 = vld [vmem:[%s6348_s9 + $0x18] sm:$0xff] }
 0x11b   : > { %v6522_v36 = vsel %vm6360_vm4, 0, %v1200_v33  ;;  %v1598_v57 = vshll.u32 %v6517_v40, 16  ;;  %v1372_v9 = vshrl.u32 %v5109_v12, 16  ;;  %v1375_v56 = vshll.u32 %v5109_v12, 16  ;;  %v5115_v52 = vld [vmem:[%s6348_s9 + $0x40] sm:$0xff] }
 0x11c   : > { %8099 = vst [vmem:[#allocation7_spill] sm:$0xff] %v6522_v36  ;;  %v1560_v59 = vor.u32 %v1559_v17, %v1555_v6  ;;  %v1836_v60 = vrot.slane %v6522_v36, 1  ;;  %v6531_v50 = vsel %vm6360_vm4, 0, %v1069_v22  ;;  %v6545_v48 = vsel %vm6360_vm4, 0, %v1256_v51 }
 0x11d   : > { %1863 = vrot.lane.b32.xlu2 %v1835_v18, %s5738_s10  ;;  %v1591_v25 = vshrl.u32 %v6531_v50, 16  ;;  %v1593_v24 = vshll.u32 %v6531_v50, 16  ;;  %v1374_v28 = vrot.slane %v1372_v9, 7  ;;  %v1600_v34 = vrot.slane %v1598_v57, 1 }
 0x11e   : > { %1697 = vrot.lane.b32.xlu1 %v6508_v49, %s5738_s10  ;;  %v1565_v47 = vsel %vm1481_vm3, %v1560_v59, %v1564_v62  ;;  %v1838_v30 = vsel %vm1642_vm5, %v1836_v60, %v1837_v46  ;;  %v1244_v0 = vshrl.u32 %v5106_v19, 16  ;;  %v1202_v42 = vshrl.u32 %v5100_v20, 16 }
 0x11f   : > { %1614 = vrot.lane.b32.xlu0 %v1565_v47, %s5738_s10  ;;  %v1595_v45 = vrot.slane %v1593_v24, 1  ;;  %v1377_v32 = vor.u32 %v1375_v56, %v1374_v28  ;;  %v6541_v3 = vsel %vm6360_vm4, %v1374_v28, 0  ;;  %v1247_v14 = vshll.u32 %v5106_v19, 16  ;;  %v5102_v19 = vld [vmem:[%s6348_s9 + $0x28] sm:$0xff] }
 0x120   : > { %8100 = vst [vmem:[#allocation8_spill] sm:$0xff] %v6541_v3  ;;  %v1891_v2 = vshll.u32 %v6541_v3, 16  ;;  %v6561_v6 = vrot.slane %v1244_v0, 7  ;;  %v1204_v33 = vrot.slane %v1202_v42, 7  ;;  %v1205_v17 = vshll.u32 %v5100_v20, 16  ;;  %v5126_v0 = vld [vmem:[%s7981_s1 + $0x38] sm:$0xff] }
 0x121   : > { %v1596_v35 = vor.u32 %v1595_v45, %v1591_v25  ;;  %v6550_v15 = vsel %vm6360_vm4, 0, %v1377_v32  ;;  %v1209_v22 = vshrl.u32 %v5101_v1, 16  ;;  %v1379_v46 = vshrl.u32 %v5110_v10, 16  ;;  %2536 = vmatpush.bf16.msra.mxu0 %v5126_v0 }
 0x122   : > { %v1884_v38 = vshrl.u32 %v6550_v15, 16  ;;  %v1886_v55 = vshll.u32 %v6550_v15, 16  ;;  %v1893_v51 = vrot.slane %v1891_v2, 1  ;;  %v1382_v57 = vshll.u32 %v5110_v10, 16 }
 0x123   : > { %v1601_v12 = vsel %vm1481_vm3, %v1596_v35, %v1600_v34  ;;  %v1249_v9 = vor.u32 %v1247_v14, %v6561_v6  ;;  %v1381_v59 = vrot.slane %v1379_v46, 7  ;;  %v1207_v56 = vor.u32 %v1205_v17, %v1204_v33  ;;  %v5103_v14 = vld [vmem:[%s6348_s9 + $0x30] sm:$0xff] }
 0x124   : > { %v1888_v18 = vrot.slane %v1886_v55, 1  ;;  %v1211_v25 = vrot.slane %v1209_v22, 7  ;;  %v1212_v24 = vshll.u32 %v5101_v1, 16  ;;  %v6580_v45 = vsel %vm6360_vm4, %v1204_v33, 0  ;;  %v5125_v55 = vld [vmem:[%s7981_s1 + $0x30] sm:$0xff] }
 0x125   : > { %1701 = vrot.lane.b32.xlu2 %v6545_v48, %s5738_s10  ;;  %v1384_v28 = vor.u32 %v1382_v57, %v1381_v59  ;;  %v6572_v20 = vsel %vm6360_vm4, 0, %v1249_v9  ;;  %v6576_v47 = vsel %vm6360_vm4, 0, %v1207_v56  ;;  %8102 = vst [vmem:[#allocation10_spill] sm:$0xff] %v6580_v45  ;;  %v1216_v34 = vshrl.u32 %v5102_v19, 16  ;;  %2537 = vmatpush.bf16.msra.mxu0 %v5125_v55 }
 0x126   : > { %1865 = vrot.lane.b32.xlu1 %v1838_v30, %s5738_s10  ;;  %v1889_v62 = vor.u32 %v1888_v18, %v1884_v38  ;;  %8101 = vst [vmem:[#allocation9_spill] sm:$0xff] %v6576_v47  ;;  %v1214_v30 = vor.u32 %v1212_v24, %v1211_v25  ;;  %v1839_v35 = vrot.slane %v6576_v47, 1  ;;  %v1840_v2 = vrot.slane %v6580_v45, 1 }
 0x127   : > { %1620 = vrot.lane.b32.xlu0 %v1601_v12, %s5738_s10  ;;  %v6584_v32 = vsel %vm6360_vm4, 0, %v1384_v28  ;;  %v6596_v38 = vsel %vm6360_vm4, %v1381_v59, 0  ;;  %v6607_v10 = vsel %vm6360_vm4, %v1211_v25, 0  ;;  %v1218_v12 = vrot.slane %v1216_v34, 7 }
 0x128   : > { %v1894_v60 = vsel %vm1481_vm3, %v1889_v62, %v1893_v51  ;;  %v1898_v42 = vshll.u32 %v6584_v32, 16  ;;  %8103 = vst [vmem:[#allocation11_spill] sm:$0xff] %v6596_v38  ;;  %v6603_v1 = vsel %vm6360_vm4, 0, %v1214_v30  ;;  %v1219_v18 = vshll.u32 %v5102_v19, 16 }
 0x129   : > { %v1841_v51 = vsel %vm1642_vm5, %v1839_v35, %v1840_v2  ;;  %v1896_v33 = vshrl.u32 %v6584_v32, 16  ;;  %v1903_v62 = vshll.u32 %v6596_v38, 16  ;;  %v1842_v22 = vrot.slane %v6603_v1, 1  ;;  %v5124_v35 = vld [vmem:[%s7981_s1 + $0x28] sm:$0xff] }
 0x12a   : > { %v1900_v17 = vrot.slane %v1898_v42, 1  ;;  %v1843_v46 = vrot.slane %v6607_v10, 1  ;;  %v1221_v57 = vor.u32 %v1219_v18, %v1218_v12  ;;  %v1223_v9 = vshrl.u32 %v5103_v14, 16  ;;  %2538 = vmatpush.bf16.msra.mxu0 %v5124_v35  ;;  %v5123_v42 = vld [vmem:[%s7981_s1 + $0x20] sm:$0xff]  ;;  %v5132_v35 = vld [vmem:[%s7981_s1 + $0x68] sm:$0xff] }
 0x12b   : > { %v6625_v24 = vsel %vm6360_vm4, %v1218_v12, 0  ;;  %v1226_v19 = vshll.u32 %v5103_v14, 16  ;;  %v5104_v14 = vld [vmem:[%s6348_s9 + $0x38] sm:$0xff]  ;;  %v1643_v38 = vrot.slane %v6395_v44, 1  ;;  %v1644_v3 = vrot.slane %v6378_v37, 1 }
 0x12c   : > { %v1901_v59 = vor.u32 %v1900_v17, %v1896_v33  ;;  %v1844_v56 = vsel %vm1642_vm5, %v1842_v22, %v1843_v46  ;;  %v6621_v25 = vsel %vm6360_vm4, 0, %v1221_v57  ;;  %v1225_v28 = vrot.slane %v1223_v9, 7  ;;  %v5122_v17 = vld [vmem:[%s7981_s1 + $0x18] sm:$0xff]  ;;  %v5121_v9 = vld [vmem:[%s7981_s1 + $0x10] sm:$0xff] }
 0x12d   : > { %1683 = vrot.lane.b32.xlu2 %v6478_v61, %s5738_s10  ;;  %v1845_v34 = vrot.slane %v6621_v25, 1  ;;  %v1846_v0 = vrot.slane %v6625_v24, 1  ;;  %v1230_v22 = vshrl.u32 %v5104_v14, 16  ;;  %v1233_v46 = vshll.u32 %v5104_v14, 16  ;;  %v5111_v14 = vld [vmem:[%s6348_s9 + $0x20] sm:$0xff]  ;;  %v5150_v37 = vld [vmem:[%s7981_s1 + $0xf8] sm:$0xff] }
 0x12e   : > { %2003 = vrot.lane.b32.xlu1 %v1894_v60, %s5738_s10  ;;  %v1905_v60 = vrot.slane %v1903_v62, 1  ;;  %v1228_v2 = vor.u32 %v1226_v19, %v1225_v28  ;;  %v6645_v18 = vsel %vm6360_vm4, %v1225_v28, 0  ;;  %2539 = vmatpush.bf16.msra.mxu0 %v5123_v42  ;;  %v5134_v62 = vld [vmem:[%s7981_s1 + $0x78] sm:$0xff]  ;;  %v5131_v42 = vld [vmem:[%s7981_s1 + $0x60] sm:$0xff] }
 0x12f   : > { %1699 = vrot.lane.b32.xlu0 %v6572_v20, %s5738_s10  ;;  %v1847_v55 = vsel %vm1642_vm5, %v1845_v34, %v1846_v0  ;;  %v1849_v33 = vrot.slane %v6645_v18, 1  ;;  %v1232_v57 = vrot.slane %v1230_v22, 7  ;;  %2595 = vmatpush.bf16.msra.mxu1 %v5134_v62  ;;  %v5120_v0 = vld [vmem:[%s7981_s1 + $0x8] sm:$0xff]  ;;  %v1386_v22 = vshrl.u32 %v5111_v14, 16 }
 0x130   : > { %v1906_v30 = vsel %vm1481_vm3, %v1901_v59, %v1905_v60  ;;  %v6641_v12 = vsel %vm6360_vm4, 0, %v1228_v2  ;;  %v5133_v59 = vld [vmem:[%s7981_s1 + $0x70] sm:$0xff]  ;;  %5386 = vmatpush.bf16.msra.mxu3 %v5134_v62  ;;  %v5119_v2 = vld [vmem:[%s7981_s1] sm:$0xff]  ;;  %v1854_v62 = vrot.slane %v6508_v49, 1 }
 0x131   : > { %v6668_v28 = vsel %vm6360_vm4, %v1232_v57, 0 }
 0x132   : > { %2540 = vmatpush.bf16.msra.mxu0 %v5122_v17  ;;  %v1852_v34 = vrot.slane %v6668_v28, 1  ;;  %v6705_v17 = vsel %vm6360_vm4, %v6483_v8, 0 }
 0x133   : > { %2596 = vmatpush.bf16.msra.mxu1 %v5133_v59 }
 0x134   : > { %5387 = vmatpush.bf16.msra.mxu3 %v5133_v59  ;;  %v1389_v59 = vshll.u32 %v5111_v14, 16 }
 0x136   : > { %1685 = vrot.lane.b32.xlu1 %v6522_v36, %s5738_s10  ;;  %2541 = vmatpush.bf16.msra.mxu0 %v5121_v9  ;;  %v1388_v9 = vrot.slane %v1386_v22, 7  ;;  %v1747_v36 = vshll.u32 %v6607_v10, 16  ;;  %v1670_v10 = vrot.slane %v6531_v50, 1 }
 0x137   : > { %1867 = vrot.lane.b32.xlu0 %v1841_v51, %s5738_s10  ;;  %v1848_v51 = vrot.slane %v6641_v12, 1  ;;  %2597 = vmatpush.bf16.msra.mxu1 %v5132_v35 }
 0x138   : > { %5388 = vmatpush.bf16.msra.mxu3 %v5132_v35  ;;  %v1391_v8 = vor.u32 %v1389_v59, %v1388_v9  ;;  %v1857_v59 = vrot.slane %v6572_v20, 1 }
 0x139   : > { %v1850_v60 = vsel %vm1642_vm5, %v1848_v51, %v1849_v33  ;;  %v5142_v51 = vld [vmem:[%s7981_s1 + $0xb8] sm:$0xff] }
 0x13a   : > { %2542 = vmatpush.bf16.msra.mxu0 %v5120_v0  ;;  %v5130_v33 = vld [vmem:[%s7981_s1 + $0x58] sm:$0xff]  ;;  %5394 = vmatpush.bf16.msra.mxu2 %v5142_v51  ;;  %v6727_v0 = vsel %vm6360_vm4, 0, %v1391_v8 }
 0x13b   : > { %2598 = vmatpush.bf16.msra.mxu1 %v5131_v42 }
 0x13c   : > { %5389 = vmatpush.bf16.msra.mxu3 %v5131_v42  ;;  %v1910_v42 = vshll.u32 %v6727_v0, 16 }
 0x13e   : > { %1869 = vrot.lane.b32.xlu1 %v1844_v56, %s5738_s10  ;;  %v1235_v56 = vor.u32 %v1233_v46, %v1232_v57  ;;  %2543 = vmatpush.bf16.msra.mxu0 %v5119_v2  ;;  %v1855_v46 = vrot.slane %v6705_v17, 1  ;;  %v5129_v57 = vld [vmem:[%s7981_s1 + $0x50] sm:$0xff]  ;;  %v1908_v2 = vshrl.u32 %v6727_v0, 16 }
 0x13f   : > { %2005 = vrot.lane.b32.xlu0 %v1906_v30, %s5738_s10  ;;  %2599 = vmatpush.bf16.msra.mxu1 %v5130_v33 }
 0x140   : > { %v6672_v19 = vsel %vm6360_vm4, 0, %v1235_v56  ;;  %5390 = vmatpush.bf16.msra.mxu3 %v5130_v33  ;;  %v5127_v33 = vld [vmem:[%s7981_s1 + $0x40] sm:$0xff] }
 0x141   : > { %v1851_v30 = vrot.slane %v6672_v19, 1 }
 0x142   : > { %2654 = vmatpush.bf16.msrb.mxu0 %v5142_v51 }
 0x143   : > { %2600 = vmatpush.bf16.msra.mxu1 %v5129_v57 }
 0x144   : > { %5391 = vmatpush.bf16.msra.mxu3 %v5129_v57  ;;  %v5141_v57 = vld [vmem:[%s7981_s1 + $0xb0] sm:$0xff] }
 0x145   : > { %5395 = vmatpush.bf16.msra.mxu2 %v5141_v57 }
 0x146   : > { %1871 = vrot.lane.b32.xlu1 %v1847_v55, %s5738_s10  ;;  %v1853_v55 = vsel %vm1642_vm5, %v1851_v30, %v1852_v34  ;;  %v6718_v30 = vsel %vm6360_vm4, %v1388_v9, 0  ;;  %v5128_v34 = vld [vmem:[%s7981_s1 + $0x48] sm:$0xff]  ;;  %v6748_v9 = vsel %vm6360_vm4, %v6561_v6, 0  ;;  %2655 = vmatpush.bf16.msrb.mxu0 %v5141_v57 }
 0x147   : > { %1687 = vrot.lane.b32.xlu0 %v6576_v47, %s5738_s10  ;;  %8104 = vst [vmem:[#allocation12_spill] sm:$0xff] %v6718_v30  ;;  %v1915_v35 = vshll.u32 %v6718_v30, 16  ;;  %2601 = vmatpush.bf16.msra.mxu1 %v5128_v34  ;;  %v1858_v8 = vrot.slane %v6748_v9, 1 }
 0x148   : > { %5392 = vmatpush.bf16.msra.mxu3 %v5128_v34 }
 0x149   : > { %v1917_v14 = vrot.slane %v1915_v35, 1 }
 0x14b   : > { %2602 = vmatpush.bf16.msra.mxu1 %v5127_v33 }
 0x14c   : > { %5393 = vmatpush.bf16.msra.mxu3 %v5127_v33 }
 0x14e   : > { %1873 = vrot.lane.b32.xlu1 %v1850_v60, %s5738_s10  ;;  %v1856_v60 = vsel %vm1642_vm5, %v1854_v62, %v1855_v46  ;;  %v5112_v46 = vld [vmem:[%s6348_s9 + $0x28] sm:$0xff] }
 0x14f   : > { %1689 = vrot.lane.b32.xlu0 %v6603_v1, %s5738_s10  ;;  %v1396_v35 = vshll.u32 %v5112_v46, 16 }
 0x150   : > { %2713 = vmatpush.bf16.msrb.mxu3 %v5150_v37  ;;  %v5114_v37 = vld [vmem:[%s6348_s9 + $0x38] sm:$0xff] }
 0x156   : > { %1875 = vrot.lane.b32.xlu1 %v1853_v55, %s5738_s10  ;;  %v1912_v55 = vrot.slane %v1910_v42, 1 }
 0x157   : > { %1691 = vrot.lane.b32.xlu0 %v6621_v25, %s5738_s10 }
 0x158   : > { %v1913_v51 = vor.u32 %v1912_v55, %v1908_v2  ;;  %v1859_v2 = vsel %vm1642_vm5, %v1857_v59, %v1858_v8 }
 0x15a   : > { %v1918_v22 = vsel %vm1481_vm3, %v1913_v51, %v1917_v14 }
 0x15b   : > { %2007 = vrot.lane.b32.xlu2 %v1918_v22, %s5738_s10 }
 0x15e   : > { %1877 = vrot.lane.b32.xlu1 %v1856_v60, %s5738_s10  ;;  %v1393_v60 = vshrl.u32 %v5112_v46, 16 }
 0x15f   : > { %v6713_v56 = vpop.permute.xlu2 %1610  ;;  %1693 = vrot.lane.b32.xlu0 %v6641_v12, %s5738_s10 }
 0x160   : > { %v1395_v34 = vrot.slane %v1393_v60, 7 }
 0x162   : > { %v1398_v55 = vor.u32 %v1396_v35, %v1395_v34  ;;  %v6763_v51 = vsel %vm6360_vm4, %v1395_v34, 0 }
 0x163   : > { %8105 = vst [vmem:[#allocation13_spill] sm:$0xff] %v6763_v51  ;;  %v1927_v46 = vshll.u32 %v6763_v51, 16 }
 0x164   : > { %v6758_v6 = vsel %vm6360_vm4, 0, %v1398_v55  ;;  %v5113_v55 = vld [vmem:[%s6348_s9 + $0x30] sm:$0xff] }
 0x165   : > { %v1922_v14 = vshll.u32 %v6758_v6, 16  ;;  %v1920_v33 = vshrl.u32 %v6758_v6, 16  ;;  %v1929_v59 = vrot.slane %v1927_v46, 1  ;;  %v1400_v46 = vshrl.u32 %v5113_v55, 16 }
 0x167   : > { %v6735_v62 = vpop.permute.xlu2 %1612  ;;  %1695 = vrot.lane.b32.xlu0 %v6672_v19, %s5738_s10  ;;  %v1924_v22 = vrot.slane %v1922_v14, 1  ;;  %v5140_v14 = vld [vmem:[%s7981_s1 + $0xa8] sm:$0xff] }
 0x168   : > { %5396 = vmatpush.bf16.msra.mxu2 %v5140_v14  ;;  %2656 = vmatpush.bf16.msrb.mxu0 %v5140_v14 }
 0x169   : > { %v1925_v57 = vor.u32 %v1924_v22, %v1920_v33  ;;  %v6782_v33 = vsel %vm6360_vm4, %v6487_v29, 0  ;;  %v1860_v22 = vrot.slane %v6545_v48, 1 }
 0x16b   : > { %v1930_v35 = vsel %vm1481_vm3, %v1925_v57, %v1929_v59  ;;  %v1861_v57 = vrot.slane %v6782_v33, 1  ;;  %v5139_v59 = vld [vmem:[%s7981_s1 + $0xa0] sm:$0xff] }
 0x16c   : > { %2009 = vrot.lane.b32.xlu2 %v1930_v35, %s5738_s10  ;;  %v1402_v35 = vrot.slane %v1400_v46, 7  ;;  %5397 = vmatpush.bf16.msra.mxu2 %v5139_v59 }
 0x16d   : > { %2657 = vmatpush.bf16.msrb.mxu0 %v5139_v59  ;;  %v1645_v59 = vsel %vm1642_vm5, %v1643_v38, %v1644_v3 }
 0x16e   : > { %v6804_v14 = vsel %vm6360_vm4, %v1402_v35, 0 }
 0x16f   : > { %v6753_v42 = vpop.permute.xlu2 %1618  ;;  %1879 = vrot.lane.b32.xlu0 %v1859_v2, %s5738_s10  ;;  %8107 = vst [vmem:[#allocation15_spill] sm:$0xff] %v6804_v14 }
 0x177   : > { %v6767_v60 = vpop.permute.xlu2 %1863 }
 0x178   : > { %8106 = vst [vmem:[#allocation14_spill] sm:$0xff] %v6767_v60  ;;  %v6769_v8 = vpop.permute.xlu1 %1606 }
 0x179   : > { %v1603_v2 = vpop.permute.xlu0 %1602 }
 0x17a   : > { %v2075_v34 = vsel %vm2073_vm6, %v6395_v44, %v1603_v2  ;;  %v1403_v2 = vshll.u32 %v5113_v55, 16 }
 0x17b   : > { %2544 = vmatmul.bf16.vlgmr.msra.gmra.mxu0 %v2075_v34  ;;  %v1862_v34 = vsel %vm1642_vm5, %v1860_v22, %v1861_v57  ;;  %v5138_v22 = vld [vmem:[%s7981_s1 + $0x98] sm:$0xff]  ;;  %v1939_v57 = vshll.u32 %v6804_v14, 16 }
 0x17c   : > { %1881 = vrot.lane.b32.xlu1 %v1862_v34, %s5738_s10  ;;  %v1405_v29 = vor.u32 %v1403_v2, %v1402_v35  ;;  %5398 = vmatpush.bf16.msra.mxu2 %v5138_v22  ;;  %v5137_v34 = vld [vmem:[%s7981_s1 + $0x90] sm:$0xff] }
 0x17d   : > { %v1941_v2 = vrot.slane %v1939_v57, 1  ;;  %2658 = vmatpush.bf16.msrb.mxu0 %v5138_v22  ;;  %v1665_v57 = vrot.slane %v6444_v54, 1  ;;  %v1407_v22 = vshrl.u32 %v5114_v37, 16  ;;  %v5135_v54 = vld [vmem:[%s7981_s1 + $0x80] sm:$0xff] }
 0x17e   : > { %v6799_v45 = vsel %vm6360_vm4, 0, %v1405_v29  ;;  %v5149_v29 = vld [vmem:[%s7981_s1 + $0xf0] sm:$0xff] }
 0x17f   : > { %v6790_v51 = vpop.permute.xlu2 %1701  ;;  %v1934_v55 = vshll.u32 %v6799_v45, 16  ;;  %v1932_v44 = vshrl.u32 %v6799_v45, 16  ;;  %2714 = vmatpush.bf16.msrb.mxu3 %v5149_v29  ;;  %v5147_v29 = vld [vmem:[%s7981_s1 + $0xe0] sm:$0xff] }
 0x180   : > { %v6793_v30 = vpop.permute.xlu1 %1608  ;;  %5399 = vmatpush.bf16.msra.mxu2 %v5137_v34 }
 0x181   : > { %v1936_v46 = vrot.slane %v1934_v55, 1  ;;  %2659 = vmatpush.bf16.msrb.mxu0 %v5137_v34 }
 0x183   : > { %v1937_v35 = vor.u32 %v1936_v46, %v1932_v44  ;;  %v1664_v46 = vrot.slane %v6451_v23, 1 }
 0x185   : > { %v1942_v3 = vsel %vm1481_vm3, %v1937_v35, %v1941_v2  ;;  %v1410_v35 = vshll.u32 %v5114_v37, 16  ;;  %v1666_v2 = vsel %vm1642_vm5, %v1664_v46, %v1665_v57 }
 0x186   : > { %2011 = vrot.lane.b32.xlu2 %v1942_v3, %s5738_s10 }
 0x187   : > { %v1684_v47 = vpop.permute.xlu2 %1683 }
 0x188   : > { %v6821_v55 = vpop.permute.xlu1 %1616  ;;  %v2106_v14 = vsel %vm2073_vm6, %v1645_v59, %v1684_v47  ;;  %v5136_v47 = vld [vmem:[%s7981_s1 + $0x88] sm:$0xff]  ;;  %v1409_v59 = vrot.slane %v1407_v22, 7 }
 0x189   : > { %v1605_v38 = vpop.permute.xlu0 %1604  ;;  %2603 = vmatmul.bf16.vlgmr.msra.gmra.mxu1 %v2106_v14  ;;  %v5148_v14 = vld [vmem:[%s7981_s1 + $0xe8] sm:$0xff]  ;;  %5400 = vmatpush.bf16.msra.mxu2 %v5136_v47 }
 0x18a   : > { %v2078_v44 = vsel %vm2073_vm6, %v6463_v63, %v1605_v38  ;;  %2715 = vmatpush.bf16.msrb.mxu3 %v5148_v14  ;;  %v1412_v3 = vor.u32 %v1410_v35, %v1409_v59  ;;  %2660 = vmatpush.bf16.msrb.mxu0 %v5136_v47  ;;  %v6853_v46 = vsel %vm6360_vm4, %v1409_v59, 0  ;;  %v5146_v47 = vld [vmem:[%s7981_s1 + $0xd8] sm:$0xff]  ;;  %v5145_v59 = vld [vmem:[%s7981_s1 + $0xd0] sm:$0xff] }
 0x18b   : > { %2549 = vmatmul.bf16.gmra.mxu0 %v2078_v44  ;;  %8109 = vst [vmem:[#allocation17_spill] sm:$0xff] %v6853_v46  ;;  %v1951_v22 = vshll.u32 %v6853_v46, 16  ;;  %v1647_v46 = vrot.slane %v6455_v11, 1 }
 0x18c   : > { %v6847_v34 = vsel %vm6360_vm4, 0, %v1412_v3 }
 0x18d   : > { %5401 = vmatpush.bf16.msra.mxu2 %v5135_v54  ;;  %8108 = vst [vmem:[#allocation16_spill] sm:$0xff] %v6847_v34  ;;  %v1946_v57 = vshll.u32 %v6847_v34, 16  ;;  %v1944_v14 = vshrl.u32 %v6847_v34, 16 }
 0x18e   : > { %2716 = vmatpush.bf16.msrb.mxu3 %v5147_v29  ;;  %2661 = vmatpush.bf16.msrb.mxu0 %v5135_v54 }
 0x18f   : > { %v1948_v35 = vrot.slane %v1946_v57, 1  ;;  %v1414_v57 = vshrl.u32 %v5115_v52, 16 }
 0x190   : > { %v1698_v38 = vpop.permute.xlu1 %1697 }
 0x191   : > { %v2134_v44 = vsel %vm2073_vm6, %v1666_v2, %v1698_v38  ;;  %v6849_v37 = vpop.permute.xlu0 %1614  ;;  %v1953_v2 = vrot.slane %v1951_v22, 1  ;;  %v1949_v3 = vor.u32 %v1948_v35, %v1944_v14  ;;  %v2081_v38 = vsel %vm2073_vm6, %v6386_v5, %v6769_v8 }
 0x192   : > { %2638 = vmatmul.bf16.vlgmr.msra.gmra.mxu3 %v2134_v44  ;;  %v1667_v14 = vrot.slane %v6437_v16, 1  ;;  %v1668_v22 = vrot.slane %v6428_v27, 1  ;;  %v1416_v35 = vrot.slane %v1414_v57, 7  ;;  %v1417_v8 = vshll.u32 %v5115_v52, 16 }
 0x193   : > { %2717 = vmatpush.bf16.msrb.mxu3 %v5146_v47  ;;  %v1954_v44 = vsel %vm1481_vm3, %v1949_v3, %v1953_v2  ;;  %v5144_v47 = vld [vmem:[%s7981_s1 + $0xc8] sm:$0xff]  ;;  %v5143_v2 = vld [vmem:[%s7981_s1 + $0xc0] sm:$0xff] }
 0x194   : > { %2013 = vrot.lane.b32.xlu2 %v1954_v44, %s5738_s10  ;;  %v1646_v44 = vrot.slane %v6463_v63, 1  ;;  %v6894_v57 = vsel %vm6360_vm4, %v1416_v35, 0 }
 0x195   : > { %8111 = vst [vmem:[#allocation19_spill] sm:$0xff] %v6894_v57  ;;  %v1963_v11 = vshll.u32 %v6894_v57, 16 }
 0x197   : > { %2718 = vmatpush.bf16.msrb.mxu3 %v5145_v59  ;;  %v1669_v59 = vsel %vm1642_vm5, %v1667_v14, %v1668_v22  ;;  %v1648_v22 = vsel %vm1642_vm5, %v1646_v44, %v1647_v46  ;;  %v1749_v44 = vrot.slane %v1747_v36, 1 }
 0x198   : > { %v6864_v29 = vpop.permute.xlu1 %1865 }
 0x199   : > { %8110 = vst [vmem:[#allocation18_spill] sm:$0xff] %v6864_v29  ;;  %v6872_v54 = vpop.permute.xlu0 %1620  ;;  %v1742_v29 = vshll.u32 %v6603_v1, 16 }
 0x19b   : > { %2554 = vmatmul.bf16.gmra.mxu0 %v2081_v38  ;;  %2719 = vmatpush.bf16.msrb.mxu3 %v5144_v47  ;;  %v1419_v38 = vor.u32 %v1417_v8, %v1416_v35  ;;  %v1965_v35 = vrot.slane %v1963_v11, 1 }
 0x19d   : > { %v6890_v27 = vsel %vm6360_vm4, 0, %v1419_v38  ;;  %v1740_v38 = vshrl.u32 %v6603_v1, 16 }
 0x19e   : > { %v1958_v47 = vshll.u32 %v6890_v27, 16  ;;  %v1956_v63 = vshrl.u32 %v6890_v27, 16 }
 0x19f   : > { %2720 = vmatpush.bf16.msrb.mxu3 %v5143_v2  ;;  %v1744_v2 = vrot.slane %v1742_v29, 1  ;;  %v1671_v29 = vrot.slane %v6517_v40, 1  ;;  %v1649_v40 = vrot.slane %v6386_v5, 1 }
 0x1a0   : > { %v6882_v3 = vpop.permute.xlu1 %2003  ;;  %v1960_v8 = vrot.slane %v1958_v47, 1 }
 0x1a1   : > { %v1700_v52 = vpop.permute.xlu0 %1699  ;;  %v1745_v46 = vor.u32 %v1744_v2, %v1740_v38 }
 0x1a2   : > { %v2138_v14 = vsel %vm2073_vm6, %v1669_v59, %v1700_v52  ;;  %v1961_v60 = vor.u32 %v1960_v8, %v1956_v63  ;;  %v2084_v59 = vsel %vm2073_vm6, %v6423_v26, %v6793_v30  ;;  %v5118_v8 = vld [vmem:[%s6348_s9 + $0x58] sm:$0xff] }
 0x1a3   : > { %2643 = vmatmul.bf16.gmra.mxu3 %v2138_v14  ;;  %v5116_v14 = vld [vmem:[%s6348_s9 + $0x48] sm:$0xff] }
 0x1a4   : > { %v1966_v57 = vsel %vm1481_vm3, %v1961_v60, %v1965_v35  ;;  %v1421_v47 = vshrl.u32 %v5116_v14, 16  ;;  %v1424_v63 = vshll.u32 %v5116_v14, 16  ;;  %v1672_v60 = vsel %vm1642_vm5, %v1670_v10, %v1671_v29 }
 0x1a5   : > { %2015 = vrot.lane.b32.xlu2 %v1966_v57, %s5738_s10  ;;  %v2142_v38 = vsel %vm2073_vm6, %v1672_v60, %v6790_v51  ;;  %v1759_v51 = vshll.u32 %v6625_v24, 16  ;;  %v1650_v29 = vrot.slane %v6372_v4, 1 }
 0x1a6   : > { %v1423_v30 = vrot.slane %v1421_v47, 7 }
 0x1a7   : > { %v1761_v24 = vrot.slane %v1759_v51, 1 }
 0x1a8   : > { %v1686_v34 = vpop.permute.xlu1 %1685  ;;  %v1426_v36 = vor.u32 %v1424_v63, %v1423_v30 }
 0x1a9   : > { %v2110_v52 = vsel %vm2073_vm6, %v1648_v22, %v1686_v34  ;;  %v6910_v1 = vpop.permute.xlu0 %1867  ;;  %v1750_v34 = vsel %vm1481_vm3, %v1745_v46, %v1749_v44  ;;  %v1754_v22 = vshll.u32 %v6621_v25, 16  ;;  %v1435_v46 = vshrl.u32 %v5118_v8, 16 }
 0x1aa   : > { %2608 = vmatmul.bf16.gmra.mxu1 %v2110_v52  ;;  %v6924_v2 = vsel %vm6360_vm4, 0, %v1426_v36  ;;  %v6931_v52 = vsel %vm6360_vm4, %v1423_v30, 0  ;;  %v1651_v36 = vsel %vm1642_vm5, %v1649_v40, %v1650_v29 }
 0x1ab   : > { %2559 = vmatmul.bf16.gmra.mxu0 %v2084_v59  ;;  %v1752_v59 = vshrl.u32 %v6621_v25, 16  ;;  %8112 = vst [vmem:[#allocation20_spill] sm:$0xff] %v6931_v52  ;;  %v1970_v14 = vshll.u32 %v6924_v2, 16  ;;  %v1756_v44 = vrot.slane %v1754_v22, 1  ;;  %v1968_v5 = vshrl.u32 %v6924_v2, 16 }
 0x1ac   : > { %v1975_v10 = vshll.u32 %v6931_v52, 16  ;;  %v1437_v25 = vrot.slane %v1435_v46, 7  ;;  %v5117_v52 = vld [vmem:[%s6348_s9 + $0x50] sm:$0xff]  ;;  %s4367_s9 = sadd.s32 %s5080_s8, %s5079_s30 }
 0x1ad   : > { %v1972_v47 = vrot.slane %v1970_v14, 1  ;;  %v1757_v22 = vor.u32 %v1756_v44, %v1752_v59  ;;  %v1428_v59 = vshrl.u32 %v5117_v52, 16 }
 0x1ae   : > { %v1977_v63 = vrot.slane %v1975_v10, 1 }
 0x1af   : > { %v1973_v30 = vor.u32 %v1972_v47, %v1968_v5  ;;  %v1762_v46 = vsel %vm1481_vm3, %v1757_v22, %v1761_v24  ;;  %v1430_v29 = vrot.slane %v1428_v59, 7  ;;  %v1431_v47 = vshll.u32 %v5117_v52, 16 }
 0x1b0   : > { %v1870_v11 = vpop.permute.xlu1 %1869  ;;  %v1652_v22 = vrot.slane %v6423_v26, 1  ;;  %v1653_v24 = vrot.slane %v6416_v43, 1 }
 0x1b1   : > { %v2158_v57 = vsel %vm2073_vm6, %v1750_v34, %v1870_v11  ;;  %v6926_v35 = vpop.permute.xlu0 %2005  ;;  %v1438_v34 = vshll.u32 %v5118_v8, 16  ;;  %v2087_v11 = vsel %vm2073_vm6, %v6382_v53, %v6713_v56 }
 0x1b2   : > { %2677 = vmatmul.bf16.vlgmr.msra.gmra.mxu2 %v2158_v57  ;;  %v1978_v57 = vsel %vm1481_vm3, %v1973_v30, %v1977_v63  ;;  %v1766_v63 = vshll.u32 %v6641_v12, 16  ;;  %v1433_v30 = vor.u32 %v1431_v47, %v1430_v29  ;;  %v1654_v43 = vsel %vm1642_vm5, %v1652_v22, %v1653_v24 }
 0x1b3   : > { %2648 = vmatmul.bf16.gmra.mxu3 %v2142_v38  ;;  %v1440_v60 = vor.u32 %v1438_v34, %v1437_v25  ;;  %2017 = vrot.lane.b32.xlu2 %v1978_v57, %s5738_s10  ;;  %v6951_v38 = vsel %vm6360_vm4, %v1437_v25, 0  ;;  %v6974_v57 = vsel %vm6360_vm4, %v1430_v29, 0  ;;  %v1783_v22 = vshll.u32 %v6668_v28, 16 }
 0x1b4   : > { %v1999_v51 = vshll.u32 %v6951_v38, 16  ;;  %v6968_v52 = vsel %vm6360_vm4, 0, %v1433_v30  ;;  %v1987_v59 = vshll.u32 %v6974_v57, 16  ;;  %v1656_v30 = vrot.slane %v6368_v41, 1 }
 0x1b5   : > { %v6947_v4 = vsel %vm6360_vm4, 0, %v1440_v60  ;;  %v1980_v26 = vshrl.u32 %v6968_v52, 16 }
 0x1b6   : > { %v1994_v56 = vshll.u32 %v6947_v4, 16  ;;  %v1992_v44 = vshrl.u32 %v6947_v4, 16  ;;  %v2001_v10 = vrot.slane %v1999_v51, 1 }
 0x1b8   : > { %v1872_v14 = vpop.permute.xlu1 %1871  ;;  %v1996_v5 = vrot.slane %v1994_v56, 1  ;;  %v1768_v56 = vrot.slane %v1766_v63, 1  ;;  %v1655_v63 = vrot.slane %v6382_v53, 1 }
 0x1b9   : > { %v1688_v8 = vpop.permute.xlu0 %1687  ;;  %v2162_v25 = vsel %vm2073_vm6, %v1762_v46, %v1872_v14  ;;  %v1989_v14 = vrot.slane %v1987_v59, 1 }
 0x1ba   : > { %v2114_v40 = vsel %vm2073_vm6, %v1651_v36, %v1688_v8  ;;  %v1997_v34 = vor.u32 %v1996_v5, %v1992_v44  ;;  %v1764_v36 = vshrl.u32 %v6641_v12, 16  ;;  %v1982_v8 = vshll.u32 %v6968_v52, 16 }
 0x1bb   : > { %2564 = vmatmul.bf16.gmra.mxu0 %v2087_v11  ;;  %2613 = vmatmul.bf16.gmra.mxu1 %v2114_v40  ;;  %v2185_v11 = vsel %vm2073_vm6, %v6550_v15, %v6882_v3  ;;  %v1771_v3 = vshll.u32 %v6645_v18, 16  ;;  %v2090_v44 = vsel %vm2073_vm6, %v6402_v7, %v6735_v62  ;;  %v2188_v62 = vsel %vm2073_vm6, %v6584_v32, %v6926_v35 }
 0x1bc   : > { %v2002_v60 = vsel %vm1481_vm3, %v1997_v34, %v2001_v10  ;;  %v1984_v40 = vrot.slane %v1982_v8, 1  ;;  %v1769_v51 = vor.u32 %v1768_v56, %v1764_v36  ;;  %v1778_v34 = vshll.u32 %v6672_v19, 16 }
 0x1bd   : > { %2021 = vrot.lane.b32.xlu0 %v2002_v60, %s5738_s10  ;;  %v1773_v5 = vrot.slane %v1771_v3, 1  ;;  %v1776_v60 = vshrl.u32 %v6672_v19, 16  ;;  %v1657_v36 = vsel %vm1642_vm5, %v1655_v63, %v1656_v30  ;;  %v2093_v8 = vsel %vm2073_vm6, %v6500_v39, %v6849_v37  ;;  %v2008_v19 = vpop.permute.xlu2 %2007 }
 0x1be   : > { %v1985_v12 = vor.u32 %v1984_v40, %v1980_v26  ;;  %v1785_v3 = vrot.slane %v1783_v22, 1  ;;  %v1790_v26 = vshll.u32 %v6508_v49, 16  ;;  %v2191_v59 = vsel %vm2073_vm6, %v6727_v0, %v2008_v19 }
 0x1bf   : > { %v1774_v47 = vsel %vm1481_vm3, %v1769_v51, %v1773_v5  ;;  %v1658_v37 = vrot.slane %v6402_v7, 1  ;;  %v1659_v40 = vrot.slane %v6406_v13, 1  ;;  %v2096_v51 = vsel %vm2073_vm6, %v6451_v23, %v6821_v55 }
 0x1c0   : > { %v1990_v10 = vsel %vm1481_vm3, %v1985_v12, %v1989_v14  ;;  %v1874_v29 = vpop.permute.xlu1 %1873  ;;  %v1788_v14 = vshrl.u32 %v6508_v49, 16  ;;  %v1661_v23 = vrot.slane %v6500_v39, 1  ;;  %v1662_v55 = vrot.slane %v6495_v21, 1  ;;  %v5154_v21 = vld [vmem:[%s7981_s1 + $0x118] sm:$0xff] }
 0x1c1   : > { %v1690_v46 = vpop.permute.xlu0 %1689  ;;  %2019 = vrot.lane.b32.xlu2 %v1990_v10, %s5738_s10  ;;  %v1807_v63 = vshll.u32 %v6748_v9, 16  ;;  %2776 = vmatpush.bf16.msra.mxu0 %v5154_v21  ;;  %v2102_v19 = vsel %vm2073_vm6, %v6531_v50, %v6872_v54  ;;  %v8118_v21 = vld [vmem:[#allocation9_spill] sm:$0xff]  ;;  %s4789_s10 = sadd.s32 4294967295, %s4468_s17 }
 0x1c2   : > { %2682 = vmatmul.bf16.gmra.mxu2 %v2162_v25  ;;  %v2118_v18 = vsel %vm2073_vm6, %v1654_v43, %v1690_v46  ;;  %v2166_v25 = vsel %vm2073_vm6, %v1774_v47, %v1874_v29  ;;  %v1792_v46 = vrot.slane %v1790_v26, 1  ;;  %v1795_v43 = vshll.u32 %v6705_v17, 16 }
 0x1c3   : > { %2721 = vmatmul.bf16.vlgmr.msrb.gmra.mxu3 %v2185_v11  ;;  %v1780_v11 = vrot.slane %v1778_v34, 1  ;;  %v1802_v29 = vshll.u32 %v6572_v20, 16  ;;  %v1800_v34 = vshrl.u32 %v6572_v20, 16  ;;  %v1663_v30 = vsel %vm1642_vm5, %v1661_v23, %v1662_v55 }
 0x1c4   : > { %v1793_v5 = vor.u32 %v1792_v46, %v1788_v14  ;;  %v1797_v10 = vrot.slane %v1795_v43, 1  ;;  %v1704_v14 = vshrl.u32 %v6478_v61, 16 }
 0x1c5   : > { %v1781_v56 = vor.u32 %v1780_v11, %v1776_v60  ;;  %v2099_v11 = vsel %vm2073_vm6, %v6437_v16, %v6753_v42 }
 0x1c6   : > { %v1798_v13 = vsel %vm1481_vm3, %v1793_v5, %v1797_v10  ;;  %v2010_v49 = vpop.permute.xlu2 %2009 }
 0x1c7   : > { %v1786_v41 = vsel %vm1481_vm3, %v1781_v56, %v1785_v3  ;;  %v2194_v47 = vsel %vm2073_vm6, %v6758_v6, %v2010_v49  ;;  %v1814_v56 = vshll.u32 %v6545_v48, 16  ;;  %v1812_v3 = vshrl.u32 %v6545_v48, 16 }
 0x1c8   : > { %v1876_v53 = vpop.permute.xlu1 %1875 }
 0x1c9   : > { %v1692_v24 = vpop.permute.xlu0 %1691  ;;  %v2170_v28 = vsel %vm2073_vm6, %v1786_v41, %v1876_v53  ;;  %v1819_v53 = vshll.u32 %v6782_v33, 16 }
 0x1ca   : > { %v2122_v35 = vsel %vm2073_vm6, %v1657_v36, %v1692_v24  ;;  %v1809_v24 = vrot.slane %v1807_v63, 1 }
 0x1cb   : > { %2569 = vmatmul.bf16.gmra.mxu0 %v2090_v44  ;;  %2618 = vmatmul.bf16.gmra.mxu1 %v2118_v18  ;;  %v1660_v44 = vsel %vm1642_vm5, %v1658_v37, %v1659_v40  ;;  %v1821_v26 = vrot.slane %v1819_v53, 1  ;;  %v1706_v37 = vshll.u32 %v6478_v61, 16  ;;  %v1711_v40 = vshll.u32 %v6473_v31, 16  ;;  %v5152_v31 = vld [vmem:[%s7981_s1 + $0x108] sm:$0xff] }
 0x1cd   : > { %v1708_v46 = vrot.slane %v1706_v37, 1 }
 0x1d0   : > { %v1878_v7 = vpop.permute.xlu1 %1877 }
 0x1d1   : > { %v1694_v12 = vpop.permute.xlu0 %1693  ;;  %v2174_v17 = vsel %vm2073_vm6, %v1798_v13, %v1878_v7  ;;  %v8115_v13 = vld [vmem:[#allocation7_spill] sm:$0xff] }
 0x1d2   : > { %2687 = vmatmul.bf16.gmra.mxu2 %v2166_v25  ;;  %v2126_v18 = vsel %vm2073_vm6, %v1660_v44, %v1694_v12  ;;  %v1709_v12 = vor.u32 %v1708_v46, %v1704_v14  ;;  %v1713_v44 = vrot.slane %v1711_v40, 1  ;;  %v1718_v49 = vshll.u32 %v8115_v13, 16  ;;  %v8120_v40 = vld [vmem:[#allocation8_spill] sm:$0xff] }
 0x1d3   : > { %2726 = vmatmul.bf16.gmra.mxu3 %v2188_v62  ;;  %v1804_v62 = vrot.slane %v1802_v29, 1  ;;  %v2044_v14 = vrot.slane %v8120_v40, 1  ;;  %v2043_v46 = vrot.slane %v6550_v15, 1 }
 0x1d4   : > { %v1714_v10 = vsel %vm1481_vm3, %v1709_v12, %v1713_v44  ;;  %v1720_v29 = vrot.slane %v1718_v49, 1  ;;  %v5170_v49 = vld [vmem:[%s7983_s3 + $0x78] sm:$0xff] }
 0x1d5   : > { %v1805_v22 = vor.u32 %v1804_v62, %v1800_v34  ;;  %v5151_v34 = vld [vmem:[%s7981_s1 + $0x100] sm:$0xff]  ;;  %3931 = vmatpush.bf16.msrb.mxu2 %v5170_v49  ;;  %v5178_v49 = vld [vmem:[%s7983_s3 + $0xb8] sm:$0xff] }
 0x1d6   : > { %3980 = vmatpush.bf16.msra.mxu3 %v5178_v49  ;;  %v5155_v49 = vld [vmem:[%s7983_s3] sm:$0xff] }
 0x1d7   : > { %v1810_v9 = vsel %vm1481_vm3, %v1805_v22, %v1809_v24  ;;  %v8117_v24 = vld [vmem:[#allocation18_spill] sm:$0xff] }
 0x1d9   : > { %v1696_v25 = vpop.permute.xlu0 %1695 }
 0x1da   : > { %v2130_v39 = vsel %vm2073_vm6, %v1663_v30, %v1696_v25 }
 0x1db   : > { %2574 = vmatmul.bf16.gmra.mxu0 %v2093_v8  ;;  %2623 = vmatmul.bf16.gmra.mxu1 %v2122_v35  ;;  %v1816_v35 = vrot.slane %v1814_v56, 1 }
 0x1e0   : > { %v2012_v36 = vpop.permute.xlu2 %2011 }
 0x1e1   : > { %v1880_v20 = vpop.permute.xlu0 %1879  ;;  %v2197_v42 = vsel %vm2073_vm6, %v6799_v45, %v2012_v36 }
 0x1e2   : > { %2692 = vmatmul.bf16.gmra.mxu2 %v2170_v28  ;;  %v2178_v8 = vsel %vm2073_vm6, %v1810_v9, %v1880_v20  ;;  %v1817_v28 = vor.u32 %v1816_v35, %v1812_v3  ;;  %v1730_v20 = vshll.u32 %v8118_v21, 16  ;;  %v8119_v9 = vld [vmem:[#allocation10_spill] sm:$0xff] }
 0x1e3   : > { %2731 = vmatmul.bf16.gmra.mxu3 %v2191_v59  ;;  %v5153_v59 = vld [vmem:[%s7981_s1 + $0x110] sm:$0xff]  ;;  %v1735_v36 = vshll.u32 %v8119_v9, 16  ;;  %v5168_v9 = vld [vmem:[%s7983_s3 + $0x68] sm:$0xff] }
 0x1e4   : > { %2777 = vmatpush.bf16.msra.mxu0 %v5153_v59  ;;  %v1822_v33 = vsel %vm1481_vm3, %v1817_v28, %v1821_v26  ;;  %v1732_v56 = vrot.slane %v1730_v20, 1 }
 0x1e5   : > { %v1737_v53 = vrot.slane %v1735_v36, 1  ;;  %v5160_v36 = vld [vmem:[%s7983_s3 + $0x28] sm:$0xff] }
 0x1e8   : > { %2778 = vmatpush.bf16.msra.mxu0 %v5152_v31  ;;  %v8121_v31 = vld [vmem:[#allocation11_spill] sm:$0xff] }
 0x1eb   : > { %2579 = vmatmul.bf16.gmra.mxu0 %v2096_v51  ;;  %2628 = vmatmul.bf16.gmra.mxu1 %v2126_v18  ;;  %v8113_v51 = vld [vmem:[#allocation16_spill] sm:$0xff]  ;;  %v8114_v18 = vld [vmem:[#allocation14_spill] sm:$0xff] }
 0x1ec   : > { %v2146_v7 = vsel %vm2073_vm6, %v1714_v10, %v8114_v18  ;;  %2779 = vmatpush.bf16.msra.mxu0 %v5151_v34  ;;  %v2046_v10 = vrot.slane %v6584_v32, 1  ;;  %v2047_v18 = vrot.slane %v8121_v31, 1  ;;  %v5162_v32 = vld [vmem:[%s7983_s3 + $0x38] sm:$0xff] }
 0x1ed   : > { %3882 = vmatpush.bf16.msrb.mxu1 %v5162_v32  ;;  %v2061_v32 = vrot.slane %v6890_v27, 1 }
 0x1ee   : > { %v1882_v48 = vpop.permute.xlu1 %1881  ;;  %v2014_v43 = vpop.permute.xlu2 %2013 }
 0x1ef   : > { %v2182_v50 = vsel %vm2073_vm6, %v1822_v33, %v1882_v48  ;;  %v2200_v5 = vsel %vm2073_vm6, %v8113_v51, %v2014_v43 }
 0x1f2   : > { %2697 = vmatmul.bf16.gmra.mxu2 %v2174_v17  ;;  %v1716_v17 = vshrl.u32 %v8115_v13, 16  ;;  %v2048_v13 = vsel %vm1642_vm5, %v2046_v10, %v2047_v18  ;;  %v5158_v10 = vld [vmem:[%s7983_s3 + $0x18] sm:$0xff] }
 0x1f3   : > { %2736 = vmatmul.bf16.gmra.mxu3 %v2194_v47  ;;  %v8116_v47 = vld [vmem:[#allocation6_spill] sm:$0xff] }
 0x1f4   : > { %v1723_v25 = vshll.u32 %v8116_v47, 16  ;;  %v1721_v62 = vor.u32 %v1720_v29, %v1716_v17  ;;  %v2049_v29 = vrot.slane %v6727_v0, 1  ;;  %v8122_v47 = vld [vmem:[#allocation12_spill] sm:$0xff]  ;;  %v2052_v0 = vrot.slane %v6758_v6, 1 }
 0x1f6   : > { %v1725_v63 = vrot.slane %v1723_v25, 1  ;;  %v2050_v25 = vrot.slane %v8122_v47, 1 }
 0x1f8   : > { %v7026_v60 = vpop.f32.mrf.mxu0  ;;  %v2051_v34 = vsel %vm1642_vm5, %v2049_v29, %v2050_v25  ;;  %v8126_v29 = vld [vmem:[#allocation19_spill] sm:$0xff] }
 0x1f9   : > { %v2062_v47 = vrot.slane %v8126_v29, 1 }
 0x1fb   : > { %2584 = vmatmul.bf16.gmra.mxu0 %v2099_v11  ;;  %2633 = vmatmul.bf16.gmra.mxu1 %v2130_v39  ;;  %v1726_v11 = vsel %vm1481_vm3, %v1721_v62, %v1725_v63  ;;  %v5169_v62 = vld [vmem:[%s7983_s3 + $0x70] sm:$0xff] }
 0x1fc   : > { %v2150_v39 = vsel %vm2073_vm6, %v1726_v11, %v8117_v24  ;;  %3932 = vmatpush.bf16.msrb.mxu2 %v5169_v62  ;;  %v5161_v63 = vld [vmem:[%s7983_s3 + $0x30] sm:$0xff]  ;;  %v8123_v11 = vld [vmem:[#allocation13_spill] sm:$0xff] }
 0x1fd   : > { %3883 = vmatpush.bf16.msrb.mxu1 %v5161_v63  ;;  %v2053_v24 = vrot.slane %v8123_v11, 1  ;;  %v2063_v63 = vsel %vm1642_vm5, %v2061_v32, %v2062_v47  ;;  %v5171_v47 = vld [vmem:[%s7983_s3 + $0x80] sm:$0xff] }
 0x1ff   : > { %v2016_v23 = vpop.permute.xlu2 %2015  ;;  %v2054_v20 = vsel %vm1642_vm5, %v2052_v0, %v2053_v24  ;;  %v5177_v0 = vld [vmem:[%s7983_s3 + $0xb0] sm:$0xff] }
 0x200   : > { %v7038_v16 = vpop.f32.mrf.mxu0  ;;  %v2203_v30 = vsel %vm2073_vm6, %v6890_v27, %v2016_v23  ;;  %3933 = vmatpush.bf16.msrb.mxu2 %v5168_v9  ;;  %3981 = vmatpush.bf16.msra.mxu3 %v5177_v0  ;;  %v5176_v27 = vld [vmem:[%s7983_s3 + $0xa8] sm:$0xff]  ;;  %v2068_v0 = vrot.slane %v6974_v57, 1  ;;  %v5209_v57 = vld [vmem:[%s7983_s3 + $0x1b0] sm:$0xff] }
 0x201   : > { %3884 = vmatpush.bf16.msrb.mxu1 %v5160_v36  ;;  %v5175_v36 = vld [vmem:[%s7983_s3 + $0xa0] sm:$0xff] }
 0x202   : > { %2702 = vmatmul.bf16.gmra.mxu2 %v2178_v8  ;;  %v1728_v8 = vshrl.u32 %v8118_v21, 16 }
 0x203   : > { %2741 = vmatmul.bf16.gmra.mxu3 %v2197_v42 }
 0x204   : > { %v1733_v35 = vor.u32 %v1732_v56, %v1728_v8  ;;  %v5167_v56 = vld [vmem:[%s7983_s3 + $0x60] sm:$0xff]  ;;  %3982 = vmatpush.bf16.msra.mxu3 %v5176_v27  ;;  %v5210_v27 = vld [vmem:[%s7983_s3 + $0x1b8] sm:$0xff] }
 0x205   : > { %3934 = vmatpush.bf16.msrb.mxu2 %v5167_v56  ;;  %v2064_v56 = vrot.slane %v6924_v2, 1 }
 0x206   : > { %v1738_v28 = vsel %vm1481_vm3, %v1733_v35, %v1737_v53  ;;  %v8124_v35 = vld [vmem:[#allocation15_spill] sm:$0xff]  ;;  %v2604_v25 = vpop.f32.mrf.mxu1 }
 0x207   : > { %v2154_v59 = vsel %vm2073_vm6, %v1738_v28, %v6910_v1  ;;  %v2056_v53 = vrot.slane %v8124_v35, 1 }
 0x208   : > { %v7044_v41 = vpop.f32.mrf.mxu0  ;;  %3983 = vmatpush.bf16.msra.mxu3 %v5175_v36 }
 0x20b   : > { %2589 = vmatmul.bf16.gmra.mxu0 %v2102_v19 }
 0x20d   : > { %v2018_v42 = vpop.permute.xlu2 %2017 }
 0x20e   : > { %v2206_v19 = vsel %vm2073_vm6, %v6924_v2, %v2018_v42  ;;  %v2055_v42 = vrot.slane %v6799_v45, 1  ;;  %v5166_v45 = vld [vmem:[%s7983_s3 + $0x58] sm:$0xff]  ;;  %v2606_v11 = vpop.f32.mrf.mxu1  ;;  %v7237_v2 = vld [vmem:[%s7982_s2] ss:$0 sm:$0xff] }
 0x20f   : > { %3935 = vmatpush.bf16.msrb.mxu2 %v5166_v45 }
 0x210   : > { %v7057_v54 = vpop.f32.mrf.mxu0  ;;  %v2057_v28 = vsel %vm1642_vm5, %v2055_v42, %v2056_v53  ;;  %v8127_v42 = vld [vmem:[#allocation20_spill] sm:$0xff]  ;;  %v5174_v53 = vld [vmem:[%s7983_s3 + $0x98] sm:$0xff] }
 0x211   : > { %v2065_v35 = vrot.slane %v8127_v42, 1  ;;  %3984 = vmatpush.bf16.msra.mxu3 %v5174_v53 }
 0x212   : > { %2707 = vmatmul.bf16.gmra.mxu2 %v2182_v50  ;;  %v2045_v50 = vsel %vm1642_vm5, %v2043_v46, %v2044_v14  ;;  %v2058_v14 = vrot.slane %v8113_v51, 1  ;;  %v8125_v46 = vld [vmem:[#allocation17_spill] sm:$0xff]  ;;  %v5157_v51 = vld [vmem:[%s7983_s3 + $0x10] sm:$0xff] }
 0x213   : > { %2746 = vmatmul.bf16.gmra.mxu3 %v2200_v5  ;;  %v2066_v45 = vsel %vm1642_vm5, %v2064_v56, %v2065_v35  ;;  %v7273_v56 = vstv %s4789_s10  ;;  %s5081_s10 = sshll.u32 %s4367_s9, 3  ;;  %s5660_s9 = scalar_lea.hbm %s7985_s5, 512 }
 0x214   : > { %vm2862_vm7 = vcmp.ge.s32.totalorder %v7273_v56, 0  ;;  %vm2872_vm8 = vcmp.lt.s32.totalorder %v7273_v56, 16  ;;  %s4369_s22 = scalar_lea.hbm %s7985_s5, %s5081_s10 }
 0x215   : > { %v7105_v12 = vpop.f32.mrf.mxu3  ;;  %vm7286_vm9 = vmand %vm2862_vm7, %vm2872_vm8  ;;  %s4372_s15 = sshll.u32 %s4369_s22, 4  ;;  %s4373_s15 = int_to_ptr.hbm [resolvable:$true] %s4372_s15 }
 0x216   : > { %s5654_s17 = sshra.s32 %s4373_s15, 4  ;;  %s5655_s17 = int_to_ptr.hbm [resolvable:$true] %s5654_s17 }
 0x217   : > { %s5656_s26 = scalar_lea.hbm %s5655_s17, 128  ;;  %p5661_p4 = scmp.lt.s32.totalorder %s5655_s17, %s7985_s5 }
 0x218   : > { %v7065_v61 = vpop.f32.mrf.mxu0  ;;  %p5657_p0 = scmp.ne.s32.totalorder %s5655_s17, %s5656_s26  ;;  %p5662_p5 = scmp.lt.s32.totalorder %s5660_s9, %s5656_s26 }
 0x21a   : > { %p5658_p1 = pnand %p5657_p0, %p5822_p3  ;;  %p5663_p6 = por %p5662_p5, %p5661_p4 }
 0x21b   : > { %2662 = vmatmul.bf16.vlgmr.msrb.gmra.mxu0 %v2146_v7  ;;  %v2020_v37 = vpop.permute.xlu2 %2019 }
 0x21c   : > { %v2209_v33 = vsel %vm2073_vm6, %v6968_v52, %v2020_v37  ;;  %4176 = vmatpush.bf16.msrb.mxu0 %v5210_v27  ;;  %v2071_v27 = vrot.slane %v6951_v38, 1  ;;  %p5659_p2 = pneg %p5658_p1 }
 0x21d   : > { %v7114_v15 = vpop.f32.mrf.mxu3 }
 0x21e   : > { %p5664_p7 = pnand %p5663_p6, %p5659_p2 }
 0x220   : > { %v7072_v55 = vpop.f32.mrf.mxu0  ;;  %4177 = vmatpush.bf16.msrb.mxu0 %v5209_v57  ;;  %v2853_v57 = vadd.s32 1, %v7273_v56 }
 0x222   : > { %vm2863_vm10 = vcmp.ge.s32.totalorder %v2853_v57, 0  ;;  %vm2873_vm11 = vcmp.lt.s32.totalorder %v2853_v57, 16 }
 0x223   : > { %2751 = vmatmul.bf16.gmra.mxu3 %v2203_v30  ;;  %vm7336_vm12 = vmand %vm2863_vm10, %vm2873_vm11 }
 0x228   : > { %v7080_v22 = vpop.f32.mrf.mxu0 }
 0x22b   : > { %2667 = vmatmul.bf16.gmra.mxu0 %v2150_v39  ;;  %v7144_v39 = vpop.f32.mrf.mxu3 }
 0x22f   : > { %v2022_v1 = vpop.permute.xlu0 %2021 }
 0x230   : > { %v7087_v3 = vpop.f32.mrf.mxu0  ;;  %v2212_v5 = vsel %vm2073_vm6, %v6947_v4, %v2022_v1 }
 0x233   : > { %2756 = vmatmul.bf16.gmra.mxu3 %v2206_v19  ;;  %v7156_v6 = vpop.f32.mrf.mxu3 }
 0x238   : > { %v7092_v26 = vpop.f32.mrf.mxu0 }
 0x23b   : > { %2672 = vmatmul.bf16.gmra.mxu0 %v2154_v59  ;;  %v5159_v59 = vld [vmem:[%s7983_s3 + $0x20] sm:$0xff]  ;;  %v7171_v37 = vpop.f32.mrf.mxu3 }
 0x23c   : > { %3885 = vmatpush.bf16.msrb.mxu1 %v5159_v59 }
 0x240   : > { %v7096_v48 = vpop.f32.mrf.mxu0  ;;  %3886 = vmatpush.bf16.msrb.mxu1 %v5158_v10  ;;  %v5172_v10 = vld [vmem:[%s7983_s3 + $0x88] sm:$0xff] }
 0x243   : > { %2761 = vmatmul.bf16.gmra.mxu3 %v2209_v33  ;;  %v7179_v40 = vpop.f32.mrf.mxu3 }
 0x244   : > { %3887 = vmatpush.bf16.msrb.mxu1 %v5157_v51  ;;  %v5163_v51 = vld [vmem:[%s7983_s3 + $0x40] sm:$0xff] }
 0x248   : > { %v7102_v43 = vpop.f32.mrf.mxu0 }
 0x24b   : > { %4779 = vmatmul.msk.bf16.vlgmr.msra.gmra.mxu0 %vm2073_vm6, %v2045_v50  ;;  %v2059_v50 = vrot.slane %v8125_v46, 1  ;;  %v2722_v31 = vpop.f32.mrf.mxu3  ;;  %v5173_v46 = vld [vmem:[%s7983_s3 + $0x90] sm:$0xff] }
 0x24c   : > { %3985 = vmatpush.bf16.msra.mxu3 %v5173_v46 }
 0x250   : > { %v7108_v44 = vpop.f32.mrf.mxu0  ;;  %3986 = vmatpush.bf16.msra.mxu3 %v5172_v10  ;;  %v5194_v10 = vld [vmem:[%s7983_s3 + $0x138] sm:$0xff] }
 0x253   : > { %2766 = vmatmul.bf16.gmra.mxu3 %v2212_v5  ;;  %v2060_v5 = vsel %vm1642_vm5, %v2058_v14, %v2059_v50  ;;  %v5156_v14 = vld [vmem:[%s7983_s3 + $0x8] sm:$0xff] }
 0x254   : > { %3888 = vmatpush.bf16.msrb.mxu1 %v5156_v14  ;;  %3987 = vmatpush.bf16.msra.mxu3 %v5171_v47 }
 0x258   : > { %v7116_v7 = vpop.f32.mrf.mxu0  ;;  %3889 = vmatpush.bf16.msrb.mxu1 %v5155_v49  ;;  %v5207_v49 = vld [vmem:[%s7983_s3 + $0x1a0] sm:$0xff] }
 0x25b   : > { %4780 = vmatmul.msk.bf16.gmra.mxu0 %vm2073_vm6, %v2048_v13  ;;  %v5165_v13 = vld [vmem:[%s7983_s3 + $0x50] sm:$0xff] }
 0x25c   : > { %3936 = vmatpush.bf16.msrb.mxu2 %v5165_v13 }
 0x260   : > { %v7123_v17 = vpop.f32.mrf.mxu0 }
 0x268   : > { %v7130_v23 = vpop.f32.mrf.mxu0 }
 0x26b   : > { %4781 = vmatmul.msk.bf16.gmra.mxu0 %vm2073_vm6, %v2051_v34  ;;  %v7201_v34 = vpop.f32.mrf.mxu3 }
 0x270   : > { %v7140_v30 = vpop.f32.mrf.mxu0 }
 0x273   : > { %v7218_v9 = vpop.f32.mrf.mxu3 }
 0x278   : > { %v7146_v21 = vpop.f32.mrf.mxu0 }
 0x27b   : > { %4782 = vmatmul.msk.bf16.gmra.mxu0 %vm2073_vm6, %v2054_v20  ;;  %v5164_v20 = vld [vmem:[%s7983_s3 + $0x48] sm:$0xff]  ;;  %v7243_v50 = vpop.f32.mrf.mxu3 }
 0x27c   : > { %3937 = vmatpush.bf16.msrb.mxu2 %v5164_v20 }
 0x280   : > { %v7158_v8 = vpop.f32.mrf.mxu0  ;;  %3938 = vmatpush.bf16.msrb.mxu2 %v5163_v51  ;;  %v5186_v51 = vld [vmem:[%s7983_s3 + $0xf8] sm:$0xff] }
 0x281   : > { %4029 = vmatpush.bf16.msra.mxu1 %v5186_v51 }
 0x284   : > { %4078 = vmatpush.bf16.msra.mxu2 %v5194_v10 }
 0x288   : > { %v7165_v19 = vpop.f32.mrf.mxu0 }
 0x28b   : > { %4783 = vmatmul.msk.bf16.gmra.mxu0 %vm2073_vm6, %v2057_v28  ;;  %v2609_v28 = vpop.f32.mrf.mxu1 }
 0x290   : > { %v7174_v33 = vpop.f32.mrf.mxu0 }
 0x293   : > { %v7258_v29 = vpop.f32.mrf.mxu1 }
 0x298   : > { %v2663_v1 = vpop.f32.mrf.mxu0 }
 0x29b   : > { %4784 = vmatmul.msk.bf16.gmra.mxu0 %vm2073_vm6, %v2060_v5  ;;  %v2546_v5 = vadd.f32 %v7237_v2, %v7026_v60 }
 0x29d   : > { %v2605_v32 = vadd.f32 %v2604_v25, %v2546_v5  ;;  %v7269_v25 = vpop.f32.mrf.mxu3 }
 0x29f   : > { %v2664_v60 = vadd.f32 %v2663_v1, %v2605_v32  ;;  %v2548_v1 = vadd.f32 %v7237_v2, %v7038_v16  ;;  %v2614_v16 = vpop.f32.mrf.mxu1 }
 0x2a0   : > { %v7188_v18 = vpop.f32.mrf.mxu0 }
 0x2a1   : > { %v2723_v20 = vadd.f32 %v2722_v31, %v2664_v60  ;;  %v2607_v42 = vadd.f32 %v2606_v11, %v2548_v1  ;;  %v5208_v31 = vld [vmem:[%s7983_s3 + $0x1a8] sm:$0xff]  ;;  %v5206_v1 = vld [vmem:[%s7983_s3 + $0x198] sm:$0xff] }
 0x2a2   : > { %4178 = vmatpush.bf16.msrb.mxu0 %v5208_v31  ;;  %v5205_v31 = vld [vmem:[%s7983_s3 + $0x190] sm:$0xff] }
 0x2a3   : > { %v2666_v53 = vadd.f32 %v7188_v18, %v2607_v42  ;;  %v2551_v18 = vadd.f32 %v7237_v2, %v7044_v41 }
 0x2a5   : > { %v2725_v11 = vadd.f32 %v7201_v34, %v2666_v53  ;;  %v7293_v46 = vpop.f32.mrf.mxu3  ;;  %v2610_v32 = vadd.f32 %v2609_v28, %v2551_v18 }
 0x2a6   : > { %4179 = vmatpush.bf16.msrb.mxu0 %v5207_v49 }
 0x2a8   : > { %v7203_v62 = vpop.f32.mrf.mxu0 }
 0x2a9   : > { %v2669_v60 = vadd.f32 %v7203_v62, %v2610_v32  ;;  %v2553_v62 = vadd.f32 %v7237_v2, %v7057_v54 }
 0x2aa   : > { %4180 = vmatpush.bf16.msrb.mxu0 %v5206_v1 }
 0x2ab   : > { %4785 = vmatmul.msk.bf16.gmra.mxu0 %vm2073_vm6, %v2063_v63  ;;  %v2067_v63 = vrot.slane %v6968_v52, 1 }
 0x2ad   : > { %v2069_v52 = vsel %vm1642_vm5, %v2067_v63, %v2068_v0  ;;  %v2070_v0 = vrot.slane %v6947_v4, 1  ;;  %v7320_v4 = vpop.f32.mrf.mxu2  ;;  %v7327_v54 = vpop.f32.mrf.mxu3 }
 0x2ae   : > { %4181 = vmatpush.bf16.msrb.mxu0 %v5205_v31 }
 0x2af   : > { %v2072_v53 = vsel %vm1642_vm5, %v2070_v0, %v2071_v27  ;;  %v5193_v0 = vld [vmem:[%s7983_s3 + $0x130] sm:$0xff] }
 0x2b0   : > { %v7213_v24 = vpop.f32.mrf.mxu0  ;;  %4079 = vmatpush.bf16.msra.mxu2 %v5193_v0 }
 0x2b5   : > { %v7354_v1 = vpop.f32.mrf.mxu2 }
 0x2b8   : > { %v7228_v59 = vpop.f32.mrf.mxu0 }
 0x2bb   : > { %4786 = vmatmul.msk.bf16.gmra.mxu0 %vm2073_vm6, %v2066_v45 }
 0x2c0   : > { %v7250_v13 = vpop.f32.mrf.mxu0 }
 0x2c8   : > { %v2781_v36 = vpop.f32.mrf.mxu0 }
 0x2c9   : > { %v2782_v35 = vadd.f32 %v2781_v36, %v2723_v20  ;;  %v7314_v20 = vpop.f32.mrf.mxu1 }
 0x2cb   : > { %4787 = vmatmul.msk.bf16.gmra.mxu0 %vm2073_vm6, %v2069_v52  ;;  %v2831_v45 = vmax.f32 %v2782_v35, 0.0  ;;  %v2728_v52 = vadd.f32 %v7218_v9, %v2669_v60 }
 0x2cd   : > { %v2912_v41 = vsel %vm7286_vm9, %v2831_v45, 0.0  ;;  %v2612_v45 = vadd.f32 %v7258_v29, %v2553_v62  ;;  %v2556_v29 = vadd.f32 %v7237_v2, %v7065_v61  ;;  %v5185_v61 = vld [vmem:[%s7983_s3 + $0xf0] sm:$0xff] }
 0x2ce   : > { %v2932_v63 = vpack.c.bf16 %v2912_v41, %v2912_v41  ;;  %4030 = vmatpush.bf16.msra.mxu1 %v5185_v61 }
 0x2cf   : > { %v2671_v18 = vadd.f32 %v7213_v24, %v2612_v45  ;;  %v2615_v41 = vadd.f32 %v2614_v16, %v2556_v29 }
 0x2d0   : > { %v2783_v5 = vpop.f32.mrf.mxu0  ;;  %v2968_v38 = vunpack.c.l.b16 %v2932_v63 }
 0x2d1   : > { %v2784_v34 = vadd.f32 %v2783_v5, %v2725_v11  ;;  %v5204_v5 = vld [vmem:[%s7983_s3 + $0x188] sm:$0xff]  ;;  %v2730_v32 = vadd.f32 %v7243_v50, %v2671_v18  ;;  %v5203_v50 = vld [vmem:[%s7983_s3 + $0x180] sm:$0xff] }
 0x2d2   : > { %4182 = vmatpush.bf16.msrb.mxu0 %v5204_v5  ;;  %v2854_v5 = vadd.s32 2, %v7273_v56 }
 0x2d3   : > { %v2832_v47 = vmax.f32 %v2784_v34, 0.0  ;;  %v2619_v34 = vpop.f32.mrf.mxu1 }
 0x2d4   : > { %vm2864_vm13 = vcmp.ge.s32.totalorder %v2854_v5, 0  ;;  %vm2874_vm14 = vcmp.lt.s32.totalorder %v2854_v5, 16 }
 0x2d5   : > { %v2913_v28 = vsel %vm7286_vm9, %v2832_v47, 0.0  ;;  %vm7377_vm15 = vmand %vm2864_vm13, %vm2874_vm14 }
 0x2d6   : > { %v2933_v36 = vpack.c.bf16 %v2913_v28, %v2913_v28  ;;  %v2674_v28 = vadd.f32 %v7228_v59, %v2615_v41  ;;  %4183 = vmatpush.bf16.msrb.mxu0 %v5203_v50  ;;  %v2561_v50 = vadd.f32 %v7237_v2, %v7080_v22  ;;  %v5192_v22 = vld [vmem:[%s7983_s3 + $0x128] sm:$0xff] }
 0x2d7   : > { %4080 = vmatpush.bf16.msra.mxu2 %v5192_v22 }
 0x2d8   : > { %v2969_v42 = vunpack.c.l.b16 %v2933_v36  ;;  %v2786_v35 = vpop.f32.mrf.mxu0 }
 0x2d9   : > { %v2787_v14 = vadd.f32 %v2786_v35, %v2728_v52  ;;  %v7359_v35 = vpop.f32.mrf.mxu3 }
 0x2da   : > { %v2984_v9 = vpack.c.b16 %v2969_v42, %v2968_v38 }
 0x2db   : > { %4788 = vmatmul.msk.bf16.gmra.mxu0 %vm2073_vm6, %v2072_v53  ;;  %v2833_v10 = vmax.f32 %v2787_v14, 0.0 }
 0x2dc   : > { %v2993_v11 = vshrl.u32 %v2984_v9, 16  ;;  %v2996_v24 = vshll.u32 %v2984_v9, 16  ;;  %v2558_v9 = vadd.f32 %v7237_v2, %v7072_v55 }
 0x2dd   : > { %v2914_v16 = vsel %vm7336_vm12, %v2833_v10, 0.0 }
 0x2de   : > { %v2995_v49 = vrot.slane %v2993_v11, 7  ;;  %v2934_v53 = vpack.c.bf16 %v2914_v16, %v2914_v16  ;;  %v2733_v11 = vadd.f32 %v7269_v25, %v2674_v28  ;;  %v2617_v51 = vadd.f32 %v7314_v20, %v2558_v9  ;;  %v7371_v25 = vpop.f32.mrf.mxu2 }
 0x2e0   : > { %v2788_v60 = vpop.f32.mrf.mxu0  ;;  %v2998_v47 = vor.u32 %v2996_v24, %v2995_v49  ;;  %v3072_v63 = vsel %vm6360_vm4, %v2995_v49, 0  ;;  %v2970_v49 = vunpack.c.l.b16 %v2934_v53  ;;  %v2676_v55 = vadd.f32 %v7250_v13, %v2617_v51 }
 0x2e1   : > { %v2789_v27 = vadd.f32 %v2788_v60, %v2730_v32  ;;  %v3233_v62 = vrot.slane %v3072_v63, 1  ;;  %v3120_v42 = vshll.u32 %v3072_v63, 16  ;;  %v7375_v16 = vpop.f32.mrf.mxu3  ;;  %v2620_v13 = vadd.f32 %v2619_v34, %v2561_v50 }
 0x2e2   : > { %v3064_v36 = vsel %vm6360_vm4, 0, %v2998_v47  ;;  %v2621_v47 = vpop.f32.mrf.mxu1 }
 0x2e3   : > { %v2834_v52 = vmax.f32 %v2789_v27, 0.0  ;;  %v3115_v57 = vshll.u32 %v3064_v36, 16  ;;  %v3232_v38 = vrot.slane %v3064_v36, 1  ;;  %3890 = vmatmul.bf16.vlgmr.msrb.gmra.mxu1 %v3064_v36  ;;  %v3113_v45 = vshrl.u32 %v3064_v36, 16 }
 0x2e4   : > { %v3122_v29 = vrot.slane %v3120_v42, 1  ;;  %v2735_v36 = vadd.f32 %v7293_v46, %v2676_v55 }
 0x2e5   : > { %v2915_v31 = vsel %vm7336_vm12, %v2834_v52, 0.0  ;;  %v3117_v59 = vrot.slane %v3115_v57, 1  ;;  %v3234_v14 = vsel %vm1642_vm5, %v3232_v38, %v3233_v62  ;;  %v5184_v38 = vld [vmem:[%s7983_s3 + $0xe8] sm:$0xff] }
 0x2e6   : > { %v2935_v18 = vpack.c.bf16 %v2915_v31, %v2915_v31  ;;  %3988 = vmatmul.bf16.vlgmr.msra.gmra.mxu3 %v3234_v14  ;;  %4031 = vmatpush.bf16.msra.mxu1 %v5184_v38 }
 0x2e7   : > { %v3118_v10 = vor.u32 %v3117_v59, %v3113_v45 }
 0x2e8   : > { %v2971_v24 = vunpack.c.l.b16 %v2935_v18  ;;  %v2791_v32 = vpop.f32.mrf.mxu0  ;;  %v2679_v18 = vadd.f32 %v7320_v4, %v2620_v13 }
 0x2e9   : > { %v2792_v41 = vadd.f32 %v2791_v32, %v2733_v11  ;;  %v3123_v60 = vsel %vm1481_vm3, %v3118_v10, %v3122_v29  ;;  %v7408_v32 = vpop.f32.mrf.mxu2  ;;  %v7413_v55 = vpop.f32.mrf.mxu3 }
 0x2ea   : > { %v2985_v63 = vpack.c.b16 %v2971_v24, %v2970_v49  ;;  %3939 = vmatmul.bf16.vlgmr.msrb.gmra.mxu2 %v3123_v60  ;;  %v2624_v9 = vpop.f32.mrf.mxu1  ;;  %v2563_v24 = vadd.f32 %v7237_v2, %v7087_v3  ;;  %v2738_v4 = vadd.f32 %v7327_v54, %v2679_v18 }
 0x2eb   : > { %v2835_v61 = vmax.f32 %v2792_v41, 0.0  ;;  %v2855_v41 = vadd.s32 3, %v7273_v56 }
 0x2ec   : > { %v3000_v0 = vshrl.u32 %v2985_v63, 16  ;;  %v3003_v27 = vshll.u32 %v2985_v63, 16 }
 0x2ed   : > { %v2916_v42 = vsel %vm7377_vm15, %v2835_v61, 0.0  ;;  %vm2865_vm0 = vcmp.ge.s32.totalorder %v2855_v41, 0  ;;  %vm2875_vm1 = vcmp.lt.s32.totalorder %v2855_v41, 16 }
 0x2ee   : > { %v3002_v20 = vrot.slane %v3000_v0, 7  ;;  %v2936_v11 = vpack.c.bf16 %v2916_v42, %v2916_v42  ;;  %vm7422_vm2 = vmand %vm2865_vm0, %vm2875_vm1 }
 0x2f0   : > { %v2793_v62 = vpop.f32.mrf.mxu0  ;;  %v3005_v52 = vor.u32 %v3003_v27, %v3002_v20  ;;  %v3073_v57 = vsel %vm6360_vm4, %v3002_v20, 0  ;;  %v2972_v0 = vunpack.c.l.b16 %v2936_v11  ;;  %v2622_v20 = vadd.f32 %v2621_v47, %v2563_v24 }
 0x2f1   : > { %v2794_v53 = vadd.f32 %v2793_v62, %v2735_v36  ;;  %v3236_v34 = vrot.slane %v3073_v57, 1  ;;  %v3132_v14 = vshll.u32 %v3073_v57, 16  ;;  %v2566_v62 = vadd.f32 %v7237_v2, %v7092_v26  ;;  %v7427_v42 = vpop.f32.mrf.mxu2  ;;  %v5191_v26 = vld [vmem:[%s7983_s3 + $0x120] sm:$0xff] }
 0x2f2   : > { %v7394_v46 = vsel %vm6360_vm4, 0, %v3005_v52  ;;  %v2681_v36 = vadd.f32 %v7354_v1, %v2622_v20  ;;  %v2626_v52 = vpop.f32.mrf.mxu1  ;;  %4081 = vmatpush.bf16.msra.mxu2 %v5191_v26 }
 0x2f3   : > { %v2836_v31 = vmax.f32 %v2794_v53, 0.0  ;;  %3895 = vmatmul.bf16.gmra.mxu1 %v7394_v46  ;;  %v3235_v45 = vrot.slane %v7394_v46, 1  ;;  %v3127_v59 = vshll.u32 %v7394_v46, 16  ;;  %v3125_v29 = vshrl.u32 %v7394_v46, 16 }
 0x2f4   : > { %v3134_v63 = vrot.slane %v3132_v14, 1  ;;  %v2740_v38 = vadd.f32 %v7359_v35, %v2681_v36  ;;  %v2625_v53 = vadd.f32 %v2624_v9, %v2566_v62  ;;  %v7439_v14 = vpop.f32.mrf.mxu3 }
 0x2f5   : > { %v2917_v5 = vsel %vm7377_vm15, %v2836_v31, 0.0  ;;  %v7403_v10 = vsel %vm1642_vm5, %v3235_v45, %v3236_v34  ;;  %v3129_v49 = vrot.slane %v3127_v59, 1  ;;  %v5183_v45 = vld [vmem:[%s7983_s3 + $0xe0] sm:$0xff] }
 0x2f6   : > { %v2937_v51 = vpack.c.bf16 %v2917_v5, %v2917_v5  ;;  %3993 = vmatmul.bf16.gmra.mxu3 %v7403_v10  ;;  %4032 = vmatpush.bf16.msra.mxu1 %v5183_v45  ;;  %v2684_v24 = vadd.f32 %v7371_v25, %v2625_v53  ;;  %v2856_v25 = vadd.s32 4, %v7273_v56 }
 0x2f7   : > { %v3130_v60 = vor.u32 %v3129_v49, %v3125_v29 }
 0x2f8   : > { %v2973_v61 = vunpack.c.l.b16 %v2937_v51  ;;  %v2796_v50 = vpop.f32.mrf.mxu0  ;;  %vm2866_vm6 = vcmp.ge.s32.totalorder %v2856_v25, 0  ;;  %vm2876_vm7 = vcmp.lt.s32.totalorder %v2856_v25, 16 }
 0x2f9   : > { %v2797_v27 = vadd.f32 %v2796_v50, %v2738_v4  ;;  %v7416_v3 = vsel %vm1481_vm3, %v3130_v60, %v3134_v63  ;;  %v2743_v50 = vadd.f32 %v7375_v16, %v2684_v24  ;;  %v2690_v47 = vpop.f32.mrf.mxu2  ;;  %vm7468_vm8 = vmand %vm2866_vm6, %vm2876_vm7 }
 0x2fa   : > { %v2986_v28 = vpack.c.b16 %v2973_v61, %v2972_v0  ;;  %3944 = vmatmul.bf16.gmra.mxu2 %v7416_v3  ;;  %v2568_v0 = vadd.f32 %v7237_v2, %v7096_v48 }
 0x2fb   : > { %v2837_v13 = vmax.f32 %v2797_v27, 0.0 }
 0x2fc   : > { %v3007_v54 = vshrl.u32 %v2986_v28, 16  ;;  %v3010_v22 = vshll.u32 %v2986_v28, 16  ;;  %v2629_v28 = vpop.f32.mrf.mxu1  ;;  %v2627_v62 = vadd.f32 %v2626_v52, %v2568_v0  ;;  %v2749_v16 = vpop.f32.mrf.mxu3 }
 0x2fd   : > { %v2918_v59 = vsel %vm7422_vm2, %v2837_v13, 0.0 }
 0x2fe   : > { %v3009_v57 = vrot.slane %v3007_v54, 7  ;;  %v2938_v51 = vpack.c.bf16 %v2918_v59, %v2918_v59  ;;  %v2686_v53 = vadd.f32 %v7408_v32, %v2627_v62  ;;  %v5190_v32 = vld [vmem:[%s7983_s3 + $0x118] sm:$0xff] }
 0x2ff   : > { %4082 = vmatpush.bf16.msra.mxu2 %v5190_v32 }
 0x300   : > { %v2798_v34 = vpop.f32.mrf.mxu0  ;;  %v3012_v31 = vor.u32 %v3010_v22, %v3009_v57  ;;  %v3074_v1 = vsel %vm6360_vm4, %v3009_v57, 0  ;;  %v2974_v54 = vunpack.c.l.b16 %v2938_v51  ;;  %v2745_v45 = vadd.f32 %v7413_v55, %v2686_v53 }
 0x301   : > { %v2799_v35 = vadd.f32 %v2798_v34, %v2740_v38  ;;  %v3239_v18 = vrot.slane %v3074_v1, 1  ;;  %v3144_v49 = vshll.u32 %v3074_v1, 16  ;;  %v2693_v0 = vpop.f32.mrf.mxu2 }
 0x302   : > { %v7443_v9 = vsel %vm6360_vm4, 0, %v3012_v31  ;;  %v2571_v31 = vadd.f32 %v7237_v2, %v7102_v43  ;;  %v5182_v43 = vld [vmem:[%s7983_s3 + $0xd8] sm:$0xff] }
 0x303   : > { %v2838_v11 = vmax.f32 %v2799_v35, 0.0  ;;  %3900 = vmatmul.bf16.gmra.mxu1 %v7443_v9  ;;  %4184 = vmatmul.bf16.vlgmr.msrb.gmra.mxu0 %v7443_v9  ;;  %v3238_v5 = vrot.slane %v7443_v9, 1  ;;  %v3139_v29 = vshll.u32 %v7443_v9, 16  ;;  %v3137_v60 = vshrl.u32 %v7443_v9, 16 }
 0x304   : > { %v3146_v27 = vrot.slane %v3144_v49, 1  ;;  %v2630_v59 = vadd.f32 %v2629_v28, %v2571_v31  ;;  %v2631_v49 = vpop.f32.mrf.mxu1  ;;  %4033 = vmatpush.bf16.msra.mxu1 %v5182_v43 }
 0x305   : > { %v2919_v4 = vsel %vm7422_vm2, %v2838_v11, 0.0  ;;  %v7453_v41 = vsel %vm1642_vm5, %v3238_v5, %v3239_v18  ;;  %v3141_v63 = vrot.slane %v3139_v29, 1 }
 0x306   : > { %v2939_v61 = vpack.c.bf16 %v2919_v4, %v2919_v4  ;;  %3998 = vmatmul.bf16.gmra.mxu3 %v7453_v41 }
 0x307   : > { %v3142_v20 = vor.u32 %v3141_v63, %v3137_v60 }
 0x308   : > { %v2975_v36 = vunpack.c.l.b16 %v2939_v61  ;;  %v2801_v13 = vpop.f32.mrf.mxu0  ;;  %v2689_v61 = vadd.f32 %v7427_v42, %v2630_v59  ;;  %v2857_v42 = vadd.s32 5, %v7273_v56 }
 0x309   : > { %v2802_v57 = vadd.f32 %v2801_v13, %v2743_v50  ;;  %v7462_v22 = vsel %vm1481_vm3, %v3142_v20, %v3146_v27 }
 0x30a   : > { %v2987_v48 = vpack.c.b16 %v2975_v36, %v2974_v54  ;;  %3949 = vmatmul.bf16.gmra.mxu2 %v7462_v22  ;;  %v2573_v54 = vadd.f32 %v7237_v2, %v7108_v44  ;;  %v2752_v36 = vpop.f32.mrf.mxu3  ;;  %v2748_v62 = vadd.f32 %v7439_v14, %v2689_v61  ;;  %vm2867_vm9 = vcmp.ge.s32.totalorder %v2857_v42, 0 }
 0x30b   : > { %v2839_v34 = vmax.f32 %v2802_v57, 0.0  ;;  %vm2877_vm10 = vcmp.lt.s32.totalorder %v2857_v42, 16 }
 0x30c   : > { %v3014_v38 = vshrl.u32 %v2987_v48, 16  ;;  %v3017_v52 = vshll.u32 %v2987_v48, 16  ;;  %v2632_v31 = vadd.f32 %v2631_v49, %v2573_v54  ;;  %v2634_v44 = vpop.f32.mrf.mxu1  ;;  %vm7509_vm11 = vmand %vm2867_vm9, %vm2877_vm10 }
 0x30d   : > { %v2920_v5 = vsel %vm7468_vm8, %v2839_v34, 0.0 }
 0x30e   : > { %v3016_v1 = vrot.slane %v3014_v38, 7  ;;  %v2940_v50 = vpack.c.bf16 %v2920_v5, %v2920_v5  ;;  %v2691_v14 = vadd.f32 %v2690_v47, %v2632_v31  ;;  %v5189_v47 = vld [vmem:[%s7983_s3 + $0x110] sm:$0xff] }
 0x30f   : > { %4083 = vmatpush.bf16.msra.mxu2 %v5189_v47 }
 0x310   : > { %v2803_v35 = vpop.f32.mrf.mxu0  ;;  %v3019_v18 = vor.u32 %v3017_v52, %v3016_v1  ;;  %v3075_v11 = vsel %vm6360_vm4, %v3016_v1, 0  ;;  %v2976_v38 = vunpack.c.l.b16 %v2940_v50  ;;  %v2750_v5 = vadd.f32 %v2749_v16, %v2691_v14 }
 0x311   : > { %v2804_v29 = vadd.f32 %v2803_v35, %v2745_v45  ;;  %v3242_v24 = vrot.slane %v3075_v11, 1  ;;  %v3156_v63 = vshll.u32 %v3075_v11, 16  ;;  %v2576_v35 = vadd.f32 %v7237_v2, %v7116_v7  ;;  %v5181_v7 = vld [vmem:[%s7983_s3 + $0xd0] sm:$0xff] }
 0x312   : > { %v7485_v55 = vsel %vm6360_vm4, 0, %v3019_v18  ;;  %v2695_v18 = vpop.f32.mrf.mxu2  ;;  %v2754_v49 = vpop.f32.mrf.mxu3  ;;  %4034 = vmatpush.bf16.msra.mxu1 %v5181_v7 }
 0x313   : > { %v2840_v51 = vmax.f32 %v2804_v29, 0.0  ;;  %3905 = vmatmul.bf16.gmra.mxu1 %v7485_v55  ;;  %4189 = vmatmul.bf16.gmra.mxu0 %v7485_v55  ;;  %v3241_v4 = vrot.slane %v7485_v55, 1  ;;  %v3151_v60 = vshll.u32 %v7485_v55, 16  ;;  %v3149_v27 = vshrl.u32 %v7485_v55, 16 }
 0x314   : > { %v3158_v48 = vrot.slane %v3156_v63, 1  ;;  %v2635_v29 = vadd.f32 %v2634_v44, %v2576_v35  ;;  %v5202_v44 = vld [vmem:[%s7983_s3 + $0x178] sm:$0xff] }
 0x315   : > { %v2921_v25 = vsel %vm7468_vm8, %v2840_v51, 0.0  ;;  %v7495_v20 = vsel %vm1642_vm5, %v3241_v4, %v3242_v24  ;;  %v3153_v28 = vrot.slane %v3151_v60, 1  ;;  %4127 = vmatpush.bf16.msrb.mxu3 %v5202_v44 }
 0x316   : > { %v2941_v13 = vpack.c.bf16 %v2921_v25, %v2921_v25  ;;  %4003 = vmatmul.bf16.gmra.mxu3 %v7495_v20  ;;  %v2694_v54 = vadd.f32 %v2693_v0, %v2635_v29  ;;  %v2858_v0 = vadd.s32 6, %v7273_v56 }
 0x317   : > { %v3154_v57 = vor.u32 %v3153_v28, %v3149_v27 }
 0x318   : > { %v2977_v53 = vunpack.c.l.b16 %v2941_v13  ;;  %v2806_v34 = vpop.f32.mrf.mxu0  ;;  %v2753_v31 = vadd.f32 %v2752_v36, %v2694_v54  ;;  %vm2868_vm12 = vcmp.ge.s32.totalorder %v2858_v0, 0  ;;  %vm2878_vm13 = vcmp.lt.s32.totalorder %v2858_v0, 16 }
 0x319   : > { %v2807_v1 = vadd.f32 %v2806_v34, %v2748_v62  ;;  %v7504_v52 = vsel %vm1481_vm3, %v3154_v57, %v3158_v48  ;;  %vm7553_vm14 = vmand %vm2868_vm12, %vm2878_vm13 }
 0x31a   : > { %v2988_v26 = vpack.c.b16 %v2977_v53, %v2976_v38  ;;  %3954 = vmatmul.bf16.gmra.mxu2 %v7504_v52  ;;  %v2578_v38 = vadd.f32 %v7237_v2, %v7123_v17  ;;  %v2636_v53 = vpop.f32.mrf.mxu1  ;;  %v2757_v43 = vpop.f32.mrf.mxu3 }
 0x31b   : > { %v2841_v59 = vmax.f32 %v2807_v1, 0.0 }
 0x31c   : > { %v3021_v45 = vshrl.u32 %v2988_v26, 16  ;;  %v3024_v32 = vshll.u32 %v2988_v26, 16 }
 0x31d   : > { %v2922_v60 = vsel %vm7509_vm11, %v2841_v59, 0.0 }
 0x31e   : > { %v3023_v11 = vrot.slane %v3021_v45, 7  ;;  %v2942_v13 = vpack.c.bf16 %v2922_v60, %v2922_v60  ;;  %v2698_v45 = vpop.f32.mrf.mxu2  ;;  %v5197_v60 = vld [vmem:[%s7983_s3 + $0x150] sm:$0xff] }
 0x320   : > { %v2808_v24 = vpop.f32.mrf.mxu0  ;;  %v3026_v51 = vor.u32 %v3024_v32, %v3023_v11  ;;  %v3076_v4 = vsel %vm6360_vm4, %v3023_v11, 0  ;;  %v2978_v14 = vunpack.c.l.b16 %v2942_v13  ;;  %v2637_v11 = vadd.f32 %v2636_v53, %v2578_v38 }
 0x321   : > { %v2809_v63 = vadd.f32 %v2808_v24, %v2750_v5  ;;  %v3245_v61 = vrot.slane %v3076_v4, 1  ;;  %v3168_v28 = vshll.u32 %v3076_v4, 16  ;;  %v5201_v5 = vld [vmem:[%s7983_s3 + $0x170] sm:$0xff]  ;;  %v2581_v4 = vadd.f32 %v7237_v2, %v7130_v23  ;;  %v5188_v23 = vld [vmem:[%s7983_s3 + $0x108] sm:$0xff] }
 0x322   : > { %v7525_v16 = vsel %vm6360_vm4, 0, %v3026_v51  ;;  %v2696_v24 = vadd.f32 %v2695_v18, %v2637_v11  ;;  %4128 = vmatpush.bf16.msrb.mxu3 %v5201_v5  ;;  %4084 = vmatpush.bf16.msra.mxu2 %v5188_v23  ;;  %v2759_v0 = vpop.f32.mrf.mxu3 }
 0x323   : > { %v2842_v50 = vmax.f32 %v2809_v63, 0.0  ;;  %3910 = vmatmul.bf16.gmra.mxu1 %v7525_v16  ;;  %4194 = vmatmul.bf16.gmra.mxu0 %v7525_v16  ;;  %v3244_v25 = vrot.slane %v7525_v16, 1  ;;  %v3163_v27 = vshll.u32 %v7525_v16, 16  ;;  %v3161_v57 = vshrl.u32 %v7525_v16, 16 }
 0x324   : > { %v3170_v26 = vrot.slane %v3168_v28, 1  ;;  %v2755_v63 = vadd.f32 %v2754_v49, %v2696_v24  ;;  %v2640_v54 = vadd.f32 %v7105_v12, %v2581_v4  ;;  %v5199_v12 = vld [vmem:[%s7983_s3 + $0x160] sm:$0xff] }
 0x325   : > { %v2923_v62 = vsel %vm7509_vm11, %v2842_v50, 0.0  ;;  %v7534_v42 = vsel %vm1642_vm5, %v3244_v25, %v3245_v61  ;;  %v3165_v48 = vrot.slane %v3163_v27, 1  ;;  %v5200_v61 = vld [vmem:[%s7983_s3 + $0x168] sm:$0xff] }
 0x326   : > { %v2943_v34 = vpack.c.bf16 %v2923_v62, %v2923_v62  ;;  %4008 = vmatmul.bf16.gmra.mxu3 %v7534_v42  ;;  %v5180_v27 = vld [vmem:[%s7983_s3 + $0xc8] sm:$0xff]  ;;  %v2700_v13 = vpop.f32.mrf.mxu2 }
 0x327   : > { %v3166_v1 = vor.u32 %v3165_v48, %v3161_v57  ;;  %4129 = vmatpush.bf16.msrb.mxu3 %v5200_v61  ;;  %4035 = vmatpush.bf16.msra.mxu1 %v5180_v27 }
 0x328   : > { %v2979_v59 = vunpack.c.l.b16 %v2943_v34  ;;  %v2811_v35 = vpop.f32.mrf.mxu0 }
 0x329   : > { %v2812_v32 = vadd.f32 %v2811_v35, %v2753_v31  ;;  %v7545_v17 = vsel %vm1481_vm3, %v3166_v1, %v3170_v26  ;;  %v2699_v31 = vadd.f32 %v2698_v45, %v2640_v54  ;;  %v2583_v35 = vadd.f32 %v7237_v2, %v7140_v30  ;;  %v5196_v54 = vld [vmem:[%s7983_s3 + $0x148] sm:$0xff] }
 0x32a   : > { %v2989_v36 = vpack.c.b16 %v2979_v59, %v2978_v14  ;;  %3959 = vmatmul.bf16.gmra.mxu2 %v7545_v17  ;;  %v2859_v45 = vadd.s32 7, %v7273_v56  ;;  %v2762_v23 = vpop.f32.mrf.mxu3 }
 0x32b   : > { %v2843_v51 = vmax.f32 %v2812_v32, 0.0  ;;  %4130 = vmatpush.bf16.msrb.mxu3 %v5199_v12  ;;  %v2758_v32 = vadd.f32 %v2757_v43, %v2699_v31  ;;  %v2642_v43 = vadd.f32 %v7114_v15, %v2583_v35 }
 0x32c   : > { %v3028_v29 = vshrl.u32 %v2989_v36, 16  ;;  %v3031_v7 = vshll.u32 %v2989_v36, 16  ;;  %vm2869_vm15 = vcmp.ge.s32.totalorder %v2859_v45, 0  ;;  %vm2879_vm0 = vcmp.lt.s32.totalorder %v2859_v45, 16 }
 0x32d   : > { %v2924_v49 = vsel %vm7553_vm14, %v2843_v51, 0.0  ;;  %vm7605_vm1 = vmand %vm2869_vm15, %vm2879_vm0 }
 0x32e   : > { %v3030_v47 = vrot.slane %v3028_v29, 7  ;;  %v2944_v1 = vpack.c.bf16 %v2924_v49, %v2924_v49  ;;  %v5198_v29 = vld [vmem:[%s7983_s3 + $0x158] sm:$0xff] }
 0x32f   : > { %4131 = vmatpush.bf16.msrb.mxu3 %v5198_v29  ;;  %v2588_v29 = vadd.f32 %v7237_v2, %v7158_v8 }
 0x330   : > { %v2813_v50 = vpop.f32.mrf.mxu0  ;;  %v3033_v25 = vor.u32 %v3031_v7, %v3030_v47  ;;  %v3077_v18 = vsel %vm6360_vm4, %v3030_v47, 0  ;;  %v2980_v24 = vunpack.c.l.b16 %v2944_v1 }
 0x331   : > { %v2814_v28 = vadd.f32 %v2813_v50, %v2755_v63  ;;  %v3248_v57 = vrot.slane %v3077_v18, 1  ;;  %v3180_v34 = vshll.u32 %v3077_v18, 16  ;;  %v2703_v63 = vpop.f32.mrf.mxu2  ;;  %v2701_v50 = vadd.f32 %v2700_v13, %v2642_v43 }
 0x332   : > { %v7573_v62 = vsel %vm6360_vm4, 0, %v3033_v25  ;;  %v2586_v18 = vadd.f32 %v7237_v2, %v7146_v21  ;;  %v5187_v21 = vld [vmem:[%s7983_s3 + $0x100] sm:$0xff]  ;;  %v2647_v8 = vadd.f32 %v7156_v6, %v2588_v29  ;;  %v5218_v6 = vld [vmem:[%s7983_s3 + $0x1f8] sm:$0xff] }
 0x333   : > { %v2844_v48 = vmax.f32 %v2814_v28, 0.0  ;;  %3915 = vmatmul.bf16.gmra.mxu1 %v7573_v62  ;;  %4199 = vmatmul.bf16.gmra.mxu0 %v7573_v62  ;;  %v3247_v38 = vrot.slane %v7573_v62, 1  ;;  %v3175_v53 = vshll.u32 %v7573_v62, 16  ;;  %v3173_v14 = vshrl.u32 %v7573_v62, 16 }
 0x334   : > { %v3182_v5 = vrot.slane %v3180_v34, 1  ;;  %4132 = vmatpush.bf16.msrb.mxu3 %v5197_v60  ;;  %v2760_v15 = vadd.f32 %v2759_v0, %v2701_v50  ;;  %v2645_v12 = vadd.f32 %v7144_v39, %v2586_v18  ;;  %4085 = vmatpush.bf16.msra.mxu2 %v5187_v21  ;;  %v5195_v39 = vld [vmem:[%s7983_s3 + $0x140] sm:$0xff]  ;;  %v2764_v60 = vpop.f32.mrf.mxu3 }
 0x335   : > { %v2925_v26 = vsel %vm7553_vm14, %v2844_v48, 0.0  ;;  %v7585_v44 = vsel %vm1642_vm5, %v3247_v38, %v3248_v57  ;;  %v3177_v59 = vrot.slane %v3175_v53, 1  ;;  %v5179_v38 = vld [vmem:[%s7983_s3 + $0xc0] sm:$0xff] }
 0x336   : > { %v2945_v11 = vpack.c.bf16 %v2925_v26, %v2925_v26  ;;  %4013 = vmatmul.bf16.gmra.mxu3 %v7585_v44  ;;  %4036 = vmatpush.bf16.msra.mxu1 %v5179_v38  ;;  %v2704_v35 = vadd.f32 %v2703_v63, %v2645_v12 }
 0x337   : > { %v3178_v36 = vor.u32 %v3177_v59, %v3173_v14 }
 0x338   : > { %v2981_v51 = vunpack.c.l.b16 %v2945_v11  ;;  %v2816_v4 = vpop.f32.mrf.mxu0  ;;  %4133 = vmatpush.bf16.msrb.mxu3 %v5196_v54  ;;  %v2591_v54 = vadd.f32 %v7237_v2, %v7165_v19 }
 0x339   : > { %v2817_v47 = vadd.f32 %v2816_v4, %v2758_v32  ;;  %v7596_v7 = vsel %vm1481_vm3, %v3178_v36, %v3182_v5  ;;  %v2763_v4 = vadd.f32 %v2762_v23, %v2704_v35 }
 0x33a   : > { %v2990_v30 = vpack.c.b16 %v2981_v51, %v2980_v24  ;;  %3964 = vmatmul.bf16.gmra.mxu2 %v7596_v7  ;;  %v2705_v24 = vpop.f32.mrf.mxu2  ;;  %4225 = vmatpush.bf16.msrb.mxu1 %v5218_v6 }
 0x33b   : > { %v2845_v25 = vmax.f32 %v2817_v47, 0.0  ;;  %v2860_v47 = vadd.s32 8, %v7273_v56  ;;  %v2706_v28 = vadd.f32 %v2705_v24, %v2647_v8 }
 0x33c   : > { %v3035_v61 = vshrl.u32 %v2990_v30, 16  ;;  %v3038_v49 = vshll.u32 %v2990_v30, 16  ;;  %4134 = vmatpush.bf16.msrb.mxu3 %v5195_v39 }
 0x33d   : > { %v2926_v53 = vsel %vm7605_vm1, %v2845_v25, 0.0  ;;  %vm2870_vm2 = vcmp.ge.s32.totalorder %v2860_v47, 0  ;;  %vm2880_vm6 = vcmp.lt.s32.totalorder %v2860_v47, 16  ;;  %v2765_v21 = vadd.f32 %v2764_v60, %v2706_v28 }
 0x33e   : > { %v3037_v27 = vrot.slane %v3035_v61, 7  ;;  %v2946_v11 = vpack.c.bf16 %v2926_v53, %v2926_v53  ;;  %vm7654_vm7 = vmand %vm2870_vm2, %vm2880_vm6 }
 0x340   : > { %v3040_v57 = vor.u32 %v3038_v49, %v3037_v27  ;;  %v2818_v48 = vpop.f32.mrf.mxu0  ;;  %v3078_v13 = vsel %vm6360_vm4, %v3037_v27, 0  ;;  %v2982_v63 = vunpack.c.l.b16 %v2946_v11  ;;  %v5226_v49 = vld [vmem:[%s7983_s3 + $0x238] sm:$0xff] }
 0x341   : > { %v2819_v34 = vadd.f32 %v2818_v48, %v2760_v15  ;;  %v3251_v0 = vrot.slane %v3078_v13, 1  ;;  %v3192_v59 = vshll.u32 %v3078_v13, 16  ;;  %4274 = vmatpush.bf16.msrb.mxu2 %v5226_v49  ;;  %v5217_v13 = vld [vmem:[%s7983_s3 + $0x1f0] sm:$0xff] }
 0x342   : > { %v7625_v31 = vsel %vm6360_vm4, 0, %v3040_v57  ;;  %v2708_v38 = vpop.f32.mrf.mxu2  ;;  %4226 = vmatpush.bf16.msrb.mxu1 %v5217_v13 }
 0x343   : > { %v2846_v1 = vmax.f32 %v2819_v34, 0.0  ;;  %3920 = vmatmul.bf16.gmra.mxu1 %v7625_v31  ;;  %4204 = vmatmul.bf16.gmra.mxu0 %v7625_v31  ;;  %v3250_v26 = vrot.slane %v7625_v31, 1  ;;  %v3187_v14 = vshll.u32 %v7625_v31, 16  ;;  %v3185_v36 = vshrl.u32 %v7625_v31, 16 }
 0x344   : > { %v3194_v43 = vrot.slane %v3192_v59, 1 }
 0x345   : > { %v2927_v32 = vsel %vm7605_vm1, %v2846_v1, 0.0  ;;  %v7637_v45 = vsel %vm1642_vm5, %v3250_v26, %v3251_v0  ;;  %v3189_v5 = vrot.slane %v3187_v14, 1  ;;  %v2650_v1 = vadd.f32 %v7171_v37, %v2591_v54  ;;  %v2767_v26 = vpop.f32.mrf.mxu3 }
 0x346   : > { %v2947_v51 = vpack.c.bf16 %v2927_v32, %v2927_v32  ;;  %4018 = vmatmul.bf16.gmra.mxu3 %v7637_v45 }
 0x347   : > { %v3190_v30 = vor.u32 %v3189_v5, %v3185_v36  ;;  %v2709_v36 = vadd.f32 %v2708_v38, %v2650_v1 }
 0x348   : > { %v2983_v61 = vunpack.c.l.b16 %v2947_v51  ;;  %v2821_v50 = vpop.f32.mrf.mxu0 }
 0x349   : > { %v2822_v25 = vadd.f32 %v2821_v50, %v2763_v4  ;;  %v7645_v18 = vsel %vm1481_vm3, %v3190_v30, %v3194_v43  ;;  %v2593_v4 = vadd.f32 %v7237_v2, %v7174_v33  ;;  %v2768_v30 = vadd.f32 %v2767_v26, %v2709_v36  ;;  %v5225_v33 = vld [vmem:[%s7983_s3 + $0x230] sm:$0xff] }
 0x34a   : > { %v2991_v27 = vpack.c.b16 %v2983_v61, %v2982_v63  ;;  %3969 = vmatmul.bf16.gmra.mxu2 %v7645_v18  ;;  %v2861_v43 = vadd.s32 9, %v7273_v56 }
 0x34b   : > { %v2847_v15 = vmax.f32 %v2822_v25, 0.0  ;;  %v2652_v2 = vadd.f32 %v7179_v40, %v2593_v4  ;;  %4275 = vmatpush.bf16.msrb.mxu2 %v5225_v33 }
 0x34c   : > { %v3042_v23 = vshrl.u32 %v2991_v27, 16  ;;  %v3045_v48 = vshll.u32 %v2991_v27, 16  ;;  %vm2871_vm8 = vcmp.ge.s32.totalorder %v2861_v43, 0  ;;  %vm2881_vm9 = vcmp.lt.s32.totalorder %v2861_v43, 16 }
 0x34d   : > { %v2928_v19 = vsel %vm7654_vm7, %v2847_v15, 0.0  ;;  %v2769_v56 = vpop.f32.mrf.mxu3  ;;  %vm2891_vm10 = vmand %vm2871_vm8, %vm2881_vm9 }
 0x34e   : > { %v3044_v57 = vrot.slane %v3042_v23, 7  ;;  %v2948_v5 = vpack.c.bf16 %v2928_v19, %v2928_v19  ;;  %v2710_v23 = vpop.f32.mrf.mxu2 }
 0x34f   : > { %v2711_v15 = vadd.f32 %v2710_v23, %v2652_v2 }
 0x350   : > { %v3047_v53 = vor.u32 %v3045_v48, %v3044_v57  ;;  %v2823_v34 = vpop.f32.mrf.mxu0  ;;  %v3079_v12 = vsel %vm6360_vm4, %v3044_v57, 0  ;;  %v3082_v61 = vunpack.c.l.b16 %v2948_v5 }
 0x351   : > { %v2824_v0 = vadd.f32 %v2823_v34, %v2765_v21  ;;  %v3254_v59 = vrot.slane %v3079_v12, 1  ;;  %v3204_v32 = vshll.u32 %v3079_v12, 16  ;;  %v2770_v6 = vadd.f32 %v2769_v56, %v2711_v15 }
 0x352   : > { %v7668_v14 = vsel %vm6360_vm4, 0, %v3047_v53 }
 0x353   : > { %v2848_v39 = vmax.f32 %v2824_v0, 0.0  ;;  %3925 = vmatmul.bf16.gmra.mxu1 %v7668_v14  ;;  %4209 = vmatmul.bf16.gmra.mxu0 %v7668_v14  ;;  %v3253_v35 = vrot.slane %v7668_v14, 1  ;;  %v3199_v11 = vshll.u32 %v7668_v14, 16  ;;  %v3197_v24 = vshrl.u32 %v7668_v14, 16 }
 0x354   : > { %v3206_v63 = vrot.slane %v3204_v32, 1 }
 0x355   : > { %v2929_v37 = vsel %vm7654_vm7, %v2848_v39, 0.0  ;;  %v7677_v29 = vsel %vm1642_vm5, %v3253_v35, %v3254_v59  ;;  %v3201_v51 = vrot.slane %v3199_v11, 1  ;;  %v7708_v35 = vld [vmem:[%s7984_s4] ss:$0 sm:$0xff] }
 0x356   : > { %v2949_v47 = vpack.c.bf16 %v2929_v37, %v2929_v37  ;;  %4023 = vmatmul.bf16.gmra.mxu3 %v7677_v29 }
 0x357   : > { %v3202_v60 = vor.u32 %v3201_v51, %v3197_v24 }
 0x358   : > { %v3083_v50 = vunpack.c.l.b16 %v2949_v47  ;;  %v2826_v25 = vpop.f32.mrf.mxu0  ;;  %v5216_v47 = vld [vmem:[%s7983_s3 + $0x1e8] sm:$0xff] }
 0x359   : > { %v2827_v27 = vadd.f32 %v2826_v25, %v2768_v30  ;;  %v7685_v8 = vsel %vm1481_vm3, %v3202_v60, %v3206_v63  ;;  %4227 = vmatpush.bf16.msrb.mxu1 %v5216_v47 }
 0x35a   : > { %v3084_v49 = vpack.c.b16 %v3083_v50, %v3082_v61  ;;  %3974 = vmatmul.bf16.gmra.mxu2 %v7685_v8 }
 0x35b   : > { %v2849_v54 = vmax.f32 %v2827_v27, 0.0 }
 0x35c   : > { %v3086_v28 = vshrl.u32 %v3084_v49, 16  ;;  %v3089_v48 = vshll.u32 %v3084_v49, 16 }
 0x35d   : > { %v2930_v53 = vsel %vm2891_vm10, %v2849_v54, 0.0 }
 0x35e   : > { %v7692_v57 = vrot.slane %v3086_v28, 7  ;;  %v2950_v0 = vpack.c.bf16 %v2930_v53, %v2930_v53 }
 0x360   : > { %v2828_v21 = vpop.f32.mrf.mxu0  ;;  %v3891_v38 = vpop.f32.mrf.mxu1  ;;  %v3091_v40 = vor.u32 %v3089_v48, %v7692_v57  ;;  %v3098_v59 = vunpack.c.l.b16 %v2950_v0 }
 0x361   : > { %v2829_v34 = vadd.f32 %v2828_v21, %v2770_v6  ;;  %v3892_v37 = vadd.f32 %v7708_v35, %v3891_v38  ;;  %v5223_v38 = vld [vmem:[%s7983_s3 + $0x220] sm:$0xff] }
 0x362   : > { %v7700_v12 = vsel %vm6360_vm4, 0, %v3091_v40 }
 0x363   : > { %v2850_v19 = vmax.f32 %v2829_v34, 0.0  ;;  %4037 = vmatmul.bf16.vlgmr.msra.gmra.mxu1 %v7394_v46  ;;  %4214 = vmatmul.bf16.gmra.mxu0 %v7700_v12  ;;  %v5224_v46 = vld [vmem:[%s7983_s3 + $0x228] sm:$0xff] }
 0x364   : > { %4276 = vmatpush.bf16.msrb.mxu2 %v5224_v46 }
 0x365   : > { %v2931_v1 = vsel %vm2891_vm10, %v2850_v19, 0.0  ;;  %v5215_v19 = vld [vmem:[%s7983_s3 + $0x1e0] sm:$0xff] }
 0x366   : > { %v2951_v26 = vpack.c.bf16 %v2931_v1, %v2931_v1  ;;  %4135 = vmatmul.bf16.vlgmr.msrb.gmra.mxu3 %v7403_v10  ;;  %4228 = vmatpush.bf16.msrb.mxu1 %v5215_v19  ;;  %v5212_v19 = vld [vmem:[%s7983_s3 + $0x1c8] sm:$0xff] }
 0x368   : > { %v3099_v39 = vunpack.c.l.b16 %v2951_v26  ;;  %v3893_v11 = vpop.f32.mrf.mxu1  ;;  %4277 = vmatpush.bf16.msrb.mxu2 %v5223_v38 }
 0x369   : > { %v3989_v32 = vpop.f32.mrf.mxu3  ;;  %v3894_v49 = vadd.f32 %v7708_v35, %v3893_v11 }
 0x36a   : > { %v3100_v36 = vpack.c.b16 %v3099_v39, %v3098_v59  ;;  %4086 = vmatmul.bf16.vlgmr.msra.gmra.mxu2 %v7416_v3 }
 0x36c   : > { %v3102_v5 = vshrl.u32 %v3100_v36, 16  ;;  %v3105_v4 = vshll.u32 %v3100_v36, 16 }
 0x36d   : > { %v3940_v10 = vpop.f32.mrf.mxu2 }
 0x36e   : > { %v3941_v24 = vadd.f32 %v3940_v10, %v3892_v37  ;;  %v3104_v51 = vrot.slane %v3102_v5, 7  ;;  %v5222_v5 = vld [vmem:[%s7983_s3 + $0x218] sm:$0xff] }
 0x36f   : > { %4278 = vmatpush.bf16.msrb.mxu2 %v5222_v5 }
 0x370   : > { %v3896_v30 = vpop.f32.mrf.mxu1  ;;  %v3107_v43 = vor.u32 %v3105_v4, %v3104_v51  ;;  %v7718_v3 = vadd.f32 %v3989_v32, %v3941_v24  ;;  %v3111_v60 = vsel %vm6360_vm4, %v3104_v51, 0  ;;  %v5214_v24 = vld [vmem:[%s7983_s3 + $0x1d8] sm:$0xff] }
 0x371   : > { %v3991_v63 = vpop.f32.mrf.mxu3  ;;  %v3291_v25 = vshll.u32 %v3111_v60, 16  ;;  %v3299_v23 = vrot.slane %v3111_v60, 1  ;;  %v3897_v40 = vadd.f32 %v7708_v35, %v3896_v30  ;;  %4229 = vmatpush.bf16.msrb.mxu1 %v5214_v24 }
 0x372   : > { %v3110_v61 = vsel %vm6360_vm4, 0, %v3107_v43 }
 0x373   : > { %4042 = vmatmul.bf16.gmra.mxu1 %v7443_v9  ;;  %v3286_v50 = vshll.u32 %v3110_v61, 16  ;;  %4219 = vmatmul.bf16.gmra.mxu0 %v3110_v61  ;;  %v3298_v27 = vrot.slane %v3110_v61, 1  ;;  %v3284_v33 = vshrl.u32 %v3110_v61, 16  ;;  %v3293_v48 = vrot.slane %v3291_v25, 1  ;;  %v5221_v25 = vld [vmem:[%s7983_s3 + $0x210] sm:$0xff] }
 0x374   : > { %4279 = vmatpush.bf16.msrb.mxu2 %v5221_v25 }
 0x375   : > { %v3288_v2 = vrot.slane %v3286_v50, 1  ;;  %v3942_v56 = vpop.f32.mrf.mxu2  ;;  %v7727_v28 = vsel %vm1642_vm5, %v3298_v27, %v3299_v23 }
 0x376   : > { %v3943_v15 = vadd.f32 %v3942_v56, %v3894_v49  ;;  %4140 = vmatmul.bf16.gmra.mxu3 %v7453_v41  ;;  %v5213_v49 = vld [vmem:[%s7983_s3 + $0x1d0] sm:$0xff] }
 0x377   : > { %v3289_v54 = vor.u32 %v3288_v2, %v3284_v33  ;;  %4230 = vmatpush.bf16.msrb.mxu1 %v5213_v49 }
 0x378   : > { %v3898_v13 = vpop.f32.mrf.mxu1  ;;  %v7730_v9 = vadd.f32 %v3991_v63, %v3943_v15 }
 0x379   : > { %v3994_v6 = vpop.f32.mrf.mxu3  ;;  %v7733_v21 = vsel %vm1481_vm3, %v3289_v54, %v3293_v48  ;;  %v3899_v59 = vadd.f32 %v7708_v35, %v3898_v13 }
 0x37a   : > { %4091 = vmatmul.bf16.gmra.mxu2 %v7462_v22 }
 0x37b   : > { %4231 = vmatpush.bf16.msrb.mxu1 %v5212_v19 }
 0x37d   : > { %v3945_v53 = vpop.f32.mrf.mxu2 }
 0x37e   : > { %v3946_v34 = vadd.f32 %v3945_v53, %v3897_v40  ;;  %v5220_v40 = vld [vmem:[%s7983_s3 + $0x208] sm:$0xff] }
 0x37f   : > { %4280 = vmatpush.bf16.msrb.mxu2 %v5220_v40 }
 0x380   : > { %v3901_v0 = vpop.f32.mrf.mxu1  ;;  %v7743_v1 = vadd.f32 %v3994_v6, %v3946_v34 }
 0x381   : > { %v3996_v26 = vpop.f32.mrf.mxu3  ;;  %v3902_v37 = vadd.f32 %v7708_v35, %v3901_v0 }
 0x383   : > { %4047 = vmatmul.bf16.gmra.mxu1 %v7485_v55 }
 0x385   : > { %v3947_v39 = vpop.f32.mrf.mxu2 }
 0x386   : > { %v3948_v11 = vadd.f32 %v3947_v39, %v3899_v59  ;;  %4145 = vmatmul.bf16.gmra.mxu3 %v7495_v20 }
 0x388   : > { %v3903_v32 = vpop.f32.mrf.mxu1  ;;  %v7748_v36 = vadd.f32 %v3996_v26, %v3948_v11 }
 0x389   : > { %v3999_v46 = vpop.f32.mrf.mxu3  ;;  %v3904_v30 = vadd.f32 %v7708_v35, %v3903_v32 }
 0x38a   : > { %4096 = vmatmul.bf16.gmra.mxu2 %v7504_v52 }
 0x38d   : > { %v3950_v55 = vpop.f32.mrf.mxu2 }
 0x38e   : > { %v3951_v10 = vadd.f32 %v3950_v55, %v3902_v37  ;;  %v5219_v55 = vld [vmem:[%s7983_s3 + $0x200] sm:$0xff] }
 0x38f   : > { %4281 = vmatpush.bf16.msrb.mxu2 %v5219_v55 }
 0x390   : > { %v3906_v51 = vpop.f32.mrf.mxu1  ;;  %v7758_v4 = vadd.f32 %v3999_v46, %v3951_v10 }
 0x391   : > { %v4001_v47 = vpop.f32.mrf.mxu3  ;;  %v3907_v27 = vadd.f32 %v7708_v35, %v3906_v51  ;;  %v5211_v51 = vld [vmem:[%s7983_s3 + $0x1c0] sm:$0xff] }
 0x392   : > { %4232 = vmatpush.bf16.msrb.mxu1 %v5211_v51 }
 0x393   : > { %4052 = vmatmul.bf16.gmra.mxu1 %v7525_v16 }
 0x395   : > { %v3952_v43 = vpop.f32.mrf.mxu2 }
 0x396   : > { %v3953_v60 = vadd.f32 %v3952_v43, %v3904_v30  ;;  %4150 = vmatmul.bf16.gmra.mxu3 %v7534_v42 }
 0x398   : > { %v3908_v63 = vpop.f32.mrf.mxu1  ;;  %v7763_v61 = vadd.f32 %v4001_v47, %v3953_v60 }
 0x399   : > { %v4004_v50 = vpop.f32.mrf.mxu3  ;;  %v3909_v15 = vadd.f32 %v7708_v35, %v3908_v63 }
 0x39a   : > { %4101 = vmatmul.bf16.gmra.mxu2 %v7545_v17 }
 0x39d   : > { %v3955_v16 = vpop.f32.mrf.mxu2 }
 0x39e   : > { %v3956_v23 = vadd.f32 %v3955_v16, %v3907_v27 }
 0x3a0   : > { %v3911_v33 = vpop.f32.mrf.mxu1  ;;  %v7773_v2 = vadd.f32 %v4004_v50, %v3956_v23 }
 0x3a1   : > { %v4006_v56 = vpop.f32.mrf.mxu3  ;;  %v3912_v53 = vadd.f32 %v7708_v35, %v3911_v33  ;;  %v3267_v33 = vshll.u32 %v7700_v12, 16 }
 0x3a3   : > { %4057 = vmatmul.bf16.gmra.mxu1 %v7573_v62 }
 0x3a5   : > { %v3957_v54 = vpop.f32.mrf.mxu2 }
 0x3a6   : > { %v3958_v48 = vadd.f32 %v3957_v54, %v3909_v15  ;;  %4155 = vmatmul.bf16.gmra.mxu3 %v7585_v44 }
 0x3a8   : > { %v3913_v13 = vpop.f32.mrf.mxu1  ;;  %v7778_v6 = vadd.f32 %v4006_v56, %v3958_v48  ;;  %v3279_v48 = vrot.slane %v7700_v12, 1 }
 0x3a9   : > { %v4009_v38 = vpop.f32.mrf.mxu3  ;;  %v3914_v39 = vadd.f32 %v7708_v35, %v3913_v13  ;;  %v3269_v13 = vrot.slane %v3267_v33, 1 }
 0x3aa   : > { %4106 = vmatmul.bf16.gmra.mxu2 %v7596_v7 }
 0x3ad   : > { %v3960_v62 = vpop.f32.mrf.mxu2 }
 0x3ae   : > { %v3961_v34 = vadd.f32 %v3960_v62, %v3912_v53  ;;  %v3265_v53 = vshrl.u32 %v7700_v12, 16 }
 0x3b0   : > { %v3916_v0 = vpop.f32.mrf.mxu1  ;;  %v7788_v26 = vadd.f32 %v4009_v38, %v3961_v34  ;;  %v3270_v58 = vor.u32 %v3269_v13, %v3265_v53 }
 0x3b1   : > { %v4011_v59 = vpop.f32.mrf.mxu3  ;;  %v3917_v10 = vadd.f32 %v7708_v35, %v3916_v0 }
 0x3b3   : > { %4062 = vmatmul.bf16.gmra.mxu1 %v7625_v31 }
 0x3b5   : > { %v3962_v11 = vpop.f32.mrf.mxu2 }
 0x3b6   : > { %v3963_v32 = vadd.f32 %v3962_v11, %v3914_v39  ;;  %4160 = vmatmul.bf16.gmra.mxu3 %v7637_v45 }
 0x3b8   : > { %v3918_v46 = vpop.f32.mrf.mxu1  ;;  %v7793_v5 = vadd.f32 %v4011_v59, %v3963_v32 }
 0x3b9   : > { %v4014_v37 = vpop.f32.mrf.mxu3  ;;  %v3919_v60 = vadd.f32 %v7708_v35, %v3918_v46 }
 0x3ba   : > { %4111 = vmatmul.bf16.gmra.mxu2 %v7645_v18 }
 0x3bd   : > { %v3965_v31 = vpop.f32.mrf.mxu2 }
 0x3be   : > { %v3966_v24 = vadd.f32 %v3965_v31, %v3917_v10 }
 0x3c0   : > { %v3921_v47 = vpop.f32.mrf.mxu1  ;;  %v7803_v30 = vadd.f32 %v4014_v37, %v3966_v24 }
 0x3c1   : > { %v4016_v43 = vpop.f32.mrf.mxu3  ;;  %v3922_v23 = vadd.f32 %v7708_v35, %v3921_v47 }
 0x3c3   : > { %4067 = vmatmul.bf16.gmra.mxu1 %v7668_v14  ;;  %v3095_v14 = vsel %vm6360_vm4, %v7692_v57, 0 }
 0x3c4   : > { %v3280_v40 = vrot.slane %v3095_v14, 1  ;;  %v3272_v62 = vshll.u32 %v3095_v14, 16 }
 0x3c5   : > { %v3967_v63 = vpop.f32.mrf.mxu2 }
 0x3c6   : > { %v3968_v50 = vadd.f32 %v3967_v63, %v3919_v60  ;;  %4165 = vmatmul.bf16.gmra.mxu3 %v7677_v29  ;;  %v7823_v0 = vsel %vm1642_vm5, %v3279_v48, %v3280_v40  ;;  %v3274_v59 = vrot.slane %v3272_v62, 1 }
 0x3c8   : > { %v3923_v25 = vpop.f32.mrf.mxu1  ;;  %v7808_v27 = vadd.f32 %v4016_v43, %v3968_v50  ;;  %v7829_v32 = vsel %vm1481_vm3, %v3270_v58, %v3274_v59 }
 0x3c9   : > { %v4019_v16 = vpop.f32.mrf.mxu3  ;;  %v3924_v34 = vadd.f32 %v7708_v35, %v3923_v25 }
 0x3ca   : > { %4116 = vmatmul.bf16.gmra.mxu2 %v7685_v8 }
 0x3cd   : > { %v3970_v49 = vpop.f32.mrf.mxu2 }
 0x3ce   : > { %v3971_v56 = vadd.f32 %v3970_v49, %v3922_v23 }
 0x3d0   : > { %v3926_v15 = vpop.f32.mrf.mxu1  ;;  %v7816_v54 = vadd.f32 %v4019_v16, %v3971_v56 }
 0x3d1   : > { %v4021_v38 = vpop.f32.mrf.mxu3 }
 0x3d3   : > { %4072 = vmatmul.bf16.gmra.mxu1 %v7700_v12  ;;  %v3927_v12 = vadd.f32 %v7708_v35, %v3926_v15 }
 0x3d5   : > { %v3972_v19 = vpop.f32.mrf.mxu2 }
 0x3d6   : > { %v3973_v57 = vadd.f32 %v3972_v19, %v3924_v34  ;;  %4170 = vmatmul.bf16.gmra.mxu3 %v7823_v0 }
 0x3d8   : > { %v3928_v39 = vpop.f32.mrf.mxu1  ;;  %v7826_v11 = vadd.f32 %v4021_v38, %v3973_v57 }
 0x3d9   : > { %v4024_v46 = vpop.f32.mrf.mxu3  ;;  %v3929_v51 = vadd.f32 %v7708_v35, %v3928_v39 }
 0x3da   : > { %4121 = vmatmul.bf16.gmra.mxu2 %v7829_v32 }
 0x3dd   : > { %v3975_v37 = vpop.f32.mrf.mxu2 }
 0x3de   : > { %v3976_v55 = vadd.f32 %v3975_v37, %v3927_v12 }
 0x3e0   : > { %v4038_v10 = vpop.f32.mrf.mxu1  ;;  %v7833_v31 = vadd.f32 %v4024_v46, %v3976_v55 }
 0x3e1   : > { %v4039_v24 = vadd.f32 %v4038_v10, %v7718_v3  ;;  %v4026_v60 = vpop.f32.mrf.mxu3 }
 0x3e3   : > { %4233 = vmatmul.bf16.vlgmr.msrb.gmra.mxu1 %v7462_v22 }
 0x3e5   : > { %v3977_v47 = vpop.f32.mrf.mxu2 }
 0x3e6   : > { %v3978_v43 = vadd.f32 %v3977_v47, %v3929_v51  ;;  %v4185_v47 = vpop.f32.mrf.mxu0 }
 0x3e8   : > { %v4040_v63 = vpop.f32.mrf.mxu1  ;;  %v7838_v50 = vadd.f32 %v4026_v60, %v3978_v43 }
 0x3e9   : > { %v4041_v25 = vadd.f32 %v4040_v63, %v7730_v9 }
 0x3ea   : > { %4282 = vmatmul.bf16.vlgmr.msrb.gmra.mxu2 %v7453_v41 }
 0x3ed   : > { %v4087_v16 = vpop.f32.mrf.mxu2 }
 0x3ee   : > { %v7842_v23 = vadd.f32 %v4087_v16, %v4039_v24 }
 0x3f0   : > { %v4043_v49 = vpop.f32.mrf.mxu1 }
 0x3f1   : > { %v4044_v3 = vadd.f32 %v4043_v49, %v7743_v1 }
 0x3f3   : > { %4238 = vmatmul.bf16.gmra.mxu1 %v7504_v52 }
 0x3f5   : > { %v4089_v22 = vpop.f32.mrf.mxu2 }
 0x3f6   : > { %v7846_v35 = vadd.f32 %v4089_v22, %v4041_v25 }
 0x3f8   : > { %v4045_v33 = vpop.f32.mrf.mxu1 }
 0x3f9   : > { %v4046_v56 = vadd.f32 %v4045_v33, %v7748_v36 }
 0x3fa   : > { %4287 = vmatmul.bf16.gmra.mxu2 %v7495_v20 }
 0x3fd   : > { %v4092_v15 = vpop.f32.mrf.mxu2 }
 0x3fe   : > { %v7850_v9 = vadd.f32 %v4092_v15, %v4044_v3 }
 0x400   : > { %v4048_v41 = vpop.f32.mrf.mxu1 }
 0x401   : > { %v4049_v14 = vadd.f32 %v4048_v41, %v7758_v4 }
 0x403   : > { %4243 = vmatmul.bf16.gmra.mxu1 %v7545_v17 }
 0x405   : > { %v4094_v48 = vpop.f32.mrf.mxu2 }
 0x406   : > { %v7854_v1 = vadd.f32 %v4094_v48, %v4046_v56 }
 0x408   : > { %v4050_v52 = vpop.f32.mrf.mxu1 }
 0x409   : > { %v4051_v13 = vadd.f32 %v4050_v52, %v7763_v61 }
 0x40a   : > { %4292 = vmatmul.bf16.gmra.mxu2 %v7534_v42 }
 0x40d   : > { %v4097_v38 = vpop.f32.mrf.mxu2 }
 0x40e   : > { %v7858_v36 = vadd.f32 %v4097_v38, %v4049_v14 }
 0x410   : > { %v4053_v20 = vpop.f32.mrf.mxu1 }
 0x411   : > { %v4054_v40 = vadd.f32 %v4053_v20, %v7773_v2 }
 0x413   : > { %4248 = vmatmul.bf16.gmra.mxu1 %v7596_v7 }
 0x415   : > { %v4099_v53 = vpop.f32.mrf.mxu2 }
 0x416   : > { %v7862_v4 = vadd.f32 %v4099_v53, %v4051_v13 }
 0x418   : > { %v4055_v17 = vpop.f32.mrf.mxu1 }
 0x419   : > { %v4056_v62 = vadd.f32 %v4055_v17, %v7778_v6 }
 0x41a   : > { %4297 = vmatmul.bf16.gmra.mxu2 %v7585_v44 }
 0x41d   : > { %v4102_v34 = vpop.f32.mrf.mxu2 }
 0x41e   : > { %v7866_v61 = vadd.f32 %v4102_v34, %v4054_v40 }
 0x420   : > { %v4058_v42 = vpop.f32.mrf.mxu1 }
 0x421   : > { %v4059_v19 = vadd.f32 %v4058_v42, %v7788_v26 }
 0x423   : > { %4253 = vmatmul.bf16.gmra.mxu1 %v7645_v18 }
 0x425   : > { %v4104_v58 = vpop.f32.mrf.mxu2 }
 0x426   : > { %v7870_v2 = vadd.f32 %v4104_v58, %v4056_v62 }
 0x428   : > { %v4060_v7 = vpop.f32.mrf.mxu1 }
 0x429   : > { %v4061_v57 = vadd.f32 %v4060_v7, %v7793_v5 }
 0x42a   : > { %4302 = vmatmul.bf16.gmra.mxu2 %v7637_v45 }
 0x42d   : > { %v4107_v59 = vpop.f32.mrf.mxu2 }
 0x42e   : > { %v7874_v6 = vadd.f32 %v4107_v59, %v4059_v19 }
 0x430   : > { %v4063_v44 = vpop.f32.mrf.mxu1 }
 0x431   : > { %v4064_v39 = vadd.f32 %v4063_v44, %v7803_v30 }
 0x433   : > { %4258 = vmatmul.bf16.gmra.mxu1 %v7685_v8  ;;  %v4136_v8 = vpop.f32.mrf.mxu3 }
 0x435   : > { %v4109_v12 = vpop.f32.mrf.mxu2 }
 0x436   : > { %v7878_v26 = vadd.f32 %v4109_v12, %v4061_v57 }
 0x438   : > { %v4065_v18 = vpop.f32.mrf.mxu1 }
 0x439   : > { %v4066_v46 = vadd.f32 %v4065_v18, %v7808_v27 }
 0x43a   : > { %4307 = vmatmul.bf16.gmra.mxu2 %v7677_v29 }
 0x43b   : > { %v4138_v60 = vpop.f32.mrf.mxu3 }
 0x43d   : > { %v4112_v37 = vpop.f32.mrf.mxu2 }
 0x43e   : > { %v7882_v5 = vadd.f32 %v4112_v37, %v4064_v39 }
 0x440   : > { %v4068_v45 = vpop.f32.mrf.mxu1 }
 0x441   : > { %v4069_v55 = vadd.f32 %v4068_v45, %v7816_v54  ;;  %v4187_v54 = vpop.f32.mrf.mxu0 }
 0x443   : > { %4263 = vmatmul.bf16.gmra.mxu1 %v7829_v32 }
 0x445   : > { %v4114_v10 = vpop.f32.mrf.mxu2 }
 0x446   : > { %v7886_v30 = vadd.f32 %v4114_v10, %v4066_v46 }
 0x448   : > { %v4070_v24 = vpop.f32.mrf.mxu1 }
 0x449   : > { %v4071_v51 = vadd.f32 %v4070_v24, %v7826_v11  ;;  %v4141_v11 = vpop.f32.mrf.mxu3  ;;  %v4190_v3 = vpop.f32.mrf.mxu0 }
 0x44a   : > { %4312 = vmatmul.bf16.gmra.mxu2 %v7823_v0 }
 0x44d   : > { %v4117_v27 = vpop.f32.mrf.mxu2 }
 0x44e   : > { %v7890_v29 = vadd.f32 %v4117_v27, %v4069_v55 }
 0x450   : > { %v4073_v43 = vpop.f32.mrf.mxu1 }
 0x451   : > { %v4074_v63 = vadd.f32 %v4073_v43, %v7833_v31  ;;  %v4143_v56 = vpop.f32.mrf.mxu3  ;;  %v4192_v41 = vpop.f32.mrf.mxu0 }
 0x452   : > { %v4144_v39 = vadd.f32 %v4143_v56, %v7854_v1 }
 0x453   : > { %4268 = vmatmul.bf16.gmra.mxu1 %v7733_v21  ;;  %v4137_v21 = vadd.f32 %v4136_v8, %v7842_v23  ;;  %v4142_v23 = vadd.f32 %v4141_v11, %v7850_v9 }
 0x454   : > { %v4193_v37 = vadd.f32 %v4192_v41, %v4144_v39 }
 0x455   : > { %v4119_v32 = vpop.f32.mrf.mxu2  ;;  %v4186_v48 = vadd.f32 %v4185_v47, %v4137_v21  ;;  %v4191_v57 = vadd.f32 %v4190_v3, %v4142_v23 }
 0x456   : > { %v7894_v25 = vadd.f32 %v4119_v32, %v4071_v51 }
 0x458   : > { %v4075_v16 = vpop.f32.mrf.mxu1 }
 0x459   : > { %v4076_v49 = vadd.f32 %v4075_v16, %v7838_v50  ;;  %v4146_v38 = vpop.f32.mrf.mxu3  ;;  %v4195_v53 = vpop.f32.mrf.mxu0 }
 0x45a   : > { %4317 = vmatmul.bf16.gmra.mxu2 %v7727_v28  ;;  %v4139_v28 = vadd.f32 %v4138_v60, %v7846_v35  ;;  %v4147_v8 = vadd.f32 %v4146_v38, %v7858_v36 }
 0x45c   : > { %v4188_v17 = vadd.f32 %v4187_v54, %v4139_v28  ;;  %v4196_v27 = vadd.f32 %v4195_v53, %v4147_v8 }
 0x45d   : > { %v4122_v0 = vpop.f32.mrf.mxu2 }
 0x45e   : > { %v7898_v22 = vadd.f32 %v4122_v0, %v4074_v63 }
 0x460   : > { %v4234_v33 = vpop.f32.mrf.mxu1 }
 0x461   : > { %v4235_v52 = vadd.f32 %v4234_v33, %v4186_v48  ;;  %v4148_v7 = vpop.f32.mrf.mxu3  ;;  %v4197_v35 = vpop.f32.mrf.mxu0 }
 0x462   : > { %v4149_v63 = vadd.f32 %v4148_v7, %v7862_v4 }
 0x464   : > { %v4198_v11 = vadd.f32 %v4197_v35, %v4149_v63 }
 0x465   : > { %v4124_v31 = vpop.f32.mrf.mxu2 }
 0x466   : > { %v7901_v15 = vadd.f32 %v4124_v31, %v4076_v49 }
 0x468   : > { %v4236_v14 = vpop.f32.mrf.mxu1 }
 0x469   : > { %v4237_v62 = vadd.f32 %v4236_v14, %v4188_v17  ;;  %v4151_v45 = vpop.f32.mrf.mxu3  ;;  %v4200_v10 = vpop.f32.mrf.mxu0 }
 0x46a   : > { %v4152_v36 = vadd.f32 %v4151_v45, %v7866_v61 }
 0x46c   : > { %v4201_v14 = vadd.f32 %v4200_v10, %v4152_v36 }
 0x46d   : > { %v4283_v50 = vpop.f32.mrf.mxu2 }
 0x46e   : > { %v4284_v13 = vadd.f32 %v4283_v50, %v4235_v52 }
 0x470   : > { %v4323_v20 = vmax.f32 %v4284_v13, 0.0  ;;  %v4239_v40 = vpop.f32.mrf.mxu1 }
 0x471   : > { %v4240_v59 = vadd.f32 %v4239_v40, %v4191_v57  ;;  %v4153_v60 = vpop.f32.mrf.mxu3  ;;  %v4202_v32 = vpop.f32.mrf.mxu0 }
 0x472   : > { %4339 = vst [vmem:[%s5852_s27] sm:$0xff] %v4323_v20  ;;  %v4154_v52 = vadd.f32 %v4153_v60, %v7870_v2 }
 0x474   : > { %v4203_v20 = vadd.f32 %v4202_v32, %v4154_v52 }
 0x475   : > { %v4285_v34 = vpop.f32.mrf.mxu2 }
 0x476   : > { %v4286_v42 = vadd.f32 %v4285_v34, %v4237_v62 }
 0x478   : > { %v4324_v19 = vmax.f32 %v4286_v42, 0.0  ;;  %v4241_v58 = vpop.f32.mrf.mxu1 }
 0x479   : > { %v4242_v55 = vadd.f32 %v4241_v58, %v4193_v37  ;;  %v4156_v56 = vpop.f32.mrf.mxu3  ;;  %v4205_v41 = vpop.f32.mrf.mxu0 }
 0x47a   : > { %4340 = vst [vmem:[%s5852_s27 + $0x8] sm:$0xff] %v4324_v19  ;;  %v4157_v17 = vadd.f32 %v4156_v56, %v7874_v6 }
 0x47c   : > { %v4206_v42 = vadd.f32 %v4205_v41, %v4157_v17 }
 0x47d   : > { %v4288_v44 = vpop.f32.mrf.mxu2 }
 0x47e   : > { %v4289_v12 = vadd.f32 %v4288_v44, %v4240_v59 }
 0x480   : > { %v4325_v18 = vmax.f32 %v4289_v12, 0.0  ;;  %v4244_v46 = vpop.f32.mrf.mxu1 }
 0x481   : > { %v4245_v43 = vadd.f32 %v4244_v46, %v4196_v27  ;;  %v4158_v38 = vpop.f32.mrf.mxu3  ;;  %v4207_v61 = vpop.f32.mrf.mxu0 }
 0x482   : > { %4341 = vst [vmem:[%s5852_s27 + $0x10] sm:$0xff] %v4325_v18  ;;  %v4159_v57 = vadd.f32 %v4158_v38, %v7878_v26 }
 0x484   : > { %v4208_v39 = vadd.f32 %v4207_v61, %v4159_v57 }
 0x485   : > { %v4290_v9 = vpop.f32.mrf.mxu2 }
 0x486   : > { %v4291_v24 = vadd.f32 %v4290_v9, %v4242_v55 }
 0x488   : > { %v4326_v51 = vmax.f32 %v4291_v24, 0.0  ;;  %v4246_v47 = vpop.f32.mrf.mxu1 }
 0x489   : > { %v4247_v0 = vadd.f32 %v4246_v47, %v4198_v11  ;;  %v4161_v19 = vpop.f32.mrf.mxu3  ;;  %v4210_v7 = vpop.f32.mrf.mxu0 }
 0x48a   : > { %4342 = vst [vmem:[%s5852_s27 + $0x18] sm:$0xff] %v4326_v51  ;;  %v4162_v46 = vadd.f32 %v4161_v19, %v7882_v5 }
 0x48c   : > { %v4211_v10 = vadd.f32 %v4210_v7, %v4162_v46 }
 0x48d   : > { %v4293_v1 = vpop.f32.mrf.mxu2 }
 0x48e   : > { %v4294_v54 = vadd.f32 %v4293_v1, %v4245_v43 }
 0x490   : > { %v4327_v16 = vmax.f32 %v4294_v54, 0.0  ;;  %v4249_v49 = vpop.f32.mrf.mxu1 }
 0x491   : > { %v4250_v4 = vadd.f32 %v4249_v49, %v4201_v14  ;;  %v4163_v18 = vpop.f32.mrf.mxu3  ;;  %v4212_v45 = vpop.f32.mrf.mxu0 }
 0x492   : > { %4343 = vst [vmem:[%s5852_s27 + $0x20] sm:$0xff] %v4327_v16  ;;  %v4164_v26 = vadd.f32 %v4163_v18, %v7886_v30 }
 0x494   : > { %v4213_v60 = vadd.f32 %v4212_v45, %v4164_v26 }
 0x495   : > { %v4295_v3 = vpop.f32.mrf.mxu2 }
 0x496   : > { %v4296_v33 = vadd.f32 %v4295_v3, %v4247_v0 }
 0x498   : > { %v4328_v31 = vmax.f32 %v4296_v33, 0.0  ;;  %v4251_v21 = vpop.f32.mrf.mxu1 }
 0x499   : > { %v4252_v40 = vadd.f32 %v4251_v21, %v4203_v20  ;;  %v4166_v47 = vpop.f32.mrf.mxu3  ;;  %v4215_v43 = vpop.f32.mrf.mxu0 }
 0x49a   : > { %4344 = vst [vmem:[%s5852_s27 + $0x28] sm:$0xff] %v4328_v31  ;;  %v4167_v54 = vadd.f32 %v4166_v47, %v7890_v29 }
 0x49c   : > { %v4216_v11 = vadd.f32 %v4215_v43, %v4167_v54 }
 0x49d   : > { %v4298_v48 = vpop.f32.mrf.mxu2 }
 0x49e   : > { %v4299_v50 = vadd.f32 %v4298_v48, %v4250_v4 }
 0x4a0   : > { %v4329_v28 = vmax.f32 %v4299_v50, 0.0  ;;  %v4254_v13 = vpop.f32.mrf.mxu1 }
 0x4a1   : > { %v4255_v58 = vadd.f32 %v4254_v13, %v4206_v42  ;;  %v4168_v49 = vpop.f32.mrf.mxu3  ;;  %v4217_v0 = vpop.f32.mrf.mxu0 }
 0x4a2   : > { %4345 = vst [vmem:[%s5852_s27 + $0x30] sm:$0xff] %v4329_v28  ;;  %v4169_v33 = vadd.f32 %v4168_v49, %v7894_v25 }
 0x4a4   : > { %v4218_v21 = vadd.f32 %v4217_v0, %v4169_v33 }
 0x4a5   : > { %v4300_v53 = vpop.f32.mrf.mxu2 }
 0x4a6   : > { %v4301_v62 = vadd.f32 %v4300_v53, %v4252_v40 }
 0x4a8   : > { %v4330_v34 = vmax.f32 %v4301_v62, 0.0  ;;  %v4256_v23 = vpop.f32.mrf.mxu1 }
 0x4a9   : > { %v4257_v12 = vadd.f32 %v4256_v23, %v4208_v39  ;;  %v4171_v41 = vpop.f32.mrf.mxu3  ;;  %v4220_v52 = vpop.f32.mrf.mxu0 }
 0x4aa   : > { %4346 = vst [vmem:[%s5852_s27 + $0x38] sm:$0xff] %v4330_v34  ;;  %v4172_v4 = vadd.f32 %v4171_v41, %v7898_v22 }
 0x4ac   : > { %v4221_v13 = vadd.f32 %v4220_v52, %v4172_v4 }
 0x4ad   : > { %v4303_v2 = vpop.f32.mrf.mxu2 }
 0x4ae   : > { %v4304_v35 = vadd.f32 %v4303_v2, %v4255_v58 }
 0x4b0   : > { %v4331_v59 = vmax.f32 %v4304_v35, 0.0  ;;  %v4259_v44 = vpop.f32.mrf.mxu1 }
 0x4b1   : > { %v4260_v8 = vadd.f32 %v4259_v44, %v4211_v10  ;;  %v4173_v38 = vpop.f32.mrf.mxu3  ;;  %v4222_v53 = vpop.f32.mrf.mxu0 }
 0x4b2   : > { %4347 = vst [vmem:[%s5852_s27 + $0x40] sm:$0xff] %v4331_v59  ;;  %v4174_v61 = vadd.f32 %v4173_v38, %v7901_v15 }
 0x4b4   : > { %v4223_v62 = vadd.f32 %v4222_v53, %v4174_v61 }
 0x4b5   : > { %v4305_v6 = vpop.f32.mrf.mxu2 }
 0x4b6   : > { %v4306_v37 = vadd.f32 %v4305_v6, %v4257_v12 }
 0x4b8   : > { %v4332_v55 = vmax.f32 %v4306_v37, 0.0  ;;  %v4261_v9 = vpop.f32.mrf.mxu1 }
 0x4b9   : > { %v4262_v63 = vadd.f32 %v4261_v9, %v4213_v60 }
 0x4ba   : > { %4348 = vst [vmem:[%s5852_s27 + $0x48] sm:$0xff] %v4332_v55 }
 0x4bd   : > { %v4308_v24 = vpop.f32.mrf.mxu2 }
 0x4be   : > { %v4309_v51 = vadd.f32 %v4308_v24, %v4260_v8 }
 0x4c0   : > { %v4333_v27 = vmax.f32 %v4309_v51, 0.0  ;;  %v4264_v1 = vpop.f32.mrf.mxu1 }
 0x4c1   : > { %v4265_v3 = vadd.f32 %v4264_v1, %v4216_v11 }
 0x4c2   : > { %4349 = vst [vmem:[%s5852_s27 + $0x50] sm:$0xff] %v4333_v27 }
 0x4c5   : > { %v4310_v5 = vpop.f32.mrf.mxu2 }
 0x4c6   : > { %v4311_v32 = vadd.f32 %v4310_v5, %v4262_v63 }
 0x4c8   : > { %v4334_v16 = vmax.f32 %v4311_v32, 0.0  ;;  %v4266_v30 = vpop.f32.mrf.mxu1 }
 0x4c9   : > { %v4267_v29 = vadd.f32 %v4266_v30, %v4218_v21 }
 0x4ca   : > { %4350 = vst [vmem:[%s5852_s27 + $0x58] sm:$0xff] %v4334_v16 }
 0x4cd   : > { %v4313_v36 = vpop.f32.mrf.mxu2 }
 0x4ce   : > { %v4314_v56 = vadd.f32 %v4313_v36, %v4265_v3 }
 0x4d0   : > { %v4335_v31 = vmax.f32 %v4314_v56, 0.0  ;;  %v4269_v50 = vpop.f32.mrf.mxu1 }
 0x4d1   : > { %v4270_v25 = vadd.f32 %v4269_v50, %v4221_v13 }
 0x4d2   : > { %4351 = vst [vmem:[%s5852_s27 + $0x60] sm:$0xff] %v4335_v31 }
 0x4d5   : > { %v4315_v14 = vpop.f32.mrf.mxu2 }
 0x4d6   : > { %v4316_v48 = vadd.f32 %v4315_v14, %v4267_v29 }
 0x4d8   : > { %v4336_v28 = vmax.f32 %v4316_v48, 0.0  ;;  %v4271_v17 = vpop.f32.mrf.mxu1 }
 0x4d9   : > { %v4272_v34 = vadd.f32 %v4271_v17, %v4223_v62 }
 0x4da   : > { %4352 = vst [vmem:[%s5852_s27 + $0x68] sm:$0xff] %v4336_v28 }
 0x4dd   : > { %v4318_v20 = vpop.f32.mrf.mxu2 }
 0x4de   : > { %v4319_v40 = vadd.f32 %v4318_v20, %v4270_v25 }
 0x4e0   : > { %v4337_v22 = vmax.f32 %v4319_v40, 0.0 }
 0x4e2   : > { %4353 = vst [vmem:[%s5852_s27 + $0x70] sm:$0xff] %v4337_v22 }
 0x4e5   : > { %v4320_v23 = vpop.f32.mrf.mxu2 }
 0x4e6   : > { %v4321_v42 = vadd.f32 %v4320_v23, %v4272_v34 }
 0x4e8   : > { %v4338_v15 = vmax.f32 %v4321_v42, 0.0 }
 0x4ea   : > { %4354 = vst [vmem:[%s5852_s27 + $0x78] sm:$0xff] %v4338_v15 }
 0x4eb   : > { %5667 = shalt.err (!%p5664_p7)
}
 0x4ec   : > { %s5739_s12 = smov 128   ;;  %s5740_s27 = smov 8  }
 0x4ed   : > { %5402 = dma.vmem_to_hbm [thread:$0]  (%p5822_p3), %s4371_s14, 2048, %s4373_s15, %s4356_s16, %s5739_s12, %s5739_s12, %s5740_s27  }
 0x4ee PF: > { %p5408_p9 = scmp.ge.s32.totalorder %s5734_s25, 2  ;;  %s4387_s21 = sand.u32 1, %s5706_s18  }
 0x4ef   : > { %s4388_s22 = scalar_lea.sflag [#allocation4], %s4387_s21 }
 0x4f0   : > { %p5405_p10 = pnand %p5408_p9, %p5831_p8 }
 0x4f2   : > { %p5406_p11 = pneg %p5405_p10 }
 0x4f4   : > { %5701 = dma.done.wait (%p5406_p11), %s4388_s22, 2048  }
 0x4f5   : > { %5703 = vsyncadd (%p5406_p11), %s4388_s22, 4294965248  ;;  %s18_s25 = sadd.s32 1, %s5734_s25   ;;  %s8146_s18 = smov %s5710_s19 }
 0x4f6   : > { %p15_p12 = scmp.ge.s32.totalorder %s18_s25, 6   ;;  %s8147_s19 = smov %s5714_s20 }
 0x4f7   : > { %s8148_s20 = smov %s5840_s11  ;;  %s8149_s21 = smov %s5726_s23 }
 0x4f8   : > { %s8150_s22 = smov %s5730_s24  ;;  %s8151_s23 = smov %s8154_s28 }
 0x4f9   : > { %s8152_s24 = smov %s8158_s29  ;;  %17 = sbr.rel (!%p15_p12) target bundleno = 5 (0x5), region = 84 }
 0x4fe   :  { %4394 = vsyncpa [#allocation4], 1 }
 0x4ff   :  { %4396 = vsyncpa [#allocation4 + $0x1], 1 }

</bundles_post_ra>
